<compile_context>
chip_gen: v7x
topology: tpu7x:2x2x1
jax: 0.10.0
libtpu: 0.0.40
codegen_flags: <defaults>
</compile_context>

<pallas_src>
import math

import numpy as np
import jax
import jax.numpy as jnp
from jax.experimental import pallas as pl
from jax.experimental.pallas import tpu as pltpu

# ---- small, module-consistent hyper-parameters (scaled-down nn.Transformer) ----
HIDDEN = 32          # hidden_size
NHEAD = 4            # attention heads (divides HIDDEN)
HD = HIDDEN // NHEAD
DFF = 64             # feed-forward dim
REL_NUM = 7
ENT_NUM = 10
LAYER_NUM = 2
VOCAB = 2 * REL_NUM + 1
SRC_LEN = 3          # [head_ent, first_rel, tail_ent]
LN_EPS = 1e-5
LANE = 128
NEG_INF = -1e30


def _round8(n):
    return ((n + 7) // 8) * 8


# ---------------- static weight-slab layout (shared by packer and kernel) ----------------

def _build_layout():
    mats = []   # (name, rows=in_dim, cols=out_dim), stored transposed to (in, out)
    vecs = []   # (name, cols) -- one row per bias / LN vector

    def add_attn(p):
        mats.append((p + "wqkv", HIDDEN, 3 * HIDDEN))
        vecs.append((p + "bqkv", 3 * HIDDEN))
        mats.append((p + "wo", HIDDEN, HIDDEN))
        vecs.append((p + "bo", HIDDEN))

    def add_ln(name):
        vecs.append((name + "w", HIDDEN))
        vecs.append((name + "b", HIDDEN))

    def add_ffn(p):
        mats.append((p + "w1", HIDDEN, DFF))
        vecs.append((p + "b1", DFF))
        mats.append((p + "w2", DFF, HIDDEN))
        vecs.append((p + "b2", HIDDEN))

    for i in range(LAYER_NUM):
        p = f"enc{i}_"
        add_attn(p + "sa_")
        add_ln(p + "ln1")
        add_ffn(p)
        add_ln(p + "ln2")
    add_ln("encn_")
    for i in range(LAYER_NUM):
        p = f"dec{i}_"
        add_attn(p + "sa_")
        add_ln(p + "ln1")
        add_attn(p + "ca_")
        add_ln(p + "ln2")
        add_ffn(p)
        add_ln(p + "ln3")
    add_ln("decn_")
    mats.append(("proj_w", HIDDEN, VOCAB))
    vecs.append(("proj_b", VOCAB))

    mat_layout = {}
    off = 0
    for name, rows, cols in mats:
        mat_layout[name] = (off, rows, cols)
        off += _round8(rows)
    vec_layout = {name: (i, cols) for i, (name, cols) in enumerate(vecs)}
    return mat_layout, _round8(off), vec_layout, _round8(len(vecs))


MAT_LAYOUT, MAT_ROWS, VEC_LAYOUT, VEC_ROWS = _build_layout()


# ---------------- the fused kernel: whole batch, one invocation ----------------

def _fused_kernel(x_ref, enc_mask_ref, dec_mask_ref, ca_mask_ref,
                  mat_ref, vec_ref, out_ref):
    H = HIDDEN
    ns = enc_mask_ref.shape[0]              # B * SRC_LEN
    nt = dec_mask_ref.shape[0]              # B * L
    tgt_off = x_ref.shape[0] - nt           # src section is 8-row padded

    src = x_ref[0:ns, :]                    # (ns, H) flattened source tokens
    tgt = x_ref[tgt_off:tgt_off + nt, :]    # (nt, H) flattened target tokens

    enc_mask = enc_mask_ref[...]            # additive 0 / -1e30 masks (hoisted, shared)
    dec_mask = dec_mask_ref[...]
    ca_mask = ca_mask_ref[...]

    # static zero-cost views into the two weight slabs
    def W(name):
        off, rows, cols = MAT_LAYOUT[name]
        return mat_ref[off:off + rows, 0:cols]

    def Wfull(name):                        # full 128 lanes (zero-padded) for lane-dense proj
        off, rows, _ = MAT_LAYOUT[name]
        return mat_ref[off:off + rows, :]

    def V(name):
        row, cols = VEC_LAYOUT[name]
        return vec_ref[row:row + 1, 0:cols]

    def Vfull(name):
        row, _ = VEC_LAYOUT[name]
        return vec_ref[row:row + 1, :]

    def layer_norm(v, wn, bn):
        mu = jnp.mean(v, axis=-1, keepdims=True)
        c = v - mu
        var = jnp.mean(c * c, axis=-1, keepdims=True)
        return c * jax.lax.rsqrt(var + LN_EPS) * wn + bn

    def ffn(v, p):
        h = jnp.dot(v, W(p + "w1"), preferred_element_type=jnp.float32) + V(p + "b1")
        h = jnp.maximum(h, 0.0)
        return jnp.dot(h, W(p + "w2"), preferred_element_type=jnp.float32) + V(p + "b2")

    scale = 1.0 / math.sqrt(HD)

    def mha(xq, xkv, p, amask, cross):
        """Batch-folded torch MultiheadAttention (eval). amask is block-diag(+causal)."""
        wqkv = W(p + "wqkv")                # (H, 3H) pre-transposed packed in_proj
        bqkv = V(p + "bqkv")                # (1, 3H)
        wo = W(p + "wo")                    # (H, H)
        bo = V(p + "bo")                    # (1, H)
        if not cross:
            qkv = jnp.dot(xq, wqkv, preferred_element_type=jnp.float32) + bqkv
            q, k, v = qkv[:, 0:H], qkv[:, H:2 * H], qkv[:, 2 * H:3 * H]
        else:
            q = jnp.dot(xq, wqkv[:, 0:H],
                        preferred_element_type=jnp.float32) + bqkv[:, 0:H]
            kv = jnp.dot(xkv, wqkv[:, H:3 * H],
                         preferred_element_type=jnp.float32) + bqkv[:, H:3 * H]
            k, v = kv[:, 0:H], kv[:, H:2 * H]

        out = jnp.zeros((xq.shape[0], H), jnp.float32)
        for h in range(NHEAD):              # static unroll; each matmul spans the full batch
            c0 = h * HD
            qh, kh, vh = q[:, c0:c0 + HD], k[:, c0:c0 + HD], v[:, c0:c0 + HD]
            s = jnp.einsum("qd,kd->qk", qh, kh,
                           preferred_element_type=jnp.float32) * scale + amask
            m = jnp.max(s, axis=-1, keepdims=True)
            e = jnp.exp(s - m)
            pr = e * pl.reciprocal(jnp.sum(e, axis=-1, keepdims=True), approx=True)
            ah = jnp.dot(pr, vh, preferred_element_type=jnp.float32)       # (nq, HD)
            # accumulate out-projection per head: attn @ Wo == sum_h ah @ Wo[rows_h]
            out = out + jnp.dot(ah, wo[c0:c0 + HD, :],
                                preferred_element_type=jnp.float32)
        return out + bo

    # ---- encoder (post-LN, LAYER_NUM layers + final norm), all B samples at once ----
    e = src
    for i in range(LAYER_NUM):
        p = f"enc{i}_"
        e = layer_norm(e + mha(e, e, p + "sa_", enc_mask, cross=False),
                       V(p + "ln1w"), V(p + "ln1b"))
        e = layer_norm(e + ffn(e, p), V(p + "ln2w"), V(p + "ln2b"))
    mem = layer_norm(e, V("encn_w"), V("encn_b"))                          # (ns, H)

    # ---- decoder (post-LN, LAYER_NUM layers + final norm), all B samples at once ----
    d = tgt
    for i in range(LAYER_NUM):
        p = f"dec{i}_"
        d = layer_norm(d + mha(d, d, p + "sa_", dec_mask, cross=False),
                       V(p + "ln1w"), V(p + "ln1b"))
        d = layer_norm(d + mha(d, mem, p + "ca_", ca_mask, cross=True),
                       V(p + "ln2w"), V(p + "ln2b"))
        d = layer_norm(d + ffn(d, p), V(p + "ln3w"), V(p + "ln3b"))
    d = layer_norm(d, V("decn_w"), V("decn_b"))

    # lane-dense final projection (proj_w / proj_b zero-padded to 128 lanes),
    # so the only HBM store is an unmasked (B*L, 128) tile.
    out_ref[...] = (jnp.dot(d, Wfull("proj_w"), preferred_element_type=jnp.float32)
                    + Vfull("proj_b"))


# ---------------- forward pass (embedding gather + mask build are JAX/host glue) ----------------

def _block_mask(b, tq, tk, causal):
    """Additive block-diagonal (+causal) mask for batch-folded attention (host, static)."""
    qi = np.arange(b * tq)
    ki = np.arange(b * tk)
    allow = (qi[:, None] // tq) == (ki[None, :] // tk)       # same sample only
    if causal:
        allow = allow & ((qi[:, None] % tq) >= (ki[None, :] % tk))
    return jnp.asarray(np.where(allow, 0.0, NEG_INF).astype(np.float32))


def rule_generator_forward(packed, chains, heads, tails):
    B, L = chains.shape
    H = HIDDEN
    ns, nt = B * SRC_LEN, B * L
    ns_pad = _round8(ns)

    chain_embs = packed["rel_emb"][chains]                            # (B, L, H)
    src = jnp.stack([packed["ent_emb"][heads],
                     chain_embs[:, 0],
                     packed["ent_emb"][tails]], axis=1)               # (B, 3, H)
    tgt = jnp.concatenate(
        [jnp.zeros((B, 1, H), jnp.float32), chain_embs[:, 1:]], axis=1)  # (B, L, H)

    # single activation slab: flattened src rows (8-row padded) followed by tgt rows
    x = jnp.concatenate([src.reshape(ns, H),
                         jnp.zeros((ns_pad - ns, H), jnp.float32),
                         tgt.reshape(nt, H)], axis=0)                 # (ns_pad+nt, H)

    enc_mask = _block_mask(B, SRC_LEN, SRC_LEN, causal=False)         # (ns, ns)
    dec_mask = _block_mask(B, L, L, causal=True)                      # (nt, nt)
    ca_mask = _block_mask(B, L, SRC_LEN, causal=False)                # (nt, ns)

    vmem = pltpu.MemorySpace.VMEM
    out = pl.pallas_call(
        _fused_kernel,
        in_specs=[pl.BlockSpec(memory_space=vmem)] * 6,
        out_specs=pl.BlockSpec(memory_space=vmem),
        out_shape=jax.ShapeDtypeStruct((nt, LANE), jnp.float32),
    )(x, enc_mask, dec_mask, ca_mask, packed["mat"], packed["vec"])
    return out.reshape(B, L, LANE)[..., :VOCAB]


# ---------------- parameter init (PyTorch layout) + one-time slab packing ----------------

def init_params(key):
    keys = iter(jax.random.split(key, 64))

    def nrm(shape, scale=0.02):
        return (scale * jax.random.normal(next(keys), shape)).astype(jnp.float32)

    def dense(dout, din):
        return {"w": nrm((dout, din)), "b": jnp.zeros((1, dout), jnp.float32)}

    def ln():
        return {"w": jnp.ones((1, HIDDEN), jnp.float32),
                "b": jnp.zeros((1, HIDDEN), jnp.float32)}

    def attn():
        return {"wqkv": nrm((3 * HIDDEN, HIDDEN)),
                "bqkv": jnp.zeros((1, 3 * HIDDEN), jnp.float32),
                "wo": nrm((HIDDEN, HIDDEN)),
                "bo": jnp.zeros((1, HIDDEN), jnp.float32)}

    def enc_layer():
        return {"self_attn": attn(), "norm1": ln(),
                "lin1": dense(DFF, HIDDEN), "lin2": dense(HIDDEN, DFF),
                "norm2": ln()}

    def dec_layer():
        return {"self_attn": attn(), "norm1": ln(),
                "cross_attn": attn(), "norm2": ln(),
                "lin1": dense(DFF, HIDDEN), "lin2": dense(HIDDEN, DFF),
                "norm3": ln()}

    return {
        "rel_emb": nrm((2 * REL_NUM + 1, HIDDEN), 1.0),
        "ent_emb": nrm((ENT_NUM, HIDDEN), 1.0),
        "enc_layers": [enc_layer() for _ in range(LAYER_NUM)],
        "dec_layers": [dec_layer() for _ in range(LAYER_NUM)],
        "enc_norm": ln(),
        "dec_norm": ln(),
        "proj": dense(VOCAB, HIDDEN),
    }


def pack_params(params):
    """One-time host-side prep: transpose weights to (in,out) and pack everything into
    one matrix slab + one vector slab, both lane-padded to 128 and 8-row aligned."""
    mat = np.zeros((MAT_ROWS, LANE), np.float32)
    vec = np.zeros((VEC_ROWS, LANE), np.float32)

    def put_w(name, w_torch):                       # torch layout (out, in)
        off, rows, cols = MAT_LAYOUT[name]
        wt = np.asarray(w_torch, np.float32).T      # -> (in, out)
        assert wt.shape == (rows, cols), (name, wt.shape)
        mat[off:off + rows, :cols] = wt

    def put_v(name, v):                             # (1, out)
        row, cols = VEC_LAYOUT[name]
        vv = np.asarray(v, np.float32).reshape(-1)
        assert vv.shape == (cols,), (name, vv.shape)
        vec[row, :cols] = vv

    def put_attn(p, a):
        put_w(p + "wqkv", a["wqkv"]); put_v(p + "bqkv", a["bqkv"])
        put_w(p + "wo", a["wo"]);     put_v(p + "bo", a["bo"])

    def put_ln(name, l):
        put_v(name + "w", l["w"]); put_v(name + "b", l["b"])

    def put_ffn(p, layer):
        put_w(p + "w1", layer["lin1"]["w"]); put_v(p + "b1", layer["lin1"]["b"])
        put_w(p + "w2", layer["lin2"]["w"]); put_v(p + "b2", layer["lin2"]["b"])

    for i, layer in enumerate(params["enc_layers"]):
        p = f"enc{i}_"
        put_attn(p + "sa_", layer["self_attn"])
        put_ln(p + "ln1", layer["norm1"])
        put_ffn(p, layer)
        put_ln(p + "ln2", layer["norm2"])
    put_ln("encn_", params["enc_norm"])
    for i, layer in enumerate(params["dec_layers"]):
        p = f"dec{i}_"
        put_attn(p + "sa_", layer["self_attn"])
        put_ln(p + "ln1", layer["norm1"])
        put_attn(p + "ca_", layer["cross_attn"])
        put_ln(p + "ln2", layer["norm2"])
        put_ffn(p, layer)
        put_ln(p + "ln3", layer["norm3"])
    put_ln("decn_", params["dec_norm"])
    put_w("proj_w", params["proj"]["w"]); put_v("proj_b", params["proj"]["b"])

    return {"rel_emb": params["rel_emb"], "ent_emb": params["ent_emb"],
            "mat": jnp.asarray(mat), "vec": jnp.asarray(vec)}


if __name__ == "__main__":
    key = jax.random.PRNGKey(0)
    pkey, ckey, hkey, tkey = jax.random.split(key, 4)
    params = init_params(pkey)
    packed = pack_params(params)

    B, L = 2, 4
    chains = jax.random.randint(ckey, (B, L), 0, VOCAB, dtype=jnp.int32)
    heads = jax.random.randint(hkey, (B,), 0, ENT_NUM, dtype=jnp.int32)
    tails = jax.random.randint(tkey, (B,), 0, ENT_NUM, dtype=jnp.int32)

    logits = jax.jit(rule_generator_forward)(packed, chains, heads, tails)
    jax.block_until_ready(logits)
    assert logits.shape == (B, L, VOCAB) and logits.dtype == jnp.float32
    assert bool(jnp.all(jnp.isfinite(logits)))
    print("KERNEL_OK")
</pallas_src>

<mosaic_0001>
module attributes {stable_mosaic.version = 11 : i64} {
  func.func @_fused_kernel(%arg0: memref<16x32xf32, #tpu.memory_space<vmem>>, %arg1: memref<6x6xf32, #tpu.memory_space<vmem>>, %arg2: memref<8x8xf32, #tpu.memory_space<vmem>>, %arg3: memref<8x6xf32, #tpu.memory_space<vmem>>, %arg4: memref<800x128xf32, #tpu.memory_space<vmem>>, %arg5: memref<48x128xf32, #tpu.memory_space<vmem>>, %arg6: memref<8x128xf32, #tpu.memory_space<vmem>>) attributes {dimension_semantics = [], scalar_prefetch = 0 : i64, scratch_operands = 0 : i64, tpu.core_type = #tpu.core_type<tc>} {
    %c0 = arith.constant 0 : index
    %c0_0 = arith.constant 0 : index
    %0 = vector.load %arg0[%c0, %c0_0] : memref<16x32xf32, #tpu.memory_space<vmem>>, vector<6x32xf32>
    %c8 = arith.constant 8 : index
    %c0_1 = arith.constant 0 : index
    %1 = vector.load %arg0[%c8, %c0_1] : memref<16x32xf32, #tpu.memory_space<vmem>>, vector<8x32xf32>
    %c0_2 = arith.constant 0 : index
    %c0_3 = arith.constant 0 : index
    %2 = vector.load %arg1[%c0_2, %c0_3] : memref<6x6xf32, #tpu.memory_space<vmem>>, vector<6x6xf32>
    %c0_4 = arith.constant 0 : index
    %c0_5 = arith.constant 0 : index
    %3 = vector.load %arg2[%c0_4, %c0_5] : memref<8x8xf32, #tpu.memory_space<vmem>>, vector<8x8xf32>
    %c0_6 = arith.constant 0 : index
    %c0_7 = arith.constant 0 : index
    %4 = vector.load %arg3[%c0_6, %c0_7] : memref<8x6xf32, #tpu.memory_space<vmem>>, vector<8x6xf32>
    %c0_8 = arith.constant 0 : index
    %c0_9 = arith.constant 0 : index
    %5 = vector.load %arg4[%c0_8, %c0_9] : memref<800x128xf32, #tpu.memory_space<vmem>>, vector<32x96xf32>
    %c0_10 = arith.constant 0 : index
    %c0_11 = arith.constant 0 : index
    %6 = vector.load %arg5[%c0_10, %c0_11] : memref<48x128xf32, #tpu.memory_space<vmem>>, vector<1x96xf32>
    %c32 = arith.constant 32 : index
    %c0_12 = arith.constant 0 : index
    %7 = vector.load %arg4[%c32, %c0_12] : memref<800x128xf32, #tpu.memory_space<vmem>>, vector<32x32xf32>
    %c1 = arith.constant 1 : index
    %c0_13 = arith.constant 0 : index
    %8 = vector.load %arg5[%c1, %c0_13] : memref<48x128xf32, #tpu.memory_space<vmem>>, vector<1x32xf32>
    %cst = arith.constant dense<0.000000e+00> : vector<6x96xf32>
    %9 = tpu.matmul %0, %5, %cst {dimension_numbers = #tpu.dot_dimension_numbers<[1], [0], [0], [1], [0, 0, 1, 1], [], []>} : vector<6x32xf32>, vector<32x96xf32>, vector<6x96xf32> -> vector<6x96xf32>
    %10 = vector.broadcast %6 : vector<1x96xf32> to vector<6x96xf32>
    %11 = arith.addf %9, %10 : vector<6x96xf32>
    %12 = vector.extract_strided_slice %11 {offsets = [0, 0], sizes = [6, 32], strides = [1, 1]} : vector<6x96xf32> to vector<6x32xf32>
    %13 = vector.extract_strided_slice %11 {offsets = [0, 32], sizes = [6, 32], strides = [1, 1]} : vector<6x96xf32> to vector<6x32xf32>
    %14 = vector.extract_strided_slice %11 {offsets = [0, 64], sizes = [6, 32], strides = [1, 1]} : vector<6x96xf32> to vector<6x32xf32>
    %cst_14 = arith.constant 0.000000e+00 : f32
    %15 = vector.broadcast %cst_14 : f32 to vector<6x32xf32>
    %16 = vector.extract_strided_slice %12 {offsets = [0, 0], sizes = [6, 8], strides = [1, 1]} : vector<6x32xf32> to vector<6x8xf32>
    %17 = vector.extract_strided_slice %13 {offsets = [0, 0], sizes = [6, 8], strides = [1, 1]} : vector<6x32xf32> to vector<6x8xf32>
    %18 = vector.extract_strided_slice %14 {offsets = [0, 0], sizes = [6, 8], strides = [1, 1]} : vector<6x32xf32> to vector<6x8xf32>
    "tpu.trace_start"() <{level = 10 : i32, message = "qd,kd->qk"}> : () -> ()
    %cst_15 = arith.constant dense<0.000000e+00> : vector<6x6xf32>
    %19 = tpu.matmul %16, %17, %cst_15 {dimension_numbers = #tpu.dot_dimension_numbers<[1], [1], [0], [0], [0, 0, 1, 0], [], []>} : vector<6x8xf32>, vector<6x8xf32>, vector<6x6xf32> -> vector<6x6xf32>
    "tpu.trace_stop"() : () -> ()
    %cst_16 = arith.constant 0.353553385 : f32
    %20 = vector.broadcast %cst_16 : f32 to vector<6x6xf32>
    %21 = arith.mulf %19, %20 : vector<6x6xf32>
    %22 = arith.addf %21, %2 : vector<6x6xf32>
    %cst_17 = arith.constant dense<0xFF800000> : vector<6xf32>
    %23 = vector.multi_reduction <maximumf>, %22, %cst_17 [1] : vector<6x6xf32> to vector<6xf32>
    %24 = vector.shape_cast %23 : vector<6xf32> to vector<6x1xf32>
    %25 = vector.broadcast %24 : vector<6x1xf32> to vector<6x6xf32>
    %26 = arith.subf %22, %25 : vector<6x6xf32>
    %27 = math.exp %26 : vector<6x6xf32>
    %cst_18 = arith.constant dense<0.000000e+00> : vector<6xf32>
    %28 = vector.multi_reduction <add>, %27, %cst_18 [1] : vector<6x6xf32> to vector<6xf32>
    %29 = vector.shape_cast %28 : vector<6xf32> to vector<6x1xf32>
    %30 = tpu.reciprocal %29 {approx = true} : vector<6x1xf32> -> vector<6x1xf32>
    %31 = vector.broadcast %30 : vector<6x1xf32> to vector<6x6xf32>
    %32 = arith.mulf %27, %31 : vector<6x6xf32>
    %cst_19 = arith.constant dense<0.000000e+00> : vector<6x8xf32>
    %33 = tpu.matmul %32, %18, %cst_19 {dimension_numbers = #tpu.dot_dimension_numbers<[1], [0], [0], [1], [0, 0, 1, 1], [], []>} : vector<6x6xf32>, vector<6x8xf32>, vector<6x8xf32> -> vector<6x8xf32>
    %34 = vector.extract_strided_slice %7 {offsets = [0, 0], sizes = [8, 32], strides = [1, 1]} : vector<32x32xf32> to vector<8x32xf32>
    %cst_20 = arith.constant dense<0.000000e+00> : vector<6x32xf32>
    %35 = tpu.matmul %33, %34, %cst_20 {dimension_numbers = #tpu.dot_dimension_numbers<[1], [0], [0], [1], [0, 0, 1, 1], [], []>} : vector<6x8xf32>, vector<8x32xf32>, vector<6x32xf32> -> vector<6x32xf32>
    %36 = arith.addf %15, %35 : vector<6x32xf32>
    %37 = vector.extract_strided_slice %12 {offsets = [0, 8], sizes = [6, 8], strides = [1, 1]} : vector<6x32xf32> to vector<6x8xf32>
    %38 = vector.extract_strided_slice %13 {offsets = [0, 8], sizes = [6, 8], strides = [1, 1]} : vector<6x32xf32> to vector<6x8xf32>
    %39 = vector.extract_strided_slice %14 {offsets = [0, 8], sizes = [6, 8], strides = [1, 1]} : vector<6x32xf32> to vector<6x8xf32>
    "tpu.trace_start"() <{level = 10 : i32, message = "qd,kd->qk"}> : () -> ()
    %cst_21 = arith.constant dense<0.000000e+00> : vector<6x6xf32>
    %40 = tpu.matmul %37, %38, %cst_21 {dimension_numbers = #tpu.dot_dimension_numbers<[1], [1], [0], [0], [0, 0, 1, 0], [], []>} : vector<6x8xf32>, vector<6x8xf32>, vector<6x6xf32> -> vector<6x6xf32>
    "tpu.trace_stop"() : () -> ()
    %cst_22 = arith.constant 0.353553385 : f32
    %41 = vector.broadcast %cst_22 : f32 to vector<6x6xf32>
    %42 = arith.mulf %40, %41 : vector<6x6xf32>
    %43 = arith.addf %42, %2 : vector<6x6xf32>
    %cst_23 = arith.constant dense<0xFF800000> : vector<6xf32>
    %44 = vector.multi_reduction <maximumf>, %43, %cst_23 [1] : vector<6x6xf32> to vector<6xf32>
    %45 = vector.shape_cast %44 : vector<6xf32> to vector<6x1xf32>
    %46 = vector.broadcast %45 : vector<6x1xf32> to vector<6x6xf32>
    %47 = arith.subf %43, %46 : vector<6x6xf32>
    %48 = math.exp %47 : vector<6x6xf32>
    %cst_24 = arith.constant dense<0.000000e+00> : vector<6xf32>
    %49 = vector.multi_reduction <add>, %48, %cst_24 [1] : vector<6x6xf32> to vector<6xf32>
    %50 = vector.shape_cast %49 : vector<6xf32> to vector<6x1xf32>
    %51 = tpu.reciprocal %50 {approx = true} : vector<6x1xf32> -> vector<6x1xf32>
    %52 = vector.broadcast %51 : vector<6x1xf32> to vector<6x6xf32>
    %53 = arith.mulf %48, %52 : vector<6x6xf32>
    %cst_25 = arith.constant dense<0.000000e+00> : vector<6x8xf32>
    %54 = tpu.matmul %53, %39, %cst_25 {dimension_numbers = #tpu.dot_dimension_numbers<[1], [0], [0], [1], [0, 0, 1, 1], [], []>} : vector<6x6xf32>, vector<6x8xf32>, vector<6x8xf32> -> vector<6x8xf32>
    %55 = vector.extract_strided_slice %7 {offsets = [8, 0], sizes = [8, 32], strides = [1, 1]} : vector<32x32xf32> to vector<8x32xf32>
    %cst_26 = arith.constant dense<0.000000e+00> : vector<6x32xf32>
    %56 = tpu.matmul %54, %55, %cst_26 {dimension_numbers = #tpu.dot_dimension_numbers<[1], [0], [0], [1], [0, 0, 1, 1], [], []>} : vector<6x8xf32>, vector<8x32xf32>, vector<6x32xf32> -> vector<6x32xf32>
    %57 = arith.addf %36, %56 : vector<6x32xf32>
    %58 = vector.extract_strided_slice %12 {offsets = [0, 16], sizes = [6, 8], strides = [1, 1]} : vector<6x32xf32> to vector<6x8xf32>
    %59 = vector.extract_strided_slice %13 {offsets = [0, 16], sizes = [6, 8], strides = [1, 1]} : vector<6x32xf32> to vector<6x8xf32>
    %60 = vector.extract_strided_slice %14 {offsets = [0, 16], sizes = [6, 8], strides = [1, 1]} : vector<6x32xf32> to vector<6x8xf32>
    "tpu.trace_start"() <{level = 10 : i32, message = "qd,kd->qk"}> : () -> ()
    %cst_27 = arith.constant dense<0.000000e+00> : vector<6x6xf32>
    %61 = tpu.matmul %58, %59, %cst_27 {dimension_numbers = #tpu.dot_dimension_numbers<[1], [1], [0], [0], [0, 0, 1, 0], [], []>} : vector<6x8xf32>, vector<6x8xf32>, vector<6x6xf32> -> vector<6x6xf32>
    "tpu.trace_stop"() : () -> ()
    %cst_28 = arith.constant 0.353553385 : f32
    %62 = vector.broadcast %cst_28 : f32 to vector<6x6xf32>
    %63 = arith.mulf %61, %62 : vector<6x6xf32>
    %64 = arith.addf %63, %2 : vector<6x6xf32>
    %cst_29 = arith.constant dense<0xFF800000> : vector<6xf32>
    %65 = vector.multi_reduction <maximumf>, %64, %cst_29 [1] : vector<6x6xf32> to vector<6xf32>
    %66 = vector.shape_cast %65 : vector<6xf32> to vector<6x1xf32>
    %67 = vector.broadcast %66 : vector<6x1xf32> to vector<6x6xf32>
    %68 = arith.subf %64, %67 : vector<6x6xf32>
    %69 = math.exp %68 : vector<6x6xf32>
    %cst_30 = arith.constant dense<0.000000e+00> : vector<6xf32>
    %70 = vector.multi_reduction <add>, %69, %cst_30 [1] : vector<6x6xf32> to vector<6xf32>
    %71 = vector.shape_cast %70 : vector<6xf32> to vector<6x1xf32>
    %72 = tpu.reciprocal %71 {approx = true} : vector<6x1xf32> -> vector<6x1xf32>
    %73 = vector.broadcast %72 : vector<6x1xf32> to vector<6x6xf32>
    %74 = arith.mulf %69, %73 : vector<6x6xf32>
    %cst_31 = arith.constant dense<0.000000e+00> : vector<6x8xf32>
    %75 = tpu.matmul %74, %60, %cst_31 {dimension_numbers = #tpu.dot_dimension_numbers<[1], [0], [0], [1], [0, 0, 1, 1], [], []>} : vector<6x6xf32>, vector<6x8xf32>, vector<6x8xf32> -> vector<6x8xf32>
    %76 = vector.extract_strided_slice %7 {offsets = [16, 0], sizes = [8, 32], strides = [1, 1]} : vector<32x32xf32> to vector<8x32xf32>
    %cst_32 = arith.constant dense<0.000000e+00> : vector<6x32xf32>
    %77 = tpu.matmul %75, %76, %cst_32 {dimension_numbers = #tpu.dot_dimension_numbers<[1], [0], [0], [1], [0, 0, 1, 1], [], []>} : vector<6x8xf32>, vector<8x32xf32>, vector<6x32xf32> -> vector<6x32xf32>
    %78 = arith.addf %57, %77 : vector<6x32xf32>
    %79 = vector.extract_strided_slice %12 {offsets = [0, 24], sizes = [6, 8], strides = [1, 1]} : vector<6x32xf32> to vector<6x8xf32>
    %80 = vector.extract_strided_slice %13 {offsets = [0, 24], sizes = [6, 8], strides = [1, 1]} : vector<6x32xf32> to vector<6x8xf32>
    %81 = vector.extract_strided_slice %14 {offsets = [0, 24], sizes = [6, 8], strides = [1, 1]} : vector<6x32xf32> to vector<6x8xf32>
    "tpu.trace_start"() <{level = 10 : i32, message = "qd,kd->qk"}> : () -> ()
    %cst_33 = arith.constant dense<0.000000e+00> : vector<6x6xf32>
    %82 = tpu.matmul %79, %80, %cst_33 {dimension_numbers = #tpu.dot_dimension_numbers<[1], [1], [0], [0], [0, 0, 1, 0], [], []>} : vector<6x8xf32>, vector<6x8xf32>, vector<6x6xf32> -> vector<6x6xf32>
    "tpu.trace_stop"() : () -> ()
    %cst_34 = arith.constant 0.353553385 : f32
    %83 = vector.broadcast %cst_34 : f32 to vector<6x6xf32>
    %84 = arith.mulf %82, %83 : vector<6x6xf32>
    %85 = arith.addf %84, %2 : vector<6x6xf32>
    %cst_35 = arith.constant dense<0xFF800000> : vector<6xf32>
    %86 = vector.multi_reduction <maximumf>, %85, %cst_35 [1] : vector<6x6xf32> to vector<6xf32>
    %87 = vector.shape_cast %86 : vector<6xf32> to vector<6x1xf32>
    %88 = vector.broadcast %87 : vector<6x1xf32> to vector<6x6xf32>
    %89 = arith.subf %85, %88 : vector<6x6xf32>
    %90 = math.exp %89 : vector<6x6xf32>
    %cst_36 = arith.constant dense<0.000000e+00> : vector<6xf32>
    %91 = vector.multi_reduction <add>, %90, %cst_36 [1] : vector<6x6xf32> to vector<6xf32>
    %92 = vector.shape_cast %91 : vector<6xf32> to vector<6x1xf32>
    %93 = tpu.reciprocal %92 {approx = true} : vector<6x1xf32> -> vector<6x1xf32>
    %94 = vector.broadcast %93 : vector<6x1xf32> to vector<6x6xf32>
    %95 = arith.mulf %90, %94 : vector<6x6xf32>
    %cst_37 = arith.constant dense<0.000000e+00> : vector<6x8xf32>
    %96 = tpu.matmul %95, %81, %cst_37 {dimension_numbers = #tpu.dot_dimension_numbers<[1], [0], [0], [1], [0, 0, 1, 1], [], []>} : vector<6x6xf32>, vector<6x8xf32>, vector<6x8xf32> -> vector<6x8xf32>
    %97 = vector.extract_strided_slice %7 {offsets = [24, 0], sizes = [8, 32], strides = [1, 1]} : vector<32x32xf32> to vector<8x32xf32>
    %cst_38 = arith.constant dense<0.000000e+00> : vector<6x32xf32>
    %98 = tpu.matmul %96, %97, %cst_38 {dimension_numbers = #tpu.dot_dimension_numbers<[1], [0], [0], [1], [0, 0, 1, 1], [], []>} : vector<6x8xf32>, vector<8x32xf32>, vector<6x32xf32> -> vector<6x32xf32>
    %99 = arith.addf %78, %98 : vector<6x32xf32>
    %100 = vector.broadcast %8 : vector<1x32xf32> to vector<6x32xf32>
    %101 = arith.addf %99, %100 : vector<6x32xf32>
    %102 = arith.addf %0, %101 : vector<6x32xf32>
    %c2 = arith.constant 2 : index
    %c0_39 = arith.constant 0 : index
    %103 = vector.load %arg5[%c2, %c0_39] : memref<48x128xf32, #tpu.memory_space<vmem>>, vector<1x32xf32>
    %c3 = arith.constant 3 : index
    %c0_40 = arith.constant 0 : index
    %104 = vector.load %arg5[%c3, %c0_40] : memref<48x128xf32, #tpu.memory_space<vmem>>, vector<1x32xf32>
    %cst_41 = arith.constant dense<0.000000e+00> : vector<6xf32>
    %105 = vector.multi_reduction <add>, %102, %cst_41 [1] : vector<6x32xf32> to vector<6xf32>
    %106 = vector.shape_cast %105 : vector<6xf32> to vector<6x1xf32>
    %cst_42 = arith.constant 3.200000e+01 : f32
    %107 = vector.broadcast %cst_42 : f32 to vector<6x1xf32>
    %108 = arith.divf %106, %107 : vector<6x1xf32>
    %109 = vector.broadcast %108 : vector<6x1xf32> to vector<6x32xf32>
    %110 = arith.subf %102, %109 : vector<6x32xf32>
    %111 = arith.mulf %110, %110 : vector<6x32xf32>
    %cst_43 = arith.constant dense<0.000000e+00> : vector<6xf32>
    %112 = vector.multi_reduction <add>, %111, %cst_43 [1] : vector<6x32xf32> to vector<6xf32>
    %113 = vector.shape_cast %112 : vector<6xf32> to vector<6x1xf32>
    %cst_44 = arith.constant 3.200000e+01 : f32
    %114 = vector.broadcast %cst_44 : f32 to vector<6x1xf32>
    %115 = arith.divf %113, %114 : vector<6x1xf32>
    %cst_45 = arith.constant 9.99999974E-6 : f32
    %116 = vector.broadcast %cst_45 : f32 to vector<6x1xf32>
    %117 = arith.addf %115, %116 : vector<6x1xf32>
    %118 = math.rsqrt %117 : vector<6x1xf32>
    %119 = vector.broadcast %118 : vector<6x1xf32> to vector<6x32xf32>
    %120 = arith.mulf %110, %119 : vector<6x32xf32>
    %121 = vector.broadcast %103 : vector<1x32xf32> to vector<6x32xf32>
    %122 = arith.mulf %120, %121 : vector<6x32xf32>
    %123 = vector.broadcast %104 : vector<1x32xf32> to vector<6x32xf32>
    %124 = arith.addf %122, %123 : vector<6x32xf32>
    %c64 = arith.constant 64 : index
    %c0_46 = arith.constant 0 : index
    %125 = vector.load %arg4[%c64, %c0_46] : memref<800x128xf32, #tpu.memory_space<vmem>>, vector<32x64xf32>
    %cst_47 = arith.constant dense<0.000000e+00> : vector<6x64xf32>
    %126 = tpu.matmul %124, %125, %cst_47 {dimension_numbers = #tpu.dot_dimension_numbers<[1], [0], [0], [1], [0, 0, 1, 1], [], []>} : vector<6x32xf32>, vector<32x64xf32>, vector<6x64xf32> -> vector<6x64xf32>
    %c4 = arith.constant 4 : index
    %c0_48 = arith.constant 0 : index
    %127 = vector.load %arg5[%c4, %c0_48] : memref<48x128xf32, #tpu.memory_space<vmem>>, vector<1x64xf32>
    %128 = vector.broadcast %127 : vector<1x64xf32> to vector<6x64xf32>
    %129 = arith.addf %126, %128 : vector<6x64xf32>
    %cst_49 = arith.constant 0.000000e+00 : f32
    %130 = vector.broadcast %cst_49 : f32 to vector<6x64xf32>
    %131 = arith.maximumf %129, %130 : vector<6x64xf32>
    %c96 = arith.constant 96 : index
    %c0_50 = arith.constant 0 : index
    %132 = vector.load %arg4[%c96, %c0_50] : memref<800x128xf32, #tpu.memory_space<vmem>>, vector<64x32xf32>
    %cst_51 = arith.constant dense<0.000000e+00> : vector<6x32xf32>
    %133 = tpu.matmul %131, %132, %cst_51 {dimension_numbers = #tpu.dot_dimension_numbers<[1], [0], [0], [1], [0, 0, 1, 1], [], []>} : vector<6x64xf32>, vector<64x32xf32>, vector<6x32xf32> -> vector<6x32xf32>
    %c5 = arith.constant 5 : index
    %c0_52 = arith.constant 0 : index
    %134 = vector.load %arg5[%c5, %c0_52] : memref<48x128xf32, #tpu.memory_space<vmem>>, vector<1x32xf32>
    %135 = vector.broadcast %134 : vector<1x32xf32> to vector<6x32xf32>
    %136 = arith.addf %133, %135 : vector<6x32xf32>
    %137 = arith.addf %124, %136 : vector<6x32xf32>
    %c6 = arith.constant 6 : index
    %c0_53 = arith.constant 0 : index
    %138 = vector.load %arg5[%c6, %c0_53] : memref<48x128xf32, #tpu.memory_space<vmem>>, vector<1x32xf32>
    %c7 = arith.constant 7 : index
    %c0_54 = arith.constant 0 : index
    %139 = vector.load %arg5[%c7, %c0_54] : memref<48x128xf32, #tpu.memory_space<vmem>>, vector<1x32xf32>
    %cst_55 = arith.constant dense<0.000000e+00> : vector<6xf32>
    %140 = vector.multi_reduction <add>, %137, %cst_55 [1] : vector<6x32xf32> to vector<6xf32>
    %141 = vector.shape_cast %140 : vector<6xf32> to vector<6x1xf32>
    %cst_56 = arith.constant 3.200000e+01 : f32
    %142 = vector.broadcast %cst_56 : f32 to vector<6x1xf32>
    %143 = arith.divf %141, %142 : vector<6x1xf32>
    %144 = vector.broadcast %143 : vector<6x1xf32> to vector<6x32xf32>
    %145 = arith.subf %137, %144 : vector<6x32xf32>
    %146 = arith.mulf %145, %145 : vector<6x32xf32>
    %cst_57 = arith.constant dense<0.000000e+00> : vector<6xf32>
    %147 = vector.multi_reduction <add>, %146, %cst_57 [1] : vector<6x32xf32> to vector<6xf32>
    %148 = vector.shape_cast %147 : vector<6xf32> to vector<6x1xf32>
    %cst_58 = arith.constant 3.200000e+01 : f32
    %149 = vector.broadcast %cst_58 : f32 to vector<6x1xf32>
    %150 = arith.divf %148, %149 : vector<6x1xf32>
    %cst_59 = arith.constant 9.99999974E-6 : f32
    %151 = vector.broadcast %cst_59 : f32 to vector<6x1xf32>
    %152 = arith.addf %150, %151 : vector<6x1xf32>
    %153 = math.rsqrt %152 : vector<6x1xf32>
    %154 = vector.broadcast %153 : vector<6x1xf32> to vector<6x32xf32>
    %155 = arith.mulf %145, %154 : vector<6x32xf32>
    %156 = vector.broadcast %138 : vector<1x32xf32> to vector<6x32xf32>
    %157 = arith.mulf %155, %156 : vector<6x32xf32>
    %158 = vector.broadcast %139 : vector<1x32xf32> to vector<6x32xf32>
    %159 = arith.addf %157, %158 : vector<6x32xf32>
    %c160 = arith.constant 160 : index
    %c0_60 = arith.constant 0 : index
    %160 = vector.load %arg4[%c160, %c0_60] : memref<800x128xf32, #tpu.memory_space<vmem>>, vector<32x96xf32>
    %c8_61 = arith.constant 8 : index
    %c0_62 = arith.constant 0 : index
    %161 = vector.load %arg5[%c8_61, %c0_62] : memref<48x128xf32, #tpu.memory_space<vmem>>, vector<1x96xf32>
    %c192 = arith.constant 192 : index
    %c0_63 = arith.constant 0 : index
    %162 = vector.load %arg4[%c192, %c0_63] : memref<800x128xf32, #tpu.memory_space<vmem>>, vector<32x32xf32>
    %c9 = arith.constant 9 : index
    %c0_64 = arith.constant 0 : index
    %163 = vector.load %arg5[%c9, %c0_64] : memref<48x128xf32, #tpu.memory_space<vmem>>, vector<1x32xf32>
    %cst_65 = arith.constant dense<0.000000e+00> : vector<6x96xf32>
    %164 = tpu.matmul %159, %160, %cst_65 {dimension_numbers = #tpu.dot_dimension_numbers<[1], [0], [0], [1], [0, 0, 1, 1], [], []>} : vector<6x32xf32>, vector<32x96xf32>, vector<6x96xf32> -> vector<6x96xf32>
    %165 = vector.broadcast %161 : vector<1x96xf32> to vector<6x96xf32>
    %166 = arith.addf %164, %165 : vector<6x96xf32>
    %167 = vector.extract_strided_slice %166 {offsets = [0, 0], sizes = [6, 32], strides = [1, 1]} : vector<6x96xf32> to vector<6x32xf32>
    %168 = vector.extract_strided_slice %166 {offsets = [0, 32], sizes = [6, 32], strides = [1, 1]} : vector<6x96xf32> to vector<6x32xf32>
    %169 = vector.extract_strided_slice %166 {offsets = [0, 64], sizes = [6, 32], strides = [1, 1]} : vector<6x96xf32> to vector<6x32xf32>
    %cst_66 = arith.constant 0.000000e+00 : f32
    %170 = vector.broadcast %cst_66 : f32 to vector<6x32xf32>
    %171 = vector.extract_strided_slice %167 {offsets = [0, 0], sizes = [6, 8], strides = [1, 1]} : vector<6x32xf32> to vector<6x8xf32>
    %172 = vector.extract_strided_slice %168 {offsets = [0, 0], sizes = [6, 8], strides = [1, 1]} : vector<6x32xf32> to vector<6x8xf32>
    %173 = vector.extract_strided_slice %169 {offsets = [0, 0], sizes = [6, 8], strides = [1, 1]} : vector<6x32xf32> to vector<6x8xf32>
    "tpu.trace_start"() <{level = 10 : i32, message = "qd,kd->qk"}> : () -> ()
    %cst_67 = arith.constant dense<0.000000e+00> : vector<6x6xf32>
    %174 = tpu.matmul %171, %172, %cst_67 {dimension_numbers = #tpu.dot_dimension_numbers<[1], [1], [0], [0], [0, 0, 1, 0], [], []>} : vector<6x8xf32>, vector<6x8xf32>, vector<6x6xf32> -> vector<6x6xf32>
    "tpu.trace_stop"() : () -> ()
    %cst_68 = arith.constant 0.353553385 : f32
    %175 = vector.broadcast %cst_68 : f32 to vector<6x6xf32>
    %176 = arith.mulf %174, %175 : vector<6x6xf32>
    %177 = arith.addf %176, %2 : vector<6x6xf32>
    %cst_69 = arith.constant dense<0xFF800000> : vector<6xf32>
    %178 = vector.multi_reduction <maximumf>, %177, %cst_69 [1] : vector<6x6xf32> to vector<6xf32>
    %179 = vector.shape_cast %178 : vector<6xf32> to vector<6x1xf32>
    %180 = vector.broadcast %179 : vector<6x1xf32> to vector<6x6xf32>
    %181 = arith.subf %177, %180 : vector<6x6xf32>
    %182 = math.exp %181 : vector<6x6xf32>
    %cst_70 = arith.constant dense<0.000000e+00> : vector<6xf32>
    %183 = vector.multi_reduction <add>, %182, %cst_70 [1] : vector<6x6xf32> to vector<6xf32>
    %184 = vector.shape_cast %183 : vector<6xf32> to vector<6x1xf32>
    %185 = tpu.reciprocal %184 {approx = true} : vector<6x1xf32> -> vector<6x1xf32>
    %186 = vector.broadcast %185 : vector<6x1xf32> to vector<6x6xf32>
    %187 = arith.mulf %182, %186 : vector<6x6xf32>
    %cst_71 = arith.constant dense<0.000000e+00> : vector<6x8xf32>
    %188 = tpu.matmul %187, %173, %cst_71 {dimension_numbers = #tpu.dot_dimension_numbers<[1], [0], [0], [1], [0, 0, 1, 1], [], []>} : vector<6x6xf32>, vector<6x8xf32>, vector<6x8xf32> -> vector<6x8xf32>
    %189 = vector.extract_strided_slice %162 {offsets = [0, 0], sizes = [8, 32], strides = [1, 1]} : vector<32x32xf32> to vector<8x32xf32>
    %cst_72 = arith.constant dense<0.000000e+00> : vector<6x32xf32>
    %190 = tpu.matmul %188, %189, %cst_72 {dimension_numbers = #tpu.dot_dimension_numbers<[1], [0], [0], [1], [0, 0, 1, 1], [], []>} : vector<6x8xf32>, vector<8x32xf32>, vector<6x32xf32> -> vector<6x32xf32>
    %191 = arith.addf %170, %190 : vector<6x32xf32>
    %192 = vector.extract_strided_slice %167 {offsets = [0, 8], sizes = [6, 8], strides = [1, 1]} : vector<6x32xf32> to vector<6x8xf32>
    %193 = vector.extract_strided_slice %168 {offsets = [0, 8], sizes = [6, 8], strides = [1, 1]} : vector<6x32xf32> to vector<6x8xf32>
    %194 = vector.extract_strided_slice %169 {offsets = [0, 8], sizes = [6, 8], strides = [1, 1]} : vector<6x32xf32> to vector<6x8xf32>
    "tpu.trace_start"() <{level = 10 : i32, message = "qd,kd->qk"}> : () -> ()
    %cst_73 = arith.constant dense<0.000000e+00> : vector<6x6xf32>
    %195 = tpu.matmul %192, %193, %cst_73 {dimension_numbers = #tpu.dot_dimension_numbers<[1], [1], [0], [0], [0, 0, 1, 0], [], []>} : vector<6x8xf32>, vector<6x8xf32>, vector<6x6xf32> -> vector<6x6xf32>
    "tpu.trace_stop"() : () -> ()
    %cst_74 = arith.constant 0.353553385 : f32
    %196 = vector.broadcast %cst_74 : f32 to vector<6x6xf32>
    %197 = arith.mulf %195, %196 : vector<6x6xf32>
    %198 = arith.addf %197, %2 : vector<6x6xf32>
    %cst_75 = arith.constant dense<0xFF800000> : vector<6xf32>
    %199 = vector.multi_reduction <maximumf>, %198, %cst_75 [1] : vector<6x6xf32> to vector<6xf32>
    %200 = vector.shape_cast %199 : vector<6xf32> to vector<6x1xf32>
    %201 = vector.broadcast %200 : vector<6x1xf32> to vector<6x6xf32>
    %202 = arith.subf %198, %201 : vector<6x6xf32>
    %203 = math.exp %202 : vector<6x6xf32>
    %cst_76 = arith.constant dense<0.000000e+00> : vector<6xf32>
    %204 = vector.multi_reduction <add>, %203, %cst_76 [1] : vector<6x6xf32> to vector<6xf32>
    %205 = vector.shape_cast %204 : vector<6xf32> to vector<6x1xf32>
    %206 = tpu.reciprocal %205 {approx = true} : vector<6x1xf32> -> vector<6x1xf32>
    %207 = vector.broadcast %206 : vector<6x1xf32> to vector<6x6xf32>
    %208 = arith.mulf %203, %207 : vector<6x6xf32>
    %cst_77 = arith.constant dense<0.000000e+00> : vector<6x8xf32>
    %209 = tpu.matmul %208, %194, %cst_77 {dimension_numbers = #tpu.dot_dimension_numbers<[1], [0], [0], [1], [0, 0, 1, 1], [], []>} : vector<6x6xf32>, vector<6x8xf32>, vector<6x8xf32> -> vector<6x8xf32>
    %210 = vector.extract_strided_slice %162 {offsets = [8, 0], sizes = [8, 32], strides = [1, 1]} : vector<32x32xf32> to vector<8x32xf32>
    %cst_78 = arith.constant dense<0.000000e+00> : vector<6x32xf32>
    %211 = tpu.matmul %209, %210, %cst_78 {dimension_numbers = #tpu.dot_dimension_numbers<[1], [0], [0], [1], [0, 0, 1, 1], [], []>} : vector<6x8xf32>, vector<8x32xf32>, vector<6x32xf32> -> vector<6x32xf32>
    %212 = arith.addf %191, %211 : vector<6x32xf32>
    %213 = vector.extract_strided_slice %167 {offsets = [0, 16], sizes = [6, 8], strides = [1, 1]} : vector<6x32xf32> to vector<6x8xf32>
    %214 = vector.extract_strided_slice %168 {offsets = [0, 16], sizes = [6, 8], strides = [1, 1]} : vector<6x32xf32> to vector<6x8xf32>
    %215 = vector.extract_strided_slice %169 {offsets = [0, 16], sizes = [6, 8], strides = [1, 1]} : vector<6x32xf32> to vector<6x8xf32>
    "tpu.trace_start"() <{level = 10 : i32, message = "qd,kd->qk"}> : () -> ()
    %cst_79 = arith.constant dense<0.000000e+00> : vector<6x6xf32>
    %216 = tpu.matmul %213, %214, %cst_79 {dimension_numbers = #tpu.dot_dimension_numbers<[1], [1], [0], [0], [0, 0, 1, 0], [], []>} : vector<6x8xf32>, vector<6x8xf32>, vector<6x6xf32> -> vector<6x6xf32>
    "tpu.trace_stop"() : () -> ()
    %cst_80 = arith.constant 0.353553385 : f32
    %217 = vector.broadcast %cst_80 : f32 to vector<6x6xf32>
    %218 = arith.mulf %216, %217 : vector<6x6xf32>
    %219 = arith.addf %218, %2 : vector<6x6xf32>
    %cst_81 = arith.constant dense<0xFF800000> : vector<6xf32>
    %220 = vector.multi_reduction <maximumf>, %219, %cst_81 [1] : vector<6x6xf32> to vector<6xf32>
    %221 = vector.shape_cast %220 : vector<6xf32> to vector<6x1xf32>
    %222 = vector.broadcast %221 : vector<6x1xf32> to vector<6x6xf32>
    %223 = arith.subf %219, %222 : vector<6x6xf32>
    %224 = math.exp %223 : vector<6x6xf32>
    %cst_82 = arith.constant dense<0.000000e+00> : vector<6xf32>
    %225 = vector.multi_reduction <add>, %224, %cst_82 [1] : vector<6x6xf32> to vector<6xf32>
    %226 = vector.shape_cast %225 : vector<6xf32> to vector<6x1xf32>
    %227 = tpu.reciprocal %226 {approx = true} : vector<6x1xf32> -> vector<6x1xf32>
    %228 = vector.broadcast %227 : vector<6x1xf32> to vector<6x6xf32>
    %229 = arith.mulf %224, %228 : vector<6x6xf32>
    %cst_83 = arith.constant dense<0.000000e+00> : vector<6x8xf32>
    %230 = tpu.matmul %229, %215, %cst_83 {dimension_numbers = #tpu.dot_dimension_numbers<[1], [0], [0], [1], [0, 0, 1, 1], [], []>} : vector<6x6xf32>, vector<6x8xf32>, vector<6x8xf32> -> vector<6x8xf32>
    %231 = vector.extract_strided_slice %162 {offsets = [16, 0], sizes = [8, 32], strides = [1, 1]} : vector<32x32xf32> to vector<8x32xf32>
    %cst_84 = arith.constant dense<0.000000e+00> : vector<6x32xf32>
    %232 = tpu.matmul %230, %231, %cst_84 {dimension_numbers = #tpu.dot_dimension_numbers<[1], [0], [0], [1], [0, 0, 1, 1], [], []>} : vector<6x8xf32>, vector<8x32xf32>, vector<6x32xf32> -> vector<6x32xf32>
    %233 = arith.addf %212, %232 : vector<6x32xf32>
    %234 = vector.extract_strided_slice %167 {offsets = [0, 24], sizes = [6, 8], strides = [1, 1]} : vector<6x32xf32> to vector<6x8xf32>
    %235 = vector.extract_strided_slice %168 {offsets = [0, 24], sizes = [6, 8], strides = [1, 1]} : vector<6x32xf32> to vector<6x8xf32>
    %236 = vector.extract_strided_slice %169 {offsets = [0, 24], sizes = [6, 8], strides = [1, 1]} : vector<6x32xf32> to vector<6x8xf32>
    "tpu.trace_start"() <{level = 10 : i32, message = "qd,kd->qk"}> : () -> ()
    %cst_85 = arith.constant dense<0.000000e+00> : vector<6x6xf32>
    %237 = tpu.matmul %234, %235, %cst_85 {dimension_numbers = #tpu.dot_dimension_numbers<[1], [1], [0], [0], [0, 0, 1, 0], [], []>} : vector<6x8xf32>, vector<6x8xf32>, vector<6x6xf32> -> vector<6x6xf32>
    "tpu.trace_stop"() : () -> ()
    %cst_86 = arith.constant 0.353553385 : f32
    %238 = vector.broadcast %cst_86 : f32 to vector<6x6xf32>
    %239 = arith.mulf %237, %238 : vector<6x6xf32>
    %240 = arith.addf %239, %2 : vector<6x6xf32>
    %cst_87 = arith.constant dense<0xFF800000> : vector<6xf32>
    %241 = vector.multi_reduction <maximumf>, %240, %cst_87 [1] : vector<6x6xf32> to vector<6xf32>
    %242 = vector.shape_cast %241 : vector<6xf32> to vector<6x1xf32>
    %243 = vector.broadcast %242 : vector<6x1xf32> to vector<6x6xf32>
    %244 = arith.subf %240, %243 : vector<6x6xf32>
    %245 = math.exp %244 : vector<6x6xf32>
    %cst_88 = arith.constant dense<0.000000e+00> : vector<6xf32>
    %246 = vector.multi_reduction <add>, %245, %cst_88 [1] : vector<6x6xf32> to vector<6xf32>
    %247 = vector.shape_cast %246 : vector<6xf32> to vector<6x1xf32>
    %248 = tpu.reciprocal %247 {approx = true} : vector<6x1xf32> -> vector<6x1xf32>
    %249 = vector.broadcast %248 : vector<6x1xf32> to vector<6x6xf32>
    %250 = arith.mulf %245, %249 : vector<6x6xf32>
    %cst_89 = arith.constant dense<0.000000e+00> : vector<6x8xf32>
    %251 = tpu.matmul %250, %236, %cst_89 {dimension_numbers = #tpu.dot_dimension_numbers<[1], [0], [0], [1], [0, 0, 1, 1], [], []>} : vector<6x6xf32>, vector<6x8xf32>, vector<6x8xf32> -> vector<6x8xf32>
    %252 = vector.extract_strided_slice %162 {offsets = [24, 0], sizes = [8, 32], strides = [1, 1]} : vector<32x32xf32> to vector<8x32xf32>
    %cst_90 = arith.constant dense<0.000000e+00> : vector<6x32xf32>
    %253 = tpu.matmul %251, %252, %cst_90 {dimension_numbers = #tpu.dot_dimension_numbers<[1], [0], [0], [1], [0, 0, 1, 1], [], []>} : vector<6x8xf32>, vector<8x32xf32>, vector<6x32xf32> -> vector<6x32xf32>
    %254 = arith.addf %233, %253 : vector<6x32xf32>
    %255 = vector.broadcast %163 : vector<1x32xf32> to vector<6x32xf32>
    %256 = arith.addf %254, %255 : vector<6x32xf32>
    %257 = arith.addf %159, %256 : vector<6x32xf32>
    %c10 = arith.constant 10 : index
    %c0_91 = arith.constant 0 : index
    %258 = vector.load %arg5[%c10, %c0_91] : memref<48x128xf32, #tpu.memory_space<vmem>>, vector<1x32xf32>
    %c11 = arith.constant 11 : index
    %c0_92 = arith.constant 0 : index
    %259 = vector.load %arg5[%c11, %c0_92] : memref<48x128xf32, #tpu.memory_space<vmem>>, vector<1x32xf32>
    %cst_93 = arith.constant dense<0.000000e+00> : vector<6xf32>
    %260 = vector.multi_reduction <add>, %257, %cst_93 [1] : vector<6x32xf32> to vector<6xf32>
    %261 = vector.shape_cast %260 : vector<6xf32> to vector<6x1xf32>
    %cst_94 = arith.constant 3.200000e+01 : f32
    %262 = vector.broadcast %cst_94 : f32 to vector<6x1xf32>
    %263 = arith.divf %261, %262 : vector<6x1xf32>
    %264 = vector.broadcast %263 : vector<6x1xf32> to vector<6x32xf32>
    %265 = arith.subf %257, %264 : vector<6x32xf32>
    %266 = arith.mulf %265, %265 : vector<6x32xf32>
    %cst_95 = arith.constant dense<0.000000e+00> : vector<6xf32>
    %267 = vector.multi_reduction <add>, %266, %cst_95 [1] : vector<6x32xf32> to vector<6xf32>
    %268 = vector.shape_cast %267 : vector<6xf32> to vector<6x1xf32>
    %cst_96 = arith.constant 3.200000e+01 : f32
    %269 = vector.broadcast %cst_96 : f32 to vector<6x1xf32>
    %270 = arith.divf %268, %269 : vector<6x1xf32>
    %cst_97 = arith.constant 9.99999974E-6 : f32
    %271 = vector.broadcast %cst_97 : f32 to vector<6x1xf32>
    %272 = arith.addf %270, %271 : vector<6x1xf32>
    %273 = math.rsqrt %272 : vector<6x1xf32>
    %274 = vector.broadcast %273 : vector<6x1xf32> to vector<6x32xf32>
    %275 = arith.mulf %265, %274 : vector<6x32xf32>
    %276 = vector.broadcast %258 : vector<1x32xf32> to vector<6x32xf32>
    %277 = arith.mulf %275, %276 : vector<6x32xf32>
    %278 = vector.broadcast %259 : vector<1x32xf32> to vector<6x32xf32>
    %279 = arith.addf %277, %278 : vector<6x32xf32>
    %c224 = arith.constant 224 : index
    %c0_98 = arith.constant 0 : index
    %280 = vector.load %arg4[%c224, %c0_98] : memref<800x128xf32, #tpu.memory_space<vmem>>, vector<32x64xf32>
    %cst_99 = arith.constant dense<0.000000e+00> : vector<6x64xf32>
    %281 = tpu.matmul %279, %280, %cst_99 {dimension_numbers = #tpu.dot_dimension_numbers<[1], [0], [0], [1], [0, 0, 1, 1], [], []>} : vector<6x32xf32>, vector<32x64xf32>, vector<6x64xf32> -> vector<6x64xf32>
    %c12 = arith.constant 12 : index
    %c0_100 = arith.constant 0 : index
    %282 = vector.load %arg5[%c12, %c0_100] : memref<48x128xf32, #tpu.memory_space<vmem>>, vector<1x64xf32>
    %283 = vector.broadcast %282 : vector<1x64xf32> to vector<6x64xf32>
    %284 = arith.addf %281, %283 : vector<6x64xf32>
    %cst_101 = arith.constant 0.000000e+00 : f32
    %285 = vector.broadcast %cst_101 : f32 to vector<6x64xf32>
    %286 = arith.maximumf %284, %285 : vector<6x64xf32>
    %c256 = arith.constant 256 : index
    %c0_102 = arith.constant 0 : index
    %287 = vector.load %arg4[%c256, %c0_102] : memref<800x128xf32, #tpu.memory_space<vmem>>, vector<64x32xf32>
    %cst_103 = arith.constant dense<0.000000e+00> : vector<6x32xf32>
    %288 = tpu.matmul %286, %287, %cst_103 {dimension_numbers = #tpu.dot_dimension_numbers<[1], [0], [0], [1], [0, 0, 1, 1], [], []>} : vector<6x64xf32>, vector<64x32xf32>, vector<6x32xf32> -> vector<6x32xf32>
    %c13 = arith.constant 13 : index
    %c0_104 = arith.constant 0 : index
    %289 = vector.load %arg5[%c13, %c0_104] : memref<48x128xf32, #tpu.memory_space<vmem>>, vector<1x32xf32>
    %290 = vector.broadcast %289 : vector<1x32xf32> to vector<6x32xf32>
    %291 = arith.addf %288, %290 : vector<6x32xf32>
    %292 = arith.addf %279, %291 : vector<6x32xf32>
    %c14 = arith.constant 14 : index
    %c0_105 = arith.constant 0 : index
    %293 = vector.load %arg5[%c14, %c0_105] : memref<48x128xf32, #tpu.memory_space<vmem>>, vector<1x32xf32>
    %c15 = arith.constant 15 : index
    %c0_106 = arith.constant 0 : index
    %294 = vector.load %arg5[%c15, %c0_106] : memref<48x128xf32, #tpu.memory_space<vmem>>, vector<1x32xf32>
    %cst_107 = arith.constant dense<0.000000e+00> : vector<6xf32>
    %295 = vector.multi_reduction <add>, %292, %cst_107 [1] : vector<6x32xf32> to vector<6xf32>
    %296 = vector.shape_cast %295 : vector<6xf32> to vector<6x1xf32>
    %cst_108 = arith.constant 3.200000e+01 : f32
    %297 = vector.broadcast %cst_108 : f32 to vector<6x1xf32>
    %298 = arith.divf %296, %297 : vector<6x1xf32>
    %299 = vector.broadcast %298 : vector<6x1xf32> to vector<6x32xf32>
    %300 = arith.subf %292, %299 : vector<6x32xf32>
    %301 = arith.mulf %300, %300 : vector<6x32xf32>
    %cst_109 = arith.constant dense<0.000000e+00> : vector<6xf32>
    %302 = vector.multi_reduction <add>, %301, %cst_109 [1] : vector<6x32xf32> to vector<6xf32>
    %303 = vector.shape_cast %302 : vector<6xf32> to vector<6x1xf32>
    %cst_110 = arith.constant 3.200000e+01 : f32
    %304 = vector.broadcast %cst_110 : f32 to vector<6x1xf32>
    %305 = arith.divf %303, %304 : vector<6x1xf32>
    %cst_111 = arith.constant 9.99999974E-6 : f32
    %306 = vector.broadcast %cst_111 : f32 to vector<6x1xf32>
    %307 = arith.addf %305, %306 : vector<6x1xf32>
    %308 = math.rsqrt %307 : vector<6x1xf32>
    %309 = vector.broadcast %308 : vector<6x1xf32> to vector<6x32xf32>
    %310 = arith.mulf %300, %309 : vector<6x32xf32>
    %311 = vector.broadcast %293 : vector<1x32xf32> to vector<6x32xf32>
    %312 = arith.mulf %310, %311 : vector<6x32xf32>
    %313 = vector.broadcast %294 : vector<1x32xf32> to vector<6x32xf32>
    %314 = arith.addf %312, %313 : vector<6x32xf32>
    %c16 = arith.constant 16 : index
    %c0_112 = arith.constant 0 : index
    %315 = vector.load %arg5[%c16, %c0_112] : memref<48x128xf32, #tpu.memory_space<vmem>>, vector<1x32xf32>
    %c17 = arith.constant 17 : index
    %c0_113 = arith.constant 0 : index
    %316 = vector.load %arg5[%c17, %c0_113] : memref<48x128xf32, #tpu.memory_space<vmem>>, vector<1x32xf32>
    %cst_114 = arith.constant dense<0.000000e+00> : vector<6xf32>
    %317 = vector.multi_reduction <add>, %314, %cst_114 [1] : vector<6x32xf32> to vector<6xf32>
    %318 = vector.shape_cast %317 : vector<6xf32> to vector<6x1xf32>
    %cst_115 = arith.constant 3.200000e+01 : f32
    %319 = vector.broadcast %cst_115 : f32 to vector<6x1xf32>
    %320 = arith.divf %318, %319 : vector<6x1xf32>
    %321 = vector.broadcast %320 : vector<6x1xf32> to vector<6x32xf32>
    %322 = arith.subf %314, %321 : vector<6x32xf32>
    %323 = arith.mulf %322, %322 : vector<6x32xf32>
    %cst_116 = arith.constant dense<0.000000e+00> : vector<6xf32>
    %324 = vector.multi_reduction <add>, %323, %cst_116 [1] : vector<6x32xf32> to vector<6xf32>
    %325 = vector.shape_cast %324 : vector<6xf32> to vector<6x1xf32>
    %cst_117 = arith.constant 3.200000e+01 : f32
    %326 = vector.broadcast %cst_117 : f32 to vector<6x1xf32>
    %327 = arith.divf %325, %326 : vector<6x1xf32>
    %cst_118 = arith.constant 9.99999974E-6 : f32
    %328 = vector.broadcast %cst_118 : f32 to vector<6x1xf32>
    %329 = arith.addf %327, %328 : vector<6x1xf32>
    %330 = math.rsqrt %329 : vector<6x1xf32>
    %331 = vector.broadcast %330 : vector<6x1xf32> to vector<6x32xf32>
    %332 = arith.mulf %322, %331 : vector<6x32xf32>
    %333 = vector.broadcast %315 : vector<1x32xf32> to vector<6x32xf32>
    %334 = arith.mulf %332, %333 : vector<6x32xf32>
    %335 = vector.broadcast %316 : vector<1x32xf32> to vector<6x32xf32>
    %336 = arith.addf %334, %335 : vector<6x32xf32>
    %c320 = arith.constant 320 : index
    %c0_119 = arith.constant 0 : index
    %337 = vector.load %arg4[%c320, %c0_119] : memref<800x128xf32, #tpu.memory_space<vmem>>, vector<32x96xf32>
    %c18 = arith.constant 18 : index
    %c0_120 = arith.constant 0 : index
    %338 = vector.load %arg5[%c18, %c0_120] : memref<48x128xf32, #tpu.memory_space<vmem>>, vector<1x96xf32>
    %c352 = arith.constant 352 : index
    %c0_121 = arith.constant 0 : index
    %339 = vector.load %arg4[%c352, %c0_121] : memref<800x128xf32, #tpu.memory_space<vmem>>, vector<32x32xf32>
    %c19 = arith.constant 19 : index
    %c0_122 = arith.constant 0 : index
    %340 = vector.load %arg5[%c19, %c0_122] : memref<48x128xf32, #tpu.memory_space<vmem>>, vector<1x32xf32>
    %cst_123 = arith.constant dense<0.000000e+00> : vector<8x96xf32>
    %341 = tpu.matmul %1, %337, %cst_123 {dimension_numbers = #tpu.dot_dimension_numbers<[1], [0], [0], [1], [0, 0, 1, 1], [], []>} : vector<8x32xf32>, vector<32x96xf32>, vector<8x96xf32> -> vector<8x96xf32>
    %342 = vector.broadcast %338 : vector<1x96xf32> to vector<8x96xf32>
    %343 = arith.addf %341, %342 : vector<8x96xf32>
    %344 = vector.extract_strided_slice %343 {offsets = [0, 0], sizes = [8, 32], strides = [1, 1]} : vector<8x96xf32> to vector<8x32xf32>
    %345 = vector.extract_strided_slice %343 {offsets = [0, 32], sizes = [8, 32], strides = [1, 1]} : vector<8x96xf32> to vector<8x32xf32>
    %346 = vector.extract_strided_slice %343 {offsets = [0, 64], sizes = [8, 32], strides = [1, 1]} : vector<8x96xf32> to vector<8x32xf32>
    %cst_124 = arith.constant 0.000000e+00 : f32
    %347 = vector.broadcast %cst_124 : f32 to vector<8x32xf32>
    %348 = vector.extract_strided_slice %344 {offsets = [0, 0], sizes = [8, 8], strides = [1, 1]} : vector<8x32xf32> to vector<8x8xf32>
    %349 = vector.extract_strided_slice %345 {offsets = [0, 0], sizes = [8, 8], strides = [1, 1]} : vector<8x32xf32> to vector<8x8xf32>
    %350 = vector.extract_strided_slice %346 {offsets = [0, 0], sizes = [8, 8], strides = [1, 1]} : vector<8x32xf32> to vector<8x8xf32>
    "tpu.trace_start"() <{level = 10 : i32, message = "qd,kd->qk"}> : () -> ()
    %cst_125 = arith.constant dense<0.000000e+00> : vector<8x8xf32>
    %351 = tpu.matmul %348, %349, %cst_125 {dimension_numbers = #tpu.dot_dimension_numbers<[1], [1], [0], [0], [0, 0, 1, 0], [], []>} : vector<8x8xf32>, vector<8x8xf32>, vector<8x8xf32> -> vector<8x8xf32>
    "tpu.trace_stop"() : () -> ()
    %cst_126 = arith.constant 0.353553385 : f32
    %352 = vector.broadcast %cst_126 : f32 to vector<8x8xf32>
    %353 = arith.mulf %351, %352 : vector<8x8xf32>
    %354 = arith.addf %353, %3 : vector<8x8xf32>
    %cst_127 = arith.constant dense<0xFF800000> : vector<8xf32>
    %355 = vector.multi_reduction <maximumf>, %354, %cst_127 [1] : vector<8x8xf32> to vector<8xf32>
    %356 = vector.shape_cast %355 : vector<8xf32> to vector<8x1xf32>
    %357 = vector.broadcast %356 : vector<8x1xf32> to vector<8x8xf32>
    %358 = arith.subf %354, %357 : vector<8x8xf32>
    %359 = math.exp %358 : vector<8x8xf32>
    %cst_128 = arith.constant dense<0.000000e+00> : vector<8xf32>
    %360 = vector.multi_reduction <add>, %359, %cst_128 [1] : vector<8x8xf32> to vector<8xf32>
    %361 = vector.shape_cast %360 : vector<8xf32> to vector<8x1xf32>
    %362 = tpu.reciprocal %361 {approx = true} : vector<8x1xf32> -> vector<8x1xf32>
    %363 = vector.broadcast %362 : vector<8x1xf32> to vector<8x8xf32>
    %364 = arith.mulf %359, %363 : vector<8x8xf32>
    %cst_129 = arith.constant dense<0.000000e+00> : vector<8x8xf32>
    %365 = tpu.matmul %364, %350, %cst_129 {dimension_numbers = #tpu.dot_dimension_numbers<[1], [0], [0], [1], [0, 0, 1, 1], [], []>} : vector<8x8xf32>, vector<8x8xf32>, vector<8x8xf32> -> vector<8x8xf32>
    %366 = vector.extract_strided_slice %339 {offsets = [0, 0], sizes = [8, 32], strides = [1, 1]} : vector<32x32xf32> to vector<8x32xf32>
    %cst_130 = arith.constant dense<0.000000e+00> : vector<8x32xf32>
    %367 = tpu.matmul %365, %366, %cst_130 {dimension_numbers = #tpu.dot_dimension_numbers<[1], [0], [0], [1], [0, 0, 1, 1], [], []>} : vector<8x8xf32>, vector<8x32xf32>, vector<8x32xf32> -> vector<8x32xf32>
    %368 = arith.addf %347, %367 : vector<8x32xf32>
    %369 = vector.extract_strided_slice %344 {offsets = [0, 8], sizes = [8, 8], strides = [1, 1]} : vector<8x32xf32> to vector<8x8xf32>
    %370 = vector.extract_strided_slice %345 {offsets = [0, 8], sizes = [8, 8], strides = [1, 1]} : vector<8x32xf32> to vector<8x8xf32>
    %371 = vector.extract_strided_slice %346 {offsets = [0, 8], sizes = [8, 8], strides = [1, 1]} : vector<8x32xf32> to vector<8x8xf32>
    "tpu.trace_start"() <{level = 10 : i32, message = "qd,kd->qk"}> : () -> ()
    %cst_131 = arith.constant dense<0.000000e+00> : vector<8x8xf32>
    %372 = tpu.matmul %369, %370, %cst_131 {dimension_numbers = #tpu.dot_dimension_numbers<[1], [1], [0], [0], [0, 0, 1, 0], [], []>} : vector<8x8xf32>, vector<8x8xf32>, vector<8x8xf32> -> vector<8x8xf32>
    "tpu.trace_stop"() : () -> ()
    %cst_132 = arith.constant 0.353553385 : f32
    %373 = vector.broadcast %cst_132 : f32 to vector<8x8xf32>
    %374 = arith.mulf %372, %373 : vector<8x8xf32>
    %375 = arith.addf %374, %3 : vector<8x8xf32>
    %cst_133 = arith.constant dense<0xFF800000> : vector<8xf32>
    %376 = vector.multi_reduction <maximumf>, %375, %cst_133 [1] : vector<8x8xf32> to vector<8xf32>
    %377 = vector.shape_cast %376 : vector<8xf32> to vector<8x1xf32>
    %378 = vector.broadcast %377 : vector<8x1xf32> to vector<8x8xf32>
    %379 = arith.subf %375, %378 : vector<8x8xf32>
    %380 = math.exp %379 : vector<8x8xf32>
    %cst_134 = arith.constant dense<0.000000e+00> : vector<8xf32>
    %381 = vector.multi_reduction <add>, %380, %cst_134 [1] : vector<8x8xf32> to vector<8xf32>
    %382 = vector.shape_cast %381 : vector<8xf32> to vector<8x1xf32>
    %383 = tpu.reciprocal %382 {approx = true} : vector<8x1xf32> -> vector<8x1xf32>
    %384 = vector.broadcast %383 : vector<8x1xf32> to vector<8x8xf32>
    %385 = arith.mulf %380, %384 : vector<8x8xf32>
    %cst_135 = arith.constant dense<0.000000e+00> : vector<8x8xf32>
    %386 = tpu.matmul %385, %371, %cst_135 {dimension_numbers = #tpu.dot_dimension_numbers<[1], [0], [0], [1], [0, 0, 1, 1], [], []>} : vector<8x8xf32>, vector<8x8xf32>, vector<8x8xf32> -> vector<8x8xf32>
    %387 = vector.extract_strided_slice %339 {offsets = [8, 0], sizes = [8, 32], strides = [1, 1]} : vector<32x32xf32> to vector<8x32xf32>
    %cst_136 = arith.constant dense<0.000000e+00> : vector<8x32xf32>
    %388 = tpu.matmul %386, %387, %cst_136 {dimension_numbers = #tpu.dot_dimension_numbers<[1], [0], [0], [1], [0, 0, 1, 1], [], []>} : vector<8x8xf32>, vector<8x32xf32>, vector<8x32xf32> -> vector<8x32xf32>
    %389 = arith.addf %368, %388 : vector<8x32xf32>
    %390 = vector.extract_strided_slice %344 {offsets = [0, 16], sizes = [8, 8], strides = [1, 1]} : vector<8x32xf32> to vector<8x8xf32>
    %391 = vector.extract_strided_slice %345 {offsets = [0, 16], sizes = [8, 8], strides = [1, 1]} : vector<8x32xf32> to vector<8x8xf32>
    %392 = vector.extract_strided_slice %346 {offsets = [0, 16], sizes = [8, 8], strides = [1, 1]} : vector<8x32xf32> to vector<8x8xf32>
    "tpu.trace_start"() <{level = 10 : i32, message = "qd,kd->qk"}> : () -> ()
    %cst_137 = arith.constant dense<0.000000e+00> : vector<8x8xf32>
    %393 = tpu.matmul %390, %391, %cst_137 {dimension_numbers = #tpu.dot_dimension_numbers<[1], [1], [0], [0], [0, 0, 1, 0], [], []>} : vector<8x8xf32>, vector<8x8xf32>, vector<8x8xf32> -> vector<8x8xf32>
    "tpu.trace_stop"() : () -> ()
    %cst_138 = arith.constant 0.353553385 : f32
    %394 = vector.broadcast %cst_138 : f32 to vector<8x8xf32>
    %395 = arith.mulf %393, %394 : vector<8x8xf32>
    %396 = arith.addf %395, %3 : vector<8x8xf32>
    %cst_139 = arith.constant dense<0xFF800000> : vector<8xf32>
    %397 = vector.multi_reduction <maximumf>, %396, %cst_139 [1] : vector<8x8xf32> to vector<8xf32>
    %398 = vector.shape_cast %397 : vector<8xf32> to vector<8x1xf32>
    %399 = vector.broadcast %398 : vector<8x1xf32> to vector<8x8xf32>
    %400 = arith.subf %396, %399 : vector<8x8xf32>
    %401 = math.exp %400 : vector<8x8xf32>
    %cst_140 = arith.constant dense<0.000000e+00> : vector<8xf32>
    %402 = vector.multi_reduction <add>, %401, %cst_140 [1] : vector<8x8xf32> to vector<8xf32>
    %403 = vector.shape_cast %402 : vector<8xf32> to vector<8x1xf32>
    %404 = tpu.reciprocal %403 {approx = true} : vector<8x1xf32> -> vector<8x1xf32>
    %405 = vector.broadcast %404 : vector<8x1xf32> to vector<8x8xf32>
    %406 = arith.mulf %401, %405 : vector<8x8xf32>
    %cst_141 = arith.constant dense<0.000000e+00> : vector<8x8xf32>
    %407 = tpu.matmul %406, %392, %cst_141 {dimension_numbers = #tpu.dot_dimension_numbers<[1], [0], [0], [1], [0, 0, 1, 1], [], []>} : vector<8x8xf32>, vector<8x8xf32>, vector<8x8xf32> -> vector<8x8xf32>
    %408 = vector.extract_strided_slice %339 {offsets = [16, 0], sizes = [8, 32], strides = [1, 1]} : vector<32x32xf32> to vector<8x32xf32>
    %cst_142 = arith.constant dense<0.000000e+00> : vector<8x32xf32>
    %409 = tpu.matmul %407, %408, %cst_142 {dimension_numbers = #tpu.dot_dimension_numbers<[1], [0], [0], [1], [0, 0, 1, 1], [], []>} : vector<8x8xf32>, vector<8x32xf32>, vector<8x32xf32> -> vector<8x32xf32>
    %410 = arith.addf %389, %409 : vector<8x32xf32>
    %411 = vector.extract_strided_slice %344 {offsets = [0, 24], sizes = [8, 8], strides = [1, 1]} : vector<8x32xf32> to vector<8x8xf32>
    %412 = vector.extract_strided_slice %345 {offsets = [0, 24], sizes = [8, 8], strides = [1, 1]} : vector<8x32xf32> to vector<8x8xf32>
    %413 = vector.extract_strided_slice %346 {offsets = [0, 24], sizes = [8, 8], strides = [1, 1]} : vector<8x32xf32> to vector<8x8xf32>
    "tpu.trace_start"() <{level = 10 : i32, message = "qd,kd->qk"}> : () -> ()
    %cst_143 = arith.constant dense<0.000000e+00> : vector<8x8xf32>
    %414 = tpu.matmul %411, %412, %cst_143 {dimension_numbers = #tpu.dot_dimension_numbers<[1], [1], [0], [0], [0, 0, 1, 0], [], []>} : vector<8x8xf32>, vector<8x8xf32>, vector<8x8xf32> -> vector<8x8xf32>
    "tpu.trace_stop"() : () -> ()
    %cst_144 = arith.constant 0.353553385 : f32
    %415 = vector.broadcast %cst_144 : f32 to vector<8x8xf32>
    %416 = arith.mulf %414, %415 : vector<8x8xf32>
    %417 = arith.addf %416, %3 : vector<8x8xf32>
    %cst_145 = arith.constant dense<0xFF800000> : vector<8xf32>
    %418 = vector.multi_reduction <maximumf>, %417, %cst_145 [1] : vector<8x8xf32> to vector<8xf32>
    %419 = vector.shape_cast %418 : vector<8xf32> to vector<8x1xf32>
    %420 = vector.broadcast %419 : vector<8x1xf32> to vector<8x8xf32>
    %421 = arith.subf %417, %420 : vector<8x8xf32>
    %422 = math.exp %421 : vector<8x8xf32>
    %cst_146 = arith.constant dense<0.000000e+00> : vector<8xf32>
    %423 = vector.multi_reduction <add>, %422, %cst_146 [1] : vector<8x8xf32> to vector<8xf32>
    %424 = vector.shape_cast %423 : vector<8xf32> to vector<8x1xf32>
    %425 = tpu.reciprocal %424 {approx = true} : vector<8x1xf32> -> vector<8x1xf32>
    %426 = vector.broadcast %425 : vector<8x1xf32> to vector<8x8xf32>
    %427 = arith.mulf %422, %426 : vector<8x8xf32>
    %cst_147 = arith.constant dense<0.000000e+00> : vector<8x8xf32>
    %428 = tpu.matmul %427, %413, %cst_147 {dimension_numbers = #tpu.dot_dimension_numbers<[1], [0], [0], [1], [0, 0, 1, 1], [], []>} : vector<8x8xf32>, vector<8x8xf32>, vector<8x8xf32> -> vector<8x8xf32>
    %429 = vector.extract_strided_slice %339 {offsets = [24, 0], sizes = [8, 32], strides = [1, 1]} : vector<32x32xf32> to vector<8x32xf32>
    %cst_148 = arith.constant dense<0.000000e+00> : vector<8x32xf32>
    %430 = tpu.matmul %428, %429, %cst_148 {dimension_numbers = #tpu.dot_dimension_numbers<[1], [0], [0], [1], [0, 0, 1, 1], [], []>} : vector<8x8xf32>, vector<8x32xf32>, vector<8x32xf32> -> vector<8x32xf32>
    %431 = arith.addf %410, %430 : vector<8x32xf32>
    %432 = vector.broadcast %340 : vector<1x32xf32> to vector<8x32xf32>
    %433 = arith.addf %431, %432 : vector<8x32xf32>
    %434 = arith.addf %1, %433 : vector<8x32xf32>
    %c20 = arith.constant 20 : index
    %c0_149 = arith.constant 0 : index
    %435 = vector.load %arg5[%c20, %c0_149] : memref<48x128xf32, #tpu.memory_space<vmem>>, vector<1x32xf32>
    %c21 = arith.constant 21 : index
    %c0_150 = arith.constant 0 : index
    %436 = vector.load %arg5[%c21, %c0_150] : memref<48x128xf32, #tpu.memory_space<vmem>>, vector<1x32xf32>
    %cst_151 = arith.constant dense<0.000000e+00> : vector<8xf32>
    %437 = vector.multi_reduction <add>, %434, %cst_151 [1] : vector<8x32xf32> to vector<8xf32>
    %438 = vector.shape_cast %437 : vector<8xf32> to vector<8x1xf32>
    %cst_152 = arith.constant 3.200000e+01 : f32
    %439 = vector.broadcast %cst_152 : f32 to vector<8x1xf32>
    %440 = arith.divf %438, %439 : vector<8x1xf32>
    %441 = vector.broadcast %440 : vector<8x1xf32> to vector<8x32xf32>
    %442 = arith.subf %434, %441 : vector<8x32xf32>
    %443 = arith.mulf %442, %442 : vector<8x32xf32>
    %cst_153 = arith.constant dense<0.000000e+00> : vector<8xf32>
    %444 = vector.multi_reduction <add>, %443, %cst_153 [1] : vector<8x32xf32> to vector<8xf32>
    %445 = vector.shape_cast %444 : vector<8xf32> to vector<8x1xf32>
    %cst_154 = arith.constant 3.200000e+01 : f32
    %446 = vector.broadcast %cst_154 : f32 to vector<8x1xf32>
    %447 = arith.divf %445, %446 : vector<8x1xf32>
    %cst_155 = arith.constant 9.99999974E-6 : f32
    %448 = vector.broadcast %cst_155 : f32 to vector<8x1xf32>
    %449 = arith.addf %447, %448 : vector<8x1xf32>
    %450 = math.rsqrt %449 : vector<8x1xf32>
    %451 = vector.broadcast %450 : vector<8x1xf32> to vector<8x32xf32>
    %452 = arith.mulf %442, %451 : vector<8x32xf32>
    %453 = vector.broadcast %435 : vector<1x32xf32> to vector<8x32xf32>
    %454 = arith.mulf %452, %453 : vector<8x32xf32>
    %455 = vector.broadcast %436 : vector<1x32xf32> to vector<8x32xf32>
    %456 = arith.addf %454, %455 : vector<8x32xf32>
    %c384 = arith.constant 384 : index
    %c0_156 = arith.constant 0 : index
    %457 = vector.load %arg4[%c384, %c0_156] : memref<800x128xf32, #tpu.memory_space<vmem>>, vector<32x96xf32>
    %c22 = arith.constant 22 : index
    %c0_157 = arith.constant 0 : index
    %458 = vector.load %arg5[%c22, %c0_157] : memref<48x128xf32, #tpu.memory_space<vmem>>, vector<1x96xf32>
    %c416 = arith.constant 416 : index
    %c0_158 = arith.constant 0 : index
    %459 = vector.load %arg4[%c416, %c0_158] : memref<800x128xf32, #tpu.memory_space<vmem>>, vector<32x32xf32>
    %c23 = arith.constant 23 : index
    %c0_159 = arith.constant 0 : index
    %460 = vector.load %arg5[%c23, %c0_159] : memref<48x128xf32, #tpu.memory_space<vmem>>, vector<1x32xf32>
    %461 = vector.extract_strided_slice %457 {offsets = [0, 0], sizes = [32, 32], strides = [1, 1]} : vector<32x96xf32> to vector<32x32xf32>
    %cst_160 = arith.constant dense<0.000000e+00> : vector<8x32xf32>
    %462 = tpu.matmul %456, %461, %cst_160 {dimension_numbers = #tpu.dot_dimension_numbers<[1], [0], [0], [1], [0, 0, 1, 1], [], []>} : vector<8x32xf32>, vector<32x32xf32>, vector<8x32xf32> -> vector<8x32xf32>
    %463 = vector.extract_strided_slice %458 {offsets = [0, 0], sizes = [1, 32], strides = [1, 1]} : vector<1x96xf32> to vector<1x32xf32>
    %464 = vector.broadcast %463 : vector<1x32xf32> to vector<8x32xf32>
    %465 = arith.addf %462, %464 : vector<8x32xf32>
    %466 = vector.extract_strided_slice %457 {offsets = [0, 32], sizes = [32, 64], strides = [1, 1]} : vector<32x96xf32> to vector<32x64xf32>
    %cst_161 = arith.constant dense<0.000000e+00> : vector<6x64xf32>
    %467 = tpu.matmul %336, %466, %cst_161 {dimension_numbers = #tpu.dot_dimension_numbers<[1], [0], [0], [1], [0, 0, 1, 1], [], []>} : vector<6x32xf32>, vector<32x64xf32>, vector<6x64xf32> -> vector<6x64xf32>
    %468 = vector.extract_strided_slice %458 {offsets = [0, 32], sizes = [1, 64], strides = [1, 1]} : vector<1x96xf32> to vector<1x64xf32>
    %469 = vector.broadcast %468 : vector<1x64xf32> to vector<6x64xf32>
    %470 = arith.addf %467, %469 : vector<6x64xf32>
    %471 = vector.extract_strided_slice %470 {offsets = [0, 0], sizes = [6, 32], strides = [1, 1]} : vector<6x64xf32> to vector<6x32xf32>
    %472 = vector.extract_strided_slice %470 {offsets = [0, 32], sizes = [6, 32], strides = [1, 1]} : vector<6x64xf32> to vector<6x32xf32>
    %cst_162 = arith.constant 0.000000e+00 : f32
    %473 = vector.broadcast %cst_162 : f32 to vector<8x32xf32>
    %474 = vector.extract_strided_slice %465 {offsets = [0, 0], sizes = [8, 8], strides = [1, 1]} : vector<8x32xf32> to vector<8x8xf32>
    %475 = vector.extract_strided_slice %471 {offsets = [0, 0], sizes = [6, 8], strides = [1, 1]} : vector<6x32xf32> to vector<6x8xf32>
    %476 = vector.extract_strided_slice %472 {offsets = [0, 0], sizes = [6, 8], strides = [1, 1]} : vector<6x32xf32> to vector<6x8xf32>
    "tpu.trace_start"() <{level = 10 : i32, message = "qd,kd->qk"}> : () -> ()
    %cst_163 = arith.constant dense<0.000000e+00> : vector<8x6xf32>
    %477 = tpu.matmul %474, %475, %cst_163 {dimension_numbers = #tpu.dot_dimension_numbers<[1], [1], [0], [0], [0, 0, 1, 0], [], []>} : vector<8x8xf32>, vector<6x8xf32>, vector<8x6xf32> -> vector<8x6xf32>
    "tpu.trace_stop"() : () -> ()
    %cst_164 = arith.constant 0.353553385 : f32
    %478 = vector.broadcast %cst_164 : f32 to vector<8x6xf32>
    %479 = arith.mulf %477, %478 : vector<8x6xf32>
    %480 = arith.addf %479, %4 : vector<8x6xf32>
    %cst_165 = arith.constant dense<0xFF800000> : vector<8xf32>
    %481 = vector.multi_reduction <maximumf>, %480, %cst_165 [1] : vector<8x6xf32> to vector<8xf32>
    %482 = vector.shape_cast %481 : vector<8xf32> to vector<8x1xf32>
    %483 = vector.broadcast %482 : vector<8x1xf32> to vector<8x6xf32>
    %484 = arith.subf %480, %483 : vector<8x6xf32>
    %485 = math.exp %484 : vector<8x6xf32>
    %cst_166 = arith.constant dense<0.000000e+00> : vector<8xf32>
    %486 = vector.multi_reduction <add>, %485, %cst_166 [1] : vector<8x6xf32> to vector<8xf32>
    %487 = vector.shape_cast %486 : vector<8xf32> to vector<8x1xf32>
    %488 = tpu.reciprocal %487 {approx = true} : vector<8x1xf32> -> vector<8x1xf32>
    %489 = vector.broadcast %488 : vector<8x1xf32> to vector<8x6xf32>
    %490 = arith.mulf %485, %489 : vector<8x6xf32>
    %cst_167 = arith.constant dense<0.000000e+00> : vector<8x8xf32>
    %491 = tpu.matmul %490, %476, %cst_167 {dimension_numbers = #tpu.dot_dimension_numbers<[1], [0], [0], [1], [0, 0, 1, 1], [], []>} : vector<8x6xf32>, vector<6x8xf32>, vector<8x8xf32> -> vector<8x8xf32>
    %492 = vector.extract_strided_slice %459 {offsets = [0, 0], sizes = [8, 32], strides = [1, 1]} : vector<32x32xf32> to vector<8x32xf32>
    %cst_168 = arith.constant dense<0.000000e+00> : vector<8x32xf32>
    %493 = tpu.matmul %491, %492, %cst_168 {dimension_numbers = #tpu.dot_dimension_numbers<[1], [0], [0], [1], [0, 0, 1, 1], [], []>} : vector<8x8xf32>, vector<8x32xf32>, vector<8x32xf32> -> vector<8x32xf32>
    %494 = arith.addf %473, %493 : vector<8x32xf32>
    %495 = vector.extract_strided_slice %465 {offsets = [0, 8], sizes = [8, 8], strides = [1, 1]} : vector<8x32xf32> to vector<8x8xf32>
    %496 = vector.extract_strided_slice %471 {offsets = [0, 8], sizes = [6, 8], strides = [1, 1]} : vector<6x32xf32> to vector<6x8xf32>
    %497 = vector.extract_strided_slice %472 {offsets = [0, 8], sizes = [6, 8], strides = [1, 1]} : vector<6x32xf32> to vector<6x8xf32>
    "tpu.trace_start"() <{level = 10 : i32, message = "qd,kd->qk"}> : () -> ()
    %cst_169 = arith.constant dense<0.000000e+00> : vector<8x6xf32>
    %498 = tpu.matmul %495, %496, %cst_169 {dimension_numbers = #tpu.dot_dimension_numbers<[1], [1], [0], [0], [0, 0, 1, 0], [], []>} : vector<8x8xf32>, vector<6x8xf32>, vector<8x6xf32> -> vector<8x6xf32>
    "tpu.trace_stop"() : () -> ()
    %cst_170 = arith.constant 0.353553385 : f32
    %499 = vector.broadcast %cst_170 : f32 to vector<8x6xf32>
    %500 = arith.mulf %498, %499 : vector<8x6xf32>
    %501 = arith.addf %500, %4 : vector<8x6xf32>
    %cst_171 = arith.constant dense<0xFF800000> : vector<8xf32>
    %502 = vector.multi_reduction <maximumf>, %501, %cst_171 [1] : vector<8x6xf32> to vector<8xf32>
    %503 = vector.shape_cast %502 : vector<8xf32> to vector<8x1xf32>
    %504 = vector.broadcast %503 : vector<8x1xf32> to vector<8x6xf32>
    %505 = arith.subf %501, %504 : vector<8x6xf32>
    %506 = math.exp %505 : vector<8x6xf32>
    %cst_172 = arith.constant dense<0.000000e+00> : vector<8xf32>
    %507 = vector.multi_reduction <add>, %506, %cst_172 [1] : vector<8x6xf32> to vector<8xf32>
    %508 = vector.shape_cast %507 : vector<8xf32> to vector<8x1xf32>
    %509 = tpu.reciprocal %508 {approx = true} : vector<8x1xf32> -> vector<8x1xf32>
    %510 = vector.broadcast %509 : vector<8x1xf32> to vector<8x6xf32>
    %511 = arith.mulf %506, %510 : vector<8x6xf32>
    %cst_173 = arith.constant dense<0.000000e+00> : vector<8x8xf32>
    %512 = tpu.matmul %511, %497, %cst_173 {dimension_numbers = #tpu.dot_dimension_numbers<[1], [0], [0], [1], [0, 0, 1, 1], [], []>} : vector<8x6xf32>, vector<6x8xf32>, vector<8x8xf32> -> vector<8x8xf32>
    %513 = vector.extract_strided_slice %459 {offsets = [8, 0], sizes = [8, 32], strides = [1, 1]} : vector<32x32xf32> to vector<8x32xf32>
    %cst_174 = arith.constant dense<0.000000e+00> : vector<8x32xf32>
    %514 = tpu.matmul %512, %513, %cst_174 {dimension_numbers = #tpu.dot_dimension_numbers<[1], [0], [0], [1], [0, 0, 1, 1], [], []>} : vector<8x8xf32>, vector<8x32xf32>, vector<8x32xf32> -> vector<8x32xf32>
    %515 = arith.addf %494, %514 : vector<8x32xf32>
    %516 = vector.extract_strided_slice %465 {offsets = [0, 16], sizes = [8, 8], strides = [1, 1]} : vector<8x32xf32> to vector<8x8xf32>
    %517 = vector.extract_strided_slice %471 {offsets = [0, 16], sizes = [6, 8], strides = [1, 1]} : vector<6x32xf32> to vector<6x8xf32>
    %518 = vector.extract_strided_slice %472 {offsets = [0, 16], sizes = [6, 8], strides = [1, 1]} : vector<6x32xf32> to vector<6x8xf32>
    "tpu.trace_start"() <{level = 10 : i32, message = "qd,kd->qk"}> : () -> ()
    %cst_175 = arith.constant dense<0.000000e+00> : vector<8x6xf32>
    %519 = tpu.matmul %516, %517, %cst_175 {dimension_numbers = #tpu.dot_dimension_numbers<[1], [1], [0], [0], [0, 0, 1, 0], [], []>} : vector<8x8xf32>, vector<6x8xf32>, vector<8x6xf32> -> vector<8x6xf32>
    "tpu.trace_stop"() : () -> ()
    %cst_176 = arith.constant 0.353553385 : f32
    %520 = vector.broadcast %cst_176 : f32 to vector<8x6xf32>
    %521 = arith.mulf %519, %520 : vector<8x6xf32>
    %522 = arith.addf %521, %4 : vector<8x6xf32>
    %cst_177 = arith.constant dense<0xFF800000> : vector<8xf32>
    %523 = vector.multi_reduction <maximumf>, %522, %cst_177 [1] : vector<8x6xf32> to vector<8xf32>
    %524 = vector.shape_cast %523 : vector<8xf32> to vector<8x1xf32>
    %525 = vector.broadcast %524 : vector<8x1xf32> to vector<8x6xf32>
    %526 = arith.subf %522, %525 : vector<8x6xf32>
    %527 = math.exp %526 : vector<8x6xf32>
    %cst_178 = arith.constant dense<0.000000e+00> : vector<8xf32>
    %528 = vector.multi_reduction <add>, %527, %cst_178 [1] : vector<8x6xf32> to vector<8xf32>
    %529 = vector.shape_cast %528 : vector<8xf32> to vector<8x1xf32>
    %530 = tpu.reciprocal %529 {approx = true} : vector<8x1xf32> -> vector<8x1xf32>
    %531 = vector.broadcast %530 : vector<8x1xf32> to vector<8x6xf32>
    %532 = arith.mulf %527, %531 : vector<8x6xf32>
    %cst_179 = arith.constant dense<0.000000e+00> : vector<8x8xf32>
    %533 = tpu.matmul %532, %518, %cst_179 {dimension_numbers = #tpu.dot_dimension_numbers<[1], [0], [0], [1], [0, 0, 1, 1], [], []>} : vector<8x6xf32>, vector<6x8xf32>, vector<8x8xf32> -> vector<8x8xf32>
    %534 = vector.extract_strided_slice %459 {offsets = [16, 0], sizes = [8, 32], strides = [1, 1]} : vector<32x32xf32> to vector<8x32xf32>
    %cst_180 = arith.constant dense<0.000000e+00> : vector<8x32xf32>
    %535 = tpu.matmul %533, %534, %cst_180 {dimension_numbers = #tpu.dot_dimension_numbers<[1], [0], [0], [1], [0, 0, 1, 1], [], []>} : vector<8x8xf32>, vector<8x32xf32>, vector<8x32xf32> -> vector<8x32xf32>
    %536 = arith.addf %515, %535 : vector<8x32xf32>
    %537 = vector.extract_strided_slice %465 {offsets = [0, 24], sizes = [8, 8], strides = [1, 1]} : vector<8x32xf32> to vector<8x8xf32>
    %538 = vector.extract_strided_slice %471 {offsets = [0, 24], sizes = [6, 8], strides = [1, 1]} : vector<6x32xf32> to vector<6x8xf32>
    %539 = vector.extract_strided_slice %472 {offsets = [0, 24], sizes = [6, 8], strides = [1, 1]} : vector<6x32xf32> to vector<6x8xf32>
    "tpu.trace_start"() <{level = 10 : i32, message = "qd,kd->qk"}> : () -> ()
    %cst_181 = arith.constant dense<0.000000e+00> : vector<8x6xf32>
    %540 = tpu.matmul %537, %538, %cst_181 {dimension_numbers = #tpu.dot_dimension_numbers<[1], [1], [0], [0], [0, 0, 1, 0], [], []>} : vector<8x8xf32>, vector<6x8xf32>, vector<8x6xf32> -> vector<8x6xf32>
    "tpu.trace_stop"() : () -> ()
    %cst_182 = arith.constant 0.353553385 : f32
    %541 = vector.broadcast %cst_182 : f32 to vector<8x6xf32>
    %542 = arith.mulf %540, %541 : vector<8x6xf32>
    %543 = arith.addf %542, %4 : vector<8x6xf32>
    %cst_183 = arith.constant dense<0xFF800000> : vector<8xf32>
    %544 = vector.multi_reduction <maximumf>, %543, %cst_183 [1] : vector<8x6xf32> to vector<8xf32>
    %545 = vector.shape_cast %544 : vector<8xf32> to vector<8x1xf32>
    %546 = vector.broadcast %545 : vector<8x1xf32> to vector<8x6xf32>
    %547 = arith.subf %543, %546 : vector<8x6xf32>
    %548 = math.exp %547 : vector<8x6xf32>
    %cst_184 = arith.constant dense<0.000000e+00> : vector<8xf32>
    %549 = vector.multi_reduction <add>, %548, %cst_184 [1] : vector<8x6xf32> to vector<8xf32>
    %550 = vector.shape_cast %549 : vector<8xf32> to vector<8x1xf32>
    %551 = tpu.reciprocal %550 {approx = true} : vector<8x1xf32> -> vector<8x1xf32>
    %552 = vector.broadcast %551 : vector<8x1xf32> to vector<8x6xf32>
    %553 = arith.mulf %548, %552 : vector<8x6xf32>
    %cst_185 = arith.constant dense<0.000000e+00> : vector<8x8xf32>
    %554 = tpu.matmul %553, %539, %cst_185 {dimension_numbers = #tpu.dot_dimension_numbers<[1], [0], [0], [1], [0, 0, 1, 1], [], []>} : vector<8x6xf32>, vector<6x8xf32>, vector<8x8xf32> -> vector<8x8xf32>
    %555 = vector.extract_strided_slice %459 {offsets = [24, 0], sizes = [8, 32], strides = [1, 1]} : vector<32x32xf32> to vector<8x32xf32>
    %cst_186 = arith.constant dense<0.000000e+00> : vector<8x32xf32>
    %556 = tpu.matmul %554, %555, %cst_186 {dimension_numbers = #tpu.dot_dimension_numbers<[1], [0], [0], [1], [0, 0, 1, 1], [], []>} : vector<8x8xf32>, vector<8x32xf32>, vector<8x32xf32> -> vector<8x32xf32>
    %557 = arith.addf %536, %556 : vector<8x32xf32>
    %558 = vector.broadcast %460 : vector<1x32xf32> to vector<8x32xf32>
    %559 = arith.addf %557, %558 : vector<8x32xf32>
    %560 = arith.addf %456, %559 : vector<8x32xf32>
    %c24 = arith.constant 24 : index
    %c0_187 = arith.constant 0 : index
    %561 = vector.load %arg5[%c24, %c0_187] : memref<48x128xf32, #tpu.memory_space<vmem>>, vector<1x32xf32>
    %c25 = arith.constant 25 : index
    %c0_188 = arith.constant 0 : index
    %562 = vector.load %arg5[%c25, %c0_188] : memref<48x128xf32, #tpu.memory_space<vmem>>, vector<1x32xf32>
    %cst_189 = arith.constant dense<0.000000e+00> : vector<8xf32>
    %563 = vector.multi_reduction <add>, %560, %cst_189 [1] : vector<8x32xf32> to vector<8xf32>
    %564 = vector.shape_cast %563 : vector<8xf32> to vector<8x1xf32>
    %cst_190 = arith.constant 3.200000e+01 : f32
    %565 = vector.broadcast %cst_190 : f32 to vector<8x1xf32>
    %566 = arith.divf %564, %565 : vector<8x1xf32>
    %567 = vector.broadcast %566 : vector<8x1xf32> to vector<8x32xf32>
    %568 = arith.subf %560, %567 : vector<8x32xf32>
    %569 = arith.mulf %568, %568 : vector<8x32xf32>
    %cst_191 = arith.constant dense<0.000000e+00> : vector<8xf32>
    %570 = vector.multi_reduction <add>, %569, %cst_191 [1] : vector<8x32xf32> to vector<8xf32>
    %571 = vector.shape_cast %570 : vector<8xf32> to vector<8x1xf32>
    %cst_192 = arith.constant 3.200000e+01 : f32
    %572 = vector.broadcast %cst_192 : f32 to vector<8x1xf32>
    %573 = arith.divf %571, %572 : vector<8x1xf32>
    %cst_193 = arith.constant 9.99999974E-6 : f32
    %574 = vector.broadcast %cst_193 : f32 to vector<8x1xf32>
    %575 = arith.addf %573, %574 : vector<8x1xf32>
    %576 = math.rsqrt %575 : vector<8x1xf32>
    %577 = vector.broadcast %576 : vector<8x1xf32> to vector<8x32xf32>
    %578 = arith.mulf %568, %577 : vector<8x32xf32>
    %579 = vector.broadcast %561 : vector<1x32xf32> to vector<8x32xf32>
    %580 = arith.mulf %578, %579 : vector<8x32xf32>
    %581 = vector.broadcast %562 : vector<1x32xf32> to vector<8x32xf32>
    %582 = arith.addf %580, %581 : vector<8x32xf32>
    %c448 = arith.constant 448 : index
    %c0_194 = arith.constant 0 : index
    %583 = vector.load %arg4[%c448, %c0_194] : memref<800x128xf32, #tpu.memory_space<vmem>>, vector<32x64xf32>
    %cst_195 = arith.constant dense<0.000000e+00> : vector<8x64xf32>
    %584 = tpu.matmul %582, %583, %cst_195 {dimension_numbers = #tpu.dot_dimension_numbers<[1], [0], [0], [1], [0, 0, 1, 1], [], []>} : vector<8x32xf32>, vector<32x64xf32>, vector<8x64xf32> -> vector<8x64xf32>
    %c26 = arith.constant 26 : index
    %c0_196 = arith.constant 0 : index
    %585 = vector.load %arg5[%c26, %c0_196] : memref<48x128xf32, #tpu.memory_space<vmem>>, vector<1x64xf32>
    %586 = vector.broadcast %585 : vector<1x64xf32> to vector<8x64xf32>
    %587 = arith.addf %584, %586 : vector<8x64xf32>
    %cst_197 = arith.constant 0.000000e+00 : f32
    %588 = vector.broadcast %cst_197 : f32 to vector<8x64xf32>
    %589 = arith.maximumf %587, %588 : vector<8x64xf32>
    %c480 = arith.constant 480 : index
    %c0_198 = arith.constant 0 : index
    %590 = vector.load %arg4[%c480, %c0_198] : memref<800x128xf32, #tpu.memory_space<vmem>>, vector<64x32xf32>
    %cst_199 = arith.constant dense<0.000000e+00> : vector<8x32xf32>
    %591 = tpu.matmul %589, %590, %cst_199 {dimension_numbers = #tpu.dot_dimension_numbers<[1], [0], [0], [1], [0, 0, 1, 1], [], []>} : vector<8x64xf32>, vector<64x32xf32>, vector<8x32xf32> -> vector<8x32xf32>
    %c27 = arith.constant 27 : index
    %c0_200 = arith.constant 0 : index
    %592 = vector.load %arg5[%c27, %c0_200] : memref<48x128xf32, #tpu.memory_space<vmem>>, vector<1x32xf32>
    %593 = vector.broadcast %592 : vector<1x32xf32> to vector<8x32xf32>
    %594 = arith.addf %591, %593 : vector<8x32xf32>
    %595 = arith.addf %582, %594 : vector<8x32xf32>
    %c28 = arith.constant 28 : index
    %c0_201 = arith.constant 0 : index
    %596 = vector.load %arg5[%c28, %c0_201] : memref<48x128xf32, #tpu.memory_space<vmem>>, vector<1x32xf32>
    %c29 = arith.constant 29 : index
    %c0_202 = arith.constant 0 : index
    %597 = vector.load %arg5[%c29, %c0_202] : memref<48x128xf32, #tpu.memory_space<vmem>>, vector<1x32xf32>
    %cst_203 = arith.constant dense<0.000000e+00> : vector<8xf32>
    %598 = vector.multi_reduction <add>, %595, %cst_203 [1] : vector<8x32xf32> to vector<8xf32>
    %599 = vector.shape_cast %598 : vector<8xf32> to vector<8x1xf32>
    %cst_204 = arith.constant 3.200000e+01 : f32
    %600 = vector.broadcast %cst_204 : f32 to vector<8x1xf32>
    %601 = arith.divf %599, %600 : vector<8x1xf32>
    %602 = vector.broadcast %601 : vector<8x1xf32> to vector<8x32xf32>
    %603 = arith.subf %595, %602 : vector<8x32xf32>
    %604 = arith.mulf %603, %603 : vector<8x32xf32>
    %cst_205 = arith.constant dense<0.000000e+00> : vector<8xf32>
    %605 = vector.multi_reduction <add>, %604, %cst_205 [1] : vector<8x32xf32> to vector<8xf32>
    %606 = vector.shape_cast %605 : vector<8xf32> to vector<8x1xf32>
    %cst_206 = arith.constant 3.200000e+01 : f32
    %607 = vector.broadcast %cst_206 : f32 to vector<8x1xf32>
    %608 = arith.divf %606, %607 : vector<8x1xf32>
    %cst_207 = arith.constant 9.99999974E-6 : f32
    %609 = vector.broadcast %cst_207 : f32 to vector<8x1xf32>
    %610 = arith.addf %608, %609 : vector<8x1xf32>
    %611 = math.rsqrt %610 : vector<8x1xf32>
    %612 = vector.broadcast %611 : vector<8x1xf32> to vector<8x32xf32>
    %613 = arith.mulf %603, %612 : vector<8x32xf32>
    %614 = vector.broadcast %596 : vector<1x32xf32> to vector<8x32xf32>
    %615 = arith.mulf %613, %614 : vector<8x32xf32>
    %616 = vector.broadcast %597 : vector<1x32xf32> to vector<8x32xf32>
    %617 = arith.addf %615, %616 : vector<8x32xf32>
    %c544 = arith.constant 544 : index
    %c0_208 = arith.constant 0 : index
    %618 = vector.load %arg4[%c544, %c0_208] : memref<800x128xf32, #tpu.memory_space<vmem>>, vector<32x96xf32>
    %c30 = arith.constant 30 : index
    %c0_209 = arith.constant 0 : index
    %619 = vector.load %arg5[%c30, %c0_209] : memref<48x128xf32, #tpu.memory_space<vmem>>, vector<1x96xf32>
    %c576 = arith.constant 576 : index
    %c0_210 = arith.constant 0 : index
    %620 = vector.load %arg4[%c576, %c0_210] : memref<800x128xf32, #tpu.memory_space<vmem>>, vector<32x32xf32>
    %c31 = arith.constant 31 : index
    %c0_211 = arith.constant 0 : index
    %621 = vector.load %arg5[%c31, %c0_211] : memref<48x128xf32, #tpu.memory_space<vmem>>, vector<1x32xf32>
    %cst_212 = arith.constant dense<0.000000e+00> : vector<8x96xf32>
    %622 = tpu.matmul %617, %618, %cst_212 {dimension_numbers = #tpu.dot_dimension_numbers<[1], [0], [0], [1], [0, 0, 1, 1], [], []>} : vector<8x32xf32>, vector<32x96xf32>, vector<8x96xf32> -> vector<8x96xf32>
    %623 = vector.broadcast %619 : vector<1x96xf32> to vector<8x96xf32>
    %624 = arith.addf %622, %623 : vector<8x96xf32>
    %625 = vector.extract_strided_slice %624 {offsets = [0, 0], sizes = [8, 32], strides = [1, 1]} : vector<8x96xf32> to vector<8x32xf32>
    %626 = vector.extract_strided_slice %624 {offsets = [0, 32], sizes = [8, 32], strides = [1, 1]} : vector<8x96xf32> to vector<8x32xf32>
    %627 = vector.extract_strided_slice %624 {offsets = [0, 64], sizes = [8, 32], strides = [1, 1]} : vector<8x96xf32> to vector<8x32xf32>
    %cst_213 = arith.constant 0.000000e+00 : f32
    %628 = vector.broadcast %cst_213 : f32 to vector<8x32xf32>
    %629 = vector.extract_strided_slice %625 {offsets = [0, 0], sizes = [8, 8], strides = [1, 1]} : vector<8x32xf32> to vector<8x8xf32>
    %630 = vector.extract_strided_slice %626 {offsets = [0, 0], sizes = [8, 8], strides = [1, 1]} : vector<8x32xf32> to vector<8x8xf32>
    %631 = vector.extract_strided_slice %627 {offsets = [0, 0], sizes = [8, 8], strides = [1, 1]} : vector<8x32xf32> to vector<8x8xf32>
    "tpu.trace_start"() <{level = 10 : i32, message = "qd,kd->qk"}> : () -> ()
    %cst_214 = arith.constant dense<0.000000e+00> : vector<8x8xf32>
    %632 = tpu.matmul %629, %630, %cst_214 {dimension_numbers = #tpu.dot_dimension_numbers<[1], [1], [0], [0], [0, 0, 1, 0], [], []>} : vector<8x8xf32>, vector<8x8xf32>, vector<8x8xf32> -> vector<8x8xf32>
    "tpu.trace_stop"() : () -> ()
    %cst_215 = arith.constant 0.353553385 : f32
    %633 = vector.broadcast %cst_215 : f32 to vector<8x8xf32>
    %634 = arith.mulf %632, %633 : vector<8x8xf32>
    %635 = arith.addf %634, %3 : vector<8x8xf32>
    %cst_216 = arith.constant dense<0xFF800000> : vector<8xf32>
    %636 = vector.multi_reduction <maximumf>, %635, %cst_216 [1] : vector<8x8xf32> to vector<8xf32>
    %637 = vector.shape_cast %636 : vector<8xf32> to vector<8x1xf32>
    %638 = vector.broadcast %637 : vector<8x1xf32> to vector<8x8xf32>
    %639 = arith.subf %635, %638 : vector<8x8xf32>
    %640 = math.exp %639 : vector<8x8xf32>
    %cst_217 = arith.constant dense<0.000000e+00> : vector<8xf32>
    %641 = vector.multi_reduction <add>, %640, %cst_217 [1] : vector<8x8xf32> to vector<8xf32>
    %642 = vector.shape_cast %641 : vector<8xf32> to vector<8x1xf32>
    %643 = tpu.reciprocal %642 {approx = true} : vector<8x1xf32> -> vector<8x1xf32>
    %644 = vector.broadcast %643 : vector<8x1xf32> to vector<8x8xf32>
    %645 = arith.mulf %640, %644 : vector<8x8xf32>
    %cst_218 = arith.constant dense<0.000000e+00> : vector<8x8xf32>
    %646 = tpu.matmul %645, %631, %cst_218 {dimension_numbers = #tpu.dot_dimension_numbers<[1], [0], [0], [1], [0, 0, 1, 1], [], []>} : vector<8x8xf32>, vector<8x8xf32>, vector<8x8xf32> -> vector<8x8xf32>
    %647 = vector.extract_strided_slice %620 {offsets = [0, 0], sizes = [8, 32], strides = [1, 1]} : vector<32x32xf32> to vector<8x32xf32>
    %cst_219 = arith.constant dense<0.000000e+00> : vector<8x32xf32>
    %648 = tpu.matmul %646, %647, %cst_219 {dimension_numbers = #tpu.dot_dimension_numbers<[1], [0], [0], [1], [0, 0, 1, 1], [], []>} : vector<8x8xf32>, vector<8x32xf32>, vector<8x32xf32> -> vector<8x32xf32>
    %649 = arith.addf %628, %648 : vector<8x32xf32>
    %650 = vector.extract_strided_slice %625 {offsets = [0, 8], sizes = [8, 8], strides = [1, 1]} : vector<8x32xf32> to vector<8x8xf32>
    %651 = vector.extract_strided_slice %626 {offsets = [0, 8], sizes = [8, 8], strides = [1, 1]} : vector<8x32xf32> to vector<8x8xf32>
    %652 = vector.extract_strided_slice %627 {offsets = [0, 8], sizes = [8, 8], strides = [1, 1]} : vector<8x32xf32> to vector<8x8xf32>
    "tpu.trace_start"() <{level = 10 : i32, message = "qd,kd->qk"}> : () -> ()
    %cst_220 = arith.constant dense<0.000000e+00> : vector<8x8xf32>
    %653 = tpu.matmul %650, %651, %cst_220 {dimension_numbers = #tpu.dot_dimension_numbers<[1], [1], [0], [0], [0, 0, 1, 0], [], []>} : vector<8x8xf32>, vector<8x8xf32>, vector<8x8xf32> -> vector<8x8xf32>
    "tpu.trace_stop"() : () -> ()
    %cst_221 = arith.constant 0.353553385 : f32
    %654 = vector.broadcast %cst_221 : f32 to vector<8x8xf32>
    %655 = arith.mulf %653, %654 : vector<8x8xf32>
    %656 = arith.addf %655, %3 : vector<8x8xf32>
    %cst_222 = arith.constant dense<0xFF800000> : vector<8xf32>
    %657 = vector.multi_reduction <maximumf>, %656, %cst_222 [1] : vector<8x8xf32> to vector<8xf32>
    %658 = vector.shape_cast %657 : vector<8xf32> to vector<8x1xf32>
    %659 = vector.broadcast %658 : vector<8x1xf32> to vector<8x8xf32>
    %660 = arith.subf %656, %659 : vector<8x8xf32>
    %661 = math.exp %660 : vector<8x8xf32>
    %cst_223 = arith.constant dense<0.000000e+00> : vector<8xf32>
    %662 = vector.multi_reduction <add>, %661, %cst_223 [1] : vector<8x8xf32> to vector<8xf32>
    %663 = vector.shape_cast %662 : vector<8xf32> to vector<8x1xf32>
    %664 = tpu.reciprocal %663 {approx = true} : vector<8x1xf32> -> vector<8x1xf32>
    %665 = vector.broadcast %664 : vector<8x1xf32> to vector<8x8xf32>
    %666 = arith.mulf %661, %665 : vector<8x8xf32>
    %cst_224 = arith.constant dense<0.000000e+00> : vector<8x8xf32>
    %667 = tpu.matmul %666, %652, %cst_224 {dimension_numbers = #tpu.dot_dimension_numbers<[1], [0], [0], [1], [0, 0, 1, 1], [], []>} : vector<8x8xf32>, vector<8x8xf32>, vector<8x8xf32> -> vector<8x8xf32>
    %668 = vector.extract_strided_slice %620 {offsets = [8, 0], sizes = [8, 32], strides = [1, 1]} : vector<32x32xf32> to vector<8x32xf32>
    %cst_225 = arith.constant dense<0.000000e+00> : vector<8x32xf32>
    %669 = tpu.matmul %667, %668, %cst_225 {dimension_numbers = #tpu.dot_dimension_numbers<[1], [0], [0], [1], [0, 0, 1, 1], [], []>} : vector<8x8xf32>, vector<8x32xf32>, vector<8x32xf32> -> vector<8x32xf32>
    %670 = arith.addf %649, %669 : vector<8x32xf32>
    %671 = vector.extract_strided_slice %625 {offsets = [0, 16], sizes = [8, 8], strides = [1, 1]} : vector<8x32xf32> to vector<8x8xf32>
    %672 = vector.extract_strided_slice %626 {offsets = [0, 16], sizes = [8, 8], strides = [1, 1]} : vector<8x32xf32> to vector<8x8xf32>
    %673 = vector.extract_strided_slice %627 {offsets = [0, 16], sizes = [8, 8], strides = [1, 1]} : vector<8x32xf32> to vector<8x8xf32>
    "tpu.trace_start"() <{level = 10 : i32, message = "qd,kd->qk"}> : () -> ()
    %cst_226 = arith.constant dense<0.000000e+00> : vector<8x8xf32>
    %674 = tpu.matmul %671, %672, %cst_226 {dimension_numbers = #tpu.dot_dimension_numbers<[1], [1], [0], [0], [0, 0, 1, 0], [], []>} : vector<8x8xf32>, vector<8x8xf32>, vector<8x8xf32> -> vector<8x8xf32>
    "tpu.trace_stop"() : () -> ()
    %cst_227 = arith.constant 0.353553385 : f32
    %675 = vector.broadcast %cst_227 : f32 to vector<8x8xf32>
    %676 = arith.mulf %674, %675 : vector<8x8xf32>
    %677 = arith.addf %676, %3 : vector<8x8xf32>
    %cst_228 = arith.constant dense<0xFF800000> : vector<8xf32>
    %678 = vector.multi_reduction <maximumf>, %677, %cst_228 [1] : vector<8x8xf32> to vector<8xf32>
    %679 = vector.shape_cast %678 : vector<8xf32> to vector<8x1xf32>
    %680 = vector.broadcast %679 : vector<8x1xf32> to vector<8x8xf32>
    %681 = arith.subf %677, %680 : vector<8x8xf32>
    %682 = math.exp %681 : vector<8x8xf32>
    %cst_229 = arith.constant dense<0.000000e+00> : vector<8xf32>
    %683 = vector.multi_reduction <add>, %682, %cst_229 [1] : vector<8x8xf32> to vector<8xf32>
    %684 = vector.shape_cast %683 : vector<8xf32> to vector<8x1xf32>
    %685 = tpu.reciprocal %684 {approx = true} : vector<8x1xf32> -> vector<8x1xf32>
    %686 = vector.broadcast %685 : vector<8x1xf32> to vector<8x8xf32>
    %687 = arith.mulf %682, %686 : vector<8x8xf32>
    %cst_230 = arith.constant dense<0.000000e+00> : vector<8x8xf32>
    %688 = tpu.matmul %687, %673, %cst_230 {dimension_numbers = #tpu.dot_dimension_numbers<[1], [0], [0], [1], [0, 0, 1, 1], [], []>} : vector<8x8xf32>, vector<8x8xf32>, vector<8x8xf32> -> vector<8x8xf32>
    %689 = vector.extract_strided_slice %620 {offsets = [16, 0], sizes = [8, 32], strides = [1, 1]} : vector<32x32xf32> to vector<8x32xf32>
    %cst_231 = arith.constant dense<0.000000e+00> : vector<8x32xf32>
    %690 = tpu.matmul %688, %689, %cst_231 {dimension_numbers = #tpu.dot_dimension_numbers<[1], [0], [0], [1], [0, 0, 1, 1], [], []>} : vector<8x8xf32>, vector<8x32xf32>, vector<8x32xf32> -> vector<8x32xf32>
    %691 = arith.addf %670, %690 : vector<8x32xf32>
    %692 = vector.extract_strided_slice %625 {offsets = [0, 24], sizes = [8, 8], strides = [1, 1]} : vector<8x32xf32> to vector<8x8xf32>
    %693 = vector.extract_strided_slice %626 {offsets = [0, 24], sizes = [8, 8], strides = [1, 1]} : vector<8x32xf32> to vector<8x8xf32>
    %694 = vector.extract_strided_slice %627 {offsets = [0, 24], sizes = [8, 8], strides = [1, 1]} : vector<8x32xf32> to vector<8x8xf32>
    "tpu.trace_start"() <{level = 10 : i32, message = "qd,kd->qk"}> : () -> ()
    %cst_232 = arith.constant dense<0.000000e+00> : vector<8x8xf32>
    %695 = tpu.matmul %692, %693, %cst_232 {dimension_numbers = #tpu.dot_dimension_numbers<[1], [1], [0], [0], [0, 0, 1, 0], [], []>} : vector<8x8xf32>, vector<8x8xf32>, vector<8x8xf32> -> vector<8x8xf32>
    "tpu.trace_stop"() : () -> ()
    %cst_233 = arith.constant 0.353553385 : f32
    %696 = vector.broadcast %cst_233 : f32 to vector<8x8xf32>
    %697 = arith.mulf %695, %696 : vector<8x8xf32>
    %698 = arith.addf %697, %3 : vector<8x8xf32>
    %cst_234 = arith.constant dense<0xFF800000> : vector<8xf32>
    %699 = vector.multi_reduction <maximumf>, %698, %cst_234 [1] : vector<8x8xf32> to vector<8xf32>
    %700 = vector.shape_cast %699 : vector<8xf32> to vector<8x1xf32>
    %701 = vector.broadcast %700 : vector<8x1xf32> to vector<8x8xf32>
    %702 = arith.subf %698, %701 : vector<8x8xf32>
    %703 = math.exp %702 : vector<8x8xf32>
    %cst_235 = arith.constant dense<0.000000e+00> : vector<8xf32>
    %704 = vector.multi_reduction <add>, %703, %cst_235 [1] : vector<8x8xf32> to vector<8xf32>
    %705 = vector.shape_cast %704 : vector<8xf32> to vector<8x1xf32>
    %706 = tpu.reciprocal %705 {approx = true} : vector<8x1xf32> -> vector<8x1xf32>
    %707 = vector.broadcast %706 : vector<8x1xf32> to vector<8x8xf32>
    %708 = arith.mulf %703, %707 : vector<8x8xf32>
    %cst_236 = arith.constant dense<0.000000e+00> : vector<8x8xf32>
    %709 = tpu.matmul %708, %694, %cst_236 {dimension_numbers = #tpu.dot_dimension_numbers<[1], [0], [0], [1], [0, 0, 1, 1], [], []>} : vector<8x8xf32>, vector<8x8xf32>, vector<8x8xf32> -> vector<8x8xf32>
    %710 = vector.extract_strided_slice %620 {offsets = [24, 0], sizes = [8, 32], strides = [1, 1]} : vector<32x32xf32> to vector<8x32xf32>
    %cst_237 = arith.constant dense<0.000000e+00> : vector<8x32xf32>
    %711 = tpu.matmul %709, %710, %cst_237 {dimension_numbers = #tpu.dot_dimension_numbers<[1], [0], [0], [1], [0, 0, 1, 1], [], []>} : vector<8x8xf32>, vector<8x32xf32>, vector<8x32xf32> -> vector<8x32xf32>
    %712 = arith.addf %691, %711 : vector<8x32xf32>
    %713 = vector.broadcast %621 : vector<1x32xf32> to vector<8x32xf32>
    %714 = arith.addf %712, %713 : vector<8x32xf32>
    %715 = arith.addf %617, %714 : vector<8x32xf32>
    %c32_238 = arith.constant 32 : index
    %c0_239 = arith.constant 0 : index
    %716 = vector.load %arg5[%c32_238, %c0_239] : memref<48x128xf32, #tpu.memory_space<vmem>>, vector<1x32xf32>
    %c33 = arith.constant 33 : index
    %c0_240 = arith.constant 0 : index
    %717 = vector.load %arg5[%c33, %c0_240] : memref<48x128xf32, #tpu.memory_space<vmem>>, vector<1x32xf32>
    %cst_241 = arith.constant dense<0.000000e+00> : vector<8xf32>
    %718 = vector.multi_reduction <add>, %715, %cst_241 [1] : vector<8x32xf32> to vector<8xf32>
    %719 = vector.shape_cast %718 : vector<8xf32> to vector<8x1xf32>
    %cst_242 = arith.constant 3.200000e+01 : f32
    %720 = vector.broadcast %cst_242 : f32 to vector<8x1xf32>
    %721 = arith.divf %719, %720 : vector<8x1xf32>
    %722 = vector.broadcast %721 : vector<8x1xf32> to vector<8x32xf32>
    %723 = arith.subf %715, %722 : vector<8x32xf32>
    %724 = arith.mulf %723, %723 : vector<8x32xf32>
    %cst_243 = arith.constant dense<0.000000e+00> : vector<8xf32>
    %725 = vector.multi_reduction <add>, %724, %cst_243 [1] : vector<8x32xf32> to vector<8xf32>
    %726 = vector.shape_cast %725 : vector<8xf32> to vector<8x1xf32>
    %cst_244 = arith.constant 3.200000e+01 : f32
    %727 = vector.broadcast %cst_244 : f32 to vector<8x1xf32>
    %728 = arith.divf %726, %727 : vector<8x1xf32>
    %cst_245 = arith.constant 9.99999974E-6 : f32
    %729 = vector.broadcast %cst_245 : f32 to vector<8x1xf32>
    %730 = arith.addf %728, %729 : vector<8x1xf32>
    %731 = math.rsqrt %730 : vector<8x1xf32>
    %732 = vector.broadcast %731 : vector<8x1xf32> to vector<8x32xf32>
    %733 = arith.mulf %723, %732 : vector<8x32xf32>
    %734 = vector.broadcast %716 : vector<1x32xf32> to vector<8x32xf32>
    %735 = arith.mulf %733, %734 : vector<8x32xf32>
    %736 = vector.broadcast %717 : vector<1x32xf32> to vector<8x32xf32>
    %737 = arith.addf %735, %736 : vector<8x32xf32>
    %c608 = arith.constant 608 : index
    %c0_246 = arith.constant 0 : index
    %738 = vector.load %arg4[%c608, %c0_246] : memref<800x128xf32, #tpu.memory_space<vmem>>, vector<32x96xf32>
    %c34 = arith.constant 34 : index
    %c0_247 = arith.constant 0 : index
    %739 = vector.load %arg5[%c34, %c0_247] : memref<48x128xf32, #tpu.memory_space<vmem>>, vector<1x96xf32>
    %c640 = arith.constant 640 : index
    %c0_248 = arith.constant 0 : index
    %740 = vector.load %arg4[%c640, %c0_248] : memref<800x128xf32, #tpu.memory_space<vmem>>, vector<32x32xf32>
    %c35 = arith.constant 35 : index
    %c0_249 = arith.constant 0 : index
    %741 = vector.load %arg5[%c35, %c0_249] : memref<48x128xf32, #tpu.memory_space<vmem>>, vector<1x32xf32>
    %742 = vector.extract_strided_slice %738 {offsets = [0, 0], sizes = [32, 32], strides = [1, 1]} : vector<32x96xf32> to vector<32x32xf32>
    %cst_250 = arith.constant dense<0.000000e+00> : vector<8x32xf32>
    %743 = tpu.matmul %737, %742, %cst_250 {dimension_numbers = #tpu.dot_dimension_numbers<[1], [0], [0], [1], [0, 0, 1, 1], [], []>} : vector<8x32xf32>, vector<32x32xf32>, vector<8x32xf32> -> vector<8x32xf32>
    %744 = vector.extract_strided_slice %739 {offsets = [0, 0], sizes = [1, 32], strides = [1, 1]} : vector<1x96xf32> to vector<1x32xf32>
    %745 = vector.broadcast %744 : vector<1x32xf32> to vector<8x32xf32>
    %746 = arith.addf %743, %745 : vector<8x32xf32>
    %747 = vector.extract_strided_slice %738 {offsets = [0, 32], sizes = [32, 64], strides = [1, 1]} : vector<32x96xf32> to vector<32x64xf32>
    %cst_251 = arith.constant dense<0.000000e+00> : vector<6x64xf32>
    %748 = tpu.matmul %336, %747, %cst_251 {dimension_numbers = #tpu.dot_dimension_numbers<[1], [0], [0], [1], [0, 0, 1, 1], [], []>} : vector<6x32xf32>, vector<32x64xf32>, vector<6x64xf32> -> vector<6x64xf32>
    %749 = vector.extract_strided_slice %739 {offsets = [0, 32], sizes = [1, 64], strides = [1, 1]} : vector<1x96xf32> to vector<1x64xf32>
    %750 = vector.broadcast %749 : vector<1x64xf32> to vector<6x64xf32>
    %751 = arith.addf %748, %750 : vector<6x64xf32>
    %752 = vector.extract_strided_slice %751 {offsets = [0, 0], sizes = [6, 32], strides = [1, 1]} : vector<6x64xf32> to vector<6x32xf32>
    %753 = vector.extract_strided_slice %751 {offsets = [0, 32], sizes = [6, 32], strides = [1, 1]} : vector<6x64xf32> to vector<6x32xf32>
    %cst_252 = arith.constant 0.000000e+00 : f32
    %754 = vector.broadcast %cst_252 : f32 to vector<8x32xf32>
    %755 = vector.extract_strided_slice %746 {offsets = [0, 0], sizes = [8, 8], strides = [1, 1]} : vector<8x32xf32> to vector<8x8xf32>
    %756 = vector.extract_strided_slice %752 {offsets = [0, 0], sizes = [6, 8], strides = [1, 1]} : vector<6x32xf32> to vector<6x8xf32>
    %757 = vector.extract_strided_slice %753 {offsets = [0, 0], sizes = [6, 8], strides = [1, 1]} : vector<6x32xf32> to vector<6x8xf32>
    "tpu.trace_start"() <{level = 10 : i32, message = "qd,kd->qk"}> : () -> ()
    %cst_253 = arith.constant dense<0.000000e+00> : vector<8x6xf32>
    %758 = tpu.matmul %755, %756, %cst_253 {dimension_numbers = #tpu.dot_dimension_numbers<[1], [1], [0], [0], [0, 0, 1, 0], [], []>} : vector<8x8xf32>, vector<6x8xf32>, vector<8x6xf32> -> vector<8x6xf32>
    "tpu.trace_stop"() : () -> ()
    %cst_254 = arith.constant 0.353553385 : f32
    %759 = vector.broadcast %cst_254 : f32 to vector<8x6xf32>
    %760 = arith.mulf %758, %759 : vector<8x6xf32>
    %761 = arith.addf %760, %4 : vector<8x6xf32>
    %cst_255 = arith.constant dense<0xFF800000> : vector<8xf32>
    %762 = vector.multi_reduction <maximumf>, %761, %cst_255 [1] : vector<8x6xf32> to vector<8xf32>
    %763 = vector.shape_cast %762 : vector<8xf32> to vector<8x1xf32>
    %764 = vector.broadcast %763 : vector<8x1xf32> to vector<8x6xf32>
    %765 = arith.subf %761, %764 : vector<8x6xf32>
    %766 = math.exp %765 : vector<8x6xf32>
    %cst_256 = arith.constant dense<0.000000e+00> : vector<8xf32>
    %767 = vector.multi_reduction <add>, %766, %cst_256 [1] : vector<8x6xf32> to vector<8xf32>
    %768 = vector.shape_cast %767 : vector<8xf32> to vector<8x1xf32>
    %769 = tpu.reciprocal %768 {approx = true} : vector<8x1xf32> -> vector<8x1xf32>
    %770 = vector.broadcast %769 : vector<8x1xf32> to vector<8x6xf32>
    %771 = arith.mulf %766, %770 : vector<8x6xf32>
    %cst_257 = arith.constant dense<0.000000e+00> : vector<8x8xf32>
    %772 = tpu.matmul %771, %757, %cst_257 {dimension_numbers = #tpu.dot_dimension_numbers<[1], [0], [0], [1], [0, 0, 1, 1], [], []>} : vector<8x6xf32>, vector<6x8xf32>, vector<8x8xf32> -> vector<8x8xf32>
    %773 = vector.extract_strided_slice %740 {offsets = [0, 0], sizes = [8, 32], strides = [1, 1]} : vector<32x32xf32> to vector<8x32xf32>
    %cst_258 = arith.constant dense<0.000000e+00> : vector<8x32xf32>
    %774 = tpu.matmul %772, %773, %cst_258 {dimension_numbers = #tpu.dot_dimension_numbers<[1], [0], [0], [1], [0, 0, 1, 1], [], []>} : vector<8x8xf32>, vector<8x32xf32>, vector<8x32xf32> -> vector<8x32xf32>
    %775 = arith.addf %754, %774 : vector<8x32xf32>
    %776 = vector.extract_strided_slice %746 {offsets = [0, 8], sizes = [8, 8], strides = [1, 1]} : vector<8x32xf32> to vector<8x8xf32>
    %777 = vector.extract_strided_slice %752 {offsets = [0, 8], sizes = [6, 8], strides = [1, 1]} : vector<6x32xf32> to vector<6x8xf32>
    %778 = vector.extract_strided_slice %753 {offsets = [0, 8], sizes = [6, 8], strides = [1, 1]} : vector<6x32xf32> to vector<6x8xf32>
    "tpu.trace_start"() <{level = 10 : i32, message = "qd,kd->qk"}> : () -> ()
    %cst_259 = arith.constant dense<0.000000e+00> : vector<8x6xf32>
    %779 = tpu.matmul %776, %777, %cst_259 {dimension_numbers = #tpu.dot_dimension_numbers<[1], [1], [0], [0], [0, 0, 1, 0], [], []>} : vector<8x8xf32>, vector<6x8xf32>, vector<8x6xf32> -> vector<8x6xf32>
    "tpu.trace_stop"() : () -> ()
    %cst_260 = arith.constant 0.353553385 : f32
    %780 = vector.broadcast %cst_260 : f32 to vector<8x6xf32>
    %781 = arith.mulf %779, %780 : vector<8x6xf32>
    %782 = arith.addf %781, %4 : vector<8x6xf32>
    %cst_261 = arith.constant dense<0xFF800000> : vector<8xf32>
    %783 = vector.multi_reduction <maximumf>, %782, %cst_261 [1] : vector<8x6xf32> to vector<8xf32>
    %784 = vector.shape_cast %783 : vector<8xf32> to vector<8x1xf32>
    %785 = vector.broadcast %784 : vector<8x1xf32> to vector<8x6xf32>
    %786 = arith.subf %782, %785 : vector<8x6xf32>
    %787 = math.exp %786 : vector<8x6xf32>
    %cst_262 = arith.constant dense<0.000000e+00> : vector<8xf32>
    %788 = vector.multi_reduction <add>, %787, %cst_262 [1] : vector<8x6xf32> to vector<8xf32>
    %789 = vector.shape_cast %788 : vector<8xf32> to vector<8x1xf32>
    %790 = tpu.reciprocal %789 {approx = true} : vector<8x1xf32> -> vector<8x1xf32>
    %791 = vector.broadcast %790 : vector<8x1xf32> to vector<8x6xf32>
    %792 = arith.mulf %787, %791 : vector<8x6xf32>
    %cst_263 = arith.constant dense<0.000000e+00> : vector<8x8xf32>
    %793 = tpu.matmul %792, %778, %cst_263 {dimension_numbers = #tpu.dot_dimension_numbers<[1], [0], [0], [1], [0, 0, 1, 1], [], []>} : vector<8x6xf32>, vector<6x8xf32>, vector<8x8xf32> -> vector<8x8xf32>
    %794 = vector.extract_strided_slice %740 {offsets = [8, 0], sizes = [8, 32], strides = [1, 1]} : vector<32x32xf32> to vector<8x32xf32>
    %cst_264 = arith.constant dense<0.000000e+00> : vector<8x32xf32>
    %795 = tpu.matmul %793, %794, %cst_264 {dimension_numbers = #tpu.dot_dimension_numbers<[1], [0], [0], [1], [0, 0, 1, 1], [], []>} : vector<8x8xf32>, vector<8x32xf32>, vector<8x32xf32> -> vector<8x32xf32>
    %796 = arith.addf %775, %795 : vector<8x32xf32>
    %797 = vector.extract_strided_slice %746 {offsets = [0, 16], sizes = [8, 8], strides = [1, 1]} : vector<8x32xf32> to vector<8x8xf32>
    %798 = vector.extract_strided_slice %752 {offsets = [0, 16], sizes = [6, 8], strides = [1, 1]} : vector<6x32xf32> to vector<6x8xf32>
    %799 = vector.extract_strided_slice %753 {offsets = [0, 16], sizes = [6, 8], strides = [1, 1]} : vector<6x32xf32> to vector<6x8xf32>
    "tpu.trace_start"() <{level = 10 : i32, message = "qd,kd->qk"}> : () -> ()
    %cst_265 = arith.constant dense<0.000000e+00> : vector<8x6xf32>
    %800 = tpu.matmul %797, %798, %cst_265 {dimension_numbers = #tpu.dot_dimension_numbers<[1], [1], [0], [0], [0, 0, 1, 0], [], []>} : vector<8x8xf32>, vector<6x8xf32>, vector<8x6xf32> -> vector<8x6xf32>
    "tpu.trace_stop"() : () -> ()
    %cst_266 = arith.constant 0.353553385 : f32
    %801 = vector.broadcast %cst_266 : f32 to vector<8x6xf32>
    %802 = arith.mulf %800, %801 : vector<8x6xf32>
    %803 = arith.addf %802, %4 : vector<8x6xf32>
    %cst_267 = arith.constant dense<0xFF800000> : vector<8xf32>
    %804 = vector.multi_reduction <maximumf>, %803, %cst_267 [1] : vector<8x6xf32> to vector<8xf32>
    %805 = vector.shape_cast %804 : vector<8xf32> to vector<8x1xf32>
    %806 = vector.broadcast %805 : vector<8x1xf32> to vector<8x6xf32>
    %807 = arith.subf %803, %806 : vector<8x6xf32>
    %808 = math.exp %807 : vector<8x6xf32>
    %cst_268 = arith.constant dense<0.000000e+00> : vector<8xf32>
    %809 = vector.multi_reduction <add>, %808, %cst_268 [1] : vector<8x6xf32> to vector<8xf32>
    %810 = vector.shape_cast %809 : vector<8xf32> to vector<8x1xf32>
    %811 = tpu.reciprocal %810 {approx = true} : vector<8x1xf32> -> vector<8x1xf32>
    %812 = vector.broadcast %811 : vector<8x1xf32> to vector<8x6xf32>
    %813 = arith.mulf %808, %812 : vector<8x6xf32>
    %cst_269 = arith.constant dense<0.000000e+00> : vector<8x8xf32>
    %814 = tpu.matmul %813, %799, %cst_269 {dimension_numbers = #tpu.dot_dimension_numbers<[1], [0], [0], [1], [0, 0, 1, 1], [], []>} : vector<8x6xf32>, vector<6x8xf32>, vector<8x8xf32> -> vector<8x8xf32>
    %815 = vector.extract_strided_slice %740 {offsets = [16, 0], sizes = [8, 32], strides = [1, 1]} : vector<32x32xf32> to vector<8x32xf32>
    %cst_270 = arith.constant dense<0.000000e+00> : vector<8x32xf32>
    %816 = tpu.matmul %814, %815, %cst_270 {dimension_numbers = #tpu.dot_dimension_numbers<[1], [0], [0], [1], [0, 0, 1, 1], [], []>} : vector<8x8xf32>, vector<8x32xf32>, vector<8x32xf32> -> vector<8x32xf32>
    %817 = arith.addf %796, %816 : vector<8x32xf32>
    %818 = vector.extract_strided_slice %746 {offsets = [0, 24], sizes = [8, 8], strides = [1, 1]} : vector<8x32xf32> to vector<8x8xf32>
    %819 = vector.extract_strided_slice %752 {offsets = [0, 24], sizes = [6, 8], strides = [1, 1]} : vector<6x32xf32> to vector<6x8xf32>
    %820 = vector.extract_strided_slice %753 {offsets = [0, 24], sizes = [6, 8], strides = [1, 1]} : vector<6x32xf32> to vector<6x8xf32>
    "tpu.trace_start"() <{level = 10 : i32, message = "qd,kd->qk"}> : () -> ()
    %cst_271 = arith.constant dense<0.000000e+00> : vector<8x6xf32>
    %821 = tpu.matmul %818, %819, %cst_271 {dimension_numbers = #tpu.dot_dimension_numbers<[1], [1], [0], [0], [0, 0, 1, 0], [], []>} : vector<8x8xf32>, vector<6x8xf32>, vector<8x6xf32> -> vector<8x6xf32>
    "tpu.trace_stop"() : () -> ()
    %cst_272 = arith.constant 0.353553385 : f32
    %822 = vector.broadcast %cst_272 : f32 to vector<8x6xf32>
    %823 = arith.mulf %821, %822 : vector<8x6xf32>
    %824 = arith.addf %823, %4 : vector<8x6xf32>
    %cst_273 = arith.constant dense<0xFF800000> : vector<8xf32>
    %825 = vector.multi_reduction <maximumf>, %824, %cst_273 [1] : vector<8x6xf32> to vector<8xf32>
    %826 = vector.shape_cast %825 : vector<8xf32> to vector<8x1xf32>
    %827 = vector.broadcast %826 : vector<8x1xf32> to vector<8x6xf32>
    %828 = arith.subf %824, %827 : vector<8x6xf32>
    %829 = math.exp %828 : vector<8x6xf32>
    %cst_274 = arith.constant dense<0.000000e+00> : vector<8xf32>
    %830 = vector.multi_reduction <add>, %829, %cst_274 [1] : vector<8x6xf32> to vector<8xf32>
    %831 = vector.shape_cast %830 : vector<8xf32> to vector<8x1xf32>
    %832 = tpu.reciprocal %831 {approx = true} : vector<8x1xf32> -> vector<8x1xf32>
    %833 = vector.broadcast %832 : vector<8x1xf32> to vector<8x6xf32>
    %834 = arith.mulf %829, %833 : vector<8x6xf32>
    %cst_275 = arith.constant dense<0.000000e+00> : vector<8x8xf32>
    %835 = tpu.matmul %834, %820, %cst_275 {dimension_numbers = #tpu.dot_dimension_numbers<[1], [0], [0], [1], [0, 0, 1, 1], [], []>} : vector<8x6xf32>, vector<6x8xf32>, vector<8x8xf32> -> vector<8x8xf32>
    %836 = vector.extract_strided_slice %740 {offsets = [24, 0], sizes = [8, 32], strides = [1, 1]} : vector<32x32xf32> to vector<8x32xf32>
    %cst_276 = arith.constant dense<0.000000e+00> : vector<8x32xf32>
    %837 = tpu.matmul %835, %836, %cst_276 {dimension_numbers = #tpu.dot_dimension_numbers<[1], [0], [0], [1], [0, 0, 1, 1], [], []>} : vector<8x8xf32>, vector<8x32xf32>, vector<8x32xf32> -> vector<8x32xf32>
    %838 = arith.addf %817, %837 : vector<8x32xf32>
    %839 = vector.broadcast %741 : vector<1x32xf32> to vector<8x32xf32>
    %840 = arith.addf %838, %839 : vector<8x32xf32>
    %841 = arith.addf %737, %840 : vector<8x32xf32>
    %c36 = arith.constant 36 : index
    %c0_277 = arith.constant 0 : index
    %842 = vector.load %arg5[%c36, %c0_277] : memref<48x128xf32, #tpu.memory_space<vmem>>, vector<1x32xf32>
    %c37 = arith.constant 37 : index
    %c0_278 = arith.constant 0 : index
    %843 = vector.load %arg5[%c37, %c0_278] : memref<48x128xf32, #tpu.memory_space<vmem>>, vector<1x32xf32>
    %cst_279 = arith.constant dense<0.000000e+00> : vector<8xf32>
    %844 = vector.multi_reduction <add>, %841, %cst_279 [1] : vector<8x32xf32> to vector<8xf32>
    %845 = vector.shape_cast %844 : vector<8xf32> to vector<8x1xf32>
    %cst_280 = arith.constant 3.200000e+01 : f32
    %846 = vector.broadcast %cst_280 : f32 to vector<8x1xf32>
    %847 = arith.divf %845, %846 : vector<8x1xf32>
    %848 = vector.broadcast %847 : vector<8x1xf32> to vector<8x32xf32>
    %849 = arith.subf %841, %848 : vector<8x32xf32>
    %850 = arith.mulf %849, %849 : vector<8x32xf32>
    %cst_281 = arith.constant dense<0.000000e+00> : vector<8xf32>
    %851 = vector.multi_reduction <add>, %850, %cst_281 [1] : vector<8x32xf32> to vector<8xf32>
    %852 = vector.shape_cast %851 : vector<8xf32> to vector<8x1xf32>
    %cst_282 = arith.constant 3.200000e+01 : f32
    %853 = vector.broadcast %cst_282 : f32 to vector<8x1xf32>
    %854 = arith.divf %852, %853 : vector<8x1xf32>
    %cst_283 = arith.constant 9.99999974E-6 : f32
    %855 = vector.broadcast %cst_283 : f32 to vector<8x1xf32>
    %856 = arith.addf %854, %855 : vector<8x1xf32>
    %857 = math.rsqrt %856 : vector<8x1xf32>
    %858 = vector.broadcast %857 : vector<8x1xf32> to vector<8x32xf32>
    %859 = arith.mulf %849, %858 : vector<8x32xf32>
    %860 = vector.broadcast %842 : vector<1x32xf32> to vector<8x32xf32>
    %861 = arith.mulf %859, %860 : vector<8x32xf32>
    %862 = vector.broadcast %843 : vector<1x32xf32> to vector<8x32xf32>
    %863 = arith.addf %861, %862 : vector<8x32xf32>
    %c672 = arith.constant 672 : index
    %c0_284 = arith.constant 0 : index
    %864 = vector.load %arg4[%c672, %c0_284] : memref<800x128xf32, #tpu.memory_space<vmem>>, vector<32x64xf32>
    %cst_285 = arith.constant dense<0.000000e+00> : vector<8x64xf32>
    %865 = tpu.matmul %863, %864, %cst_285 {dimension_numbers = #tpu.dot_dimension_numbers<[1], [0], [0], [1], [0, 0, 1, 1], [], []>} : vector<8x32xf32>, vector<32x64xf32>, vector<8x64xf32> -> vector<8x64xf32>
    %c38 = arith.constant 38 : index
    %c0_286 = arith.constant 0 : index
    %866 = vector.load %arg5[%c38, %c0_286] : memref<48x128xf32, #tpu.memory_space<vmem>>, vector<1x64xf32>
    %867 = vector.broadcast %866 : vector<1x64xf32> to vector<8x64xf32>
    %868 = arith.addf %865, %867 : vector<8x64xf32>
    %cst_287 = arith.constant 0.000000e+00 : f32
    %869 = vector.broadcast %cst_287 : f32 to vector<8x64xf32>
    %870 = arith.maximumf %868, %869 : vector<8x64xf32>
    %c704 = arith.constant 704 : index
    %c0_288 = arith.constant 0 : index
    %871 = vector.load %arg4[%c704, %c0_288] : memref<800x128xf32, #tpu.memory_space<vmem>>, vector<64x32xf32>
    %cst_289 = arith.constant dense<0.000000e+00> : vector<8x32xf32>
    %872 = tpu.matmul %870, %871, %cst_289 {dimension_numbers = #tpu.dot_dimension_numbers<[1], [0], [0], [1], [0, 0, 1, 1], [], []>} : vector<8x64xf32>, vector<64x32xf32>, vector<8x32xf32> -> vector<8x32xf32>
    %c39 = arith.constant 39 : index
    %c0_290 = arith.constant 0 : index
    %873 = vector.load %arg5[%c39, %c0_290] : memref<48x128xf32, #tpu.memory_space<vmem>>, vector<1x32xf32>
    %874 = vector.broadcast %873 : vector<1x32xf32> to vector<8x32xf32>
    %875 = arith.addf %872, %874 : vector<8x32xf32>
    %876 = arith.addf %863, %875 : vector<8x32xf32>
    %c40 = arith.constant 40 : index
    %c0_291 = arith.constant 0 : index
    %877 = vector.load %arg5[%c40, %c0_291] : memref<48x128xf32, #tpu.memory_space<vmem>>, vector<1x32xf32>
    %c41 = arith.constant 41 : index
    %c0_292 = arith.constant 0 : index
    %878 = vector.load %arg5[%c41, %c0_292] : memref<48x128xf32, #tpu.memory_space<vmem>>, vector<1x32xf32>
    %cst_293 = arith.constant dense<0.000000e+00> : vector<8xf32>
    %879 = vector.multi_reduction <add>, %876, %cst_293 [1] : vector<8x32xf32> to vector<8xf32>
    %880 = vector.shape_cast %879 : vector<8xf32> to vector<8x1xf32>
    %cst_294 = arith.constant 3.200000e+01 : f32
    %881 = vector.broadcast %cst_294 : f32 to vector<8x1xf32>
    %882 = arith.divf %880, %881 : vector<8x1xf32>
    %883 = vector.broadcast %882 : vector<8x1xf32> to vector<8x32xf32>
    %884 = arith.subf %876, %883 : vector<8x32xf32>
    %885 = arith.mulf %884, %884 : vector<8x32xf32>
    %cst_295 = arith.constant dense<0.000000e+00> : vector<8xf32>
    %886 = vector.multi_reduction <add>, %885, %cst_295 [1] : vector<8x32xf32> to vector<8xf32>
    %887 = vector.shape_cast %886 : vector<8xf32> to vector<8x1xf32>
    %cst_296 = arith.constant 3.200000e+01 : f32
    %888 = vector.broadcast %cst_296 : f32 to vector<8x1xf32>
    %889 = arith.divf %887, %888 : vector<8x1xf32>
    %cst_297 = arith.constant 9.99999974E-6 : f32
    %890 = vector.broadcast %cst_297 : f32 to vector<8x1xf32>
    %891 = arith.addf %889, %890 : vector<8x1xf32>
    %892 = math.rsqrt %891 : vector<8x1xf32>
    %893 = vector.broadcast %892 : vector<8x1xf32> to vector<8x32xf32>
    %894 = arith.mulf %884, %893 : vector<8x32xf32>
    %895 = vector.broadcast %877 : vector<1x32xf32> to vector<8x32xf32>
    %896 = arith.mulf %894, %895 : vector<8x32xf32>
    %897 = vector.broadcast %878 : vector<1x32xf32> to vector<8x32xf32>
    %898 = arith.addf %896, %897 : vector<8x32xf32>
    %c42 = arith.constant 42 : index
    %c0_298 = arith.constant 0 : index
    %899 = vector.load %arg5[%c42, %c0_298] : memref<48x128xf32, #tpu.memory_space<vmem>>, vector<1x32xf32>
    %c43 = arith.constant 43 : index
    %c0_299 = arith.constant 0 : index
    %900 = vector.load %arg5[%c43, %c0_299] : memref<48x128xf32, #tpu.memory_space<vmem>>, vector<1x32xf32>
    %cst_300 = arith.constant dense<0.000000e+00> : vector<8xf32>
    %901 = vector.multi_reduction <add>, %898, %cst_300 [1] : vector<8x32xf32> to vector<8xf32>
    %902 = vector.shape_cast %901 : vector<8xf32> to vector<8x1xf32>
    %cst_301 = arith.constant 3.200000e+01 : f32
    %903 = vector.broadcast %cst_301 : f32 to vector<8x1xf32>
    %904 = arith.divf %902, %903 : vector<8x1xf32>
    %905 = vector.broadcast %904 : vector<8x1xf32> to vector<8x32xf32>
    %906 = arith.subf %898, %905 : vector<8x32xf32>
    %907 = arith.mulf %906, %906 : vector<8x32xf32>
    %cst_302 = arith.constant dense<0.000000e+00> : vector<8xf32>
    %908 = vector.multi_reduction <add>, %907, %cst_302 [1] : vector<8x32xf32> to vector<8xf32>
    %909 = vector.shape_cast %908 : vector<8xf32> to vector<8x1xf32>
    %cst_303 = arith.constant 3.200000e+01 : f32
    %910 = vector.broadcast %cst_303 : f32 to vector<8x1xf32>
    %911 = arith.divf %909, %910 : vector<8x1xf32>
    %cst_304 = arith.constant 9.99999974E-6 : f32
    %912 = vector.broadcast %cst_304 : f32 to vector<8x1xf32>
    %913 = arith.addf %911, %912 : vector<8x1xf32>
    %914 = math.rsqrt %913 : vector<8x1xf32>
    %915 = vector.broadcast %914 : vector<8x1xf32> to vector<8x32xf32>
    %916 = arith.mulf %906, %915 : vector<8x32xf32>
    %917 = vector.broadcast %899 : vector<1x32xf32> to vector<8x32xf32>
    %918 = arith.mulf %916, %917 : vector<8x32xf32>
    %919 = vector.broadcast %900 : vector<1x32xf32> to vector<8x32xf32>
    %920 = arith.addf %918, %919 : vector<8x32xf32>
    %c768 = arith.constant 768 : index
    %c0_305 = arith.constant 0 : index
    %921 = vector.load %arg4[%c768, %c0_305] : memref<800x128xf32, #tpu.memory_space<vmem>>, vector<32x128xf32>
    %cst_306 = arith.constant dense<0.000000e+00> : vector<8x128xf32>
    %922 = tpu.matmul %920, %921, %cst_306 {dimension_numbers = #tpu.dot_dimension_numbers<[1], [0], [0], [1], [0, 0, 1, 1], [], []>} : vector<8x32xf32>, vector<32x128xf32>, vector<8x128xf32> -> vector<8x128xf32>
    %c44 = arith.constant 44 : index
    %c0_307 = arith.constant 0 : index
    %923 = vector.load %arg5[%c44, %c0_307] : memref<48x128xf32, #tpu.memory_space<vmem>>, vector<1x128xf32>
    %924 = vector.broadcast %923 : vector<1x128xf32> to vector<8x128xf32>
    %925 = arith.addf %922, %924 : vector<8x128xf32>
    %c0_308 = arith.constant 0 : index
    %c0_309 = arith.constant 0 : index
    %926 = vector.load %arg6[%c0_308, %c0_309] : memref<8x128xf32, #tpu.memory_space<vmem>>, vector<8x128xf32>
    tpu.vector_store %arg6[%c0_308, %c0_309], %925 {strides = array<i32>} : memref<8x128xf32, #tpu.memory_space<vmem>>, vector<8x128xf32>,
    return
  }
}

</mosaic_0001>

<bundles_post_ra>
// kernel: rule_generator_forward.1
= control target key start
LH: loop header
LB: loop body
LE: loop exit
PB: predicated region body
PF: predicated region fallthrough
CT: control target
= control target key end

     0   :  { %11 = vsyncpa [#allocation3], 0  ;;  %s9937_s0 = inlined_call_operand.vmem [shape: f32[16,32], index: 0, kind: input, shape index: {}]   ;;  %s9938_s1 = inlined_call_operand.vmem [shape: f32[6,6], index: 1, kind: input, shape index: {}]   ;;  %s9939_s2 = inlined_call_operand.vmem [shape: f32[8,8], index: 2, kind: input, shape index: {}]   ;;  %s9940_s3 = inlined_call_operand.vmem [shape: f32[8,6], index: 3, kind: input, shape index: {}]   ;;  %s9941_s4 = inlined_call_operand.hbm [shape: f32[800,128], index: 4, kind: input, shape index: {}]   ;;  %s9942_s5 = inlined_call_operand.vmem [shape: f32[48,128], index: 5, kind: input, shape index: {}]   ;;  %s9943_s6 = inlined_call_operand.hbm [shape: f32[8,128], index: 6, kind: output, shape index: {}]  }
   0x1   :  { %12 = vsyncpa [#allocation4], 0  ;;  %s8982_s21 = smov [#allocation2]   ;;  %s8934_s25 = scalar_lea.hbm %s9941_s4, 12800 }
   0x2   :  { %s26_s22 = sshll.u32 %s8982_s21, 4  ;;  %p8935_p0 = scmp.ne.s32.totalorder %s9941_s4, %s8934_s25  ;;  %s27_s22 = int_to_ptr.vmem [resolvable:$true] %s26_s22 }
   0x3   :  { %p8938_p1 = scmp.lt.u32.totalorder %s8934_s25, %s9941_s4 }
   0x5   :  { %p8940_p2 = pnand %p8938_p1, %p8935_p0 }
   0x7   :  { %8943 = shalt.err (!%p8940_p2)
}
   0x8   :  { %s8944_s30 = scalar_lea.vmem %s27_s22, 12800  ;;  %p8949_p4 = scmp.lt.s32.totalorder %s27_s22, %s27_s22 }
   0x9   :  { %p8945_p3 = scmp.ne.s32.totalorder %s27_s22, %s8944_s30  ;;  %p8950_p5 = scmp.lt.s32.totalorder %s8944_s30, %s8944_s30 }
   0xb   :  { %p8951_p6 = por %p8950_p5, %p8949_p4 }
   0xd   :  { %p8952_p7 = pnand %p8951_p6, %p8945_p3 }
   0xf   :  { %8955 = shalt.err (!%p8952_p7)
}
  0x10   :  { %s8983_s7 = smov 128   ;;  %s8984_s8 = smov 8  }
  0x11   :  { %32 = dma.hbm_to_vmem [thread:$0]  %s9941_s4, 12800, %s27_s22, [#allocation3], %s8983_s7, %s8983_s7, %s8984_s8  }
  0x12   :  { %8978 = dma.done.wait [#allocation3], 12800  }
  0x13   :  { %8979 = vsyncadd [#allocation3], 4294954496  ;;  %v8985_v0 = vmov 0.0|0.0   ;;  %vm8986_vm0 = vmmov 0   ;;  %v8987_v1 = vmov 0.0   ;;  %v43_v2 = vld [vmem:[#allocation2] sm:$0xff] }
  0x14   :  { %8648 = vmatprep.subr.bf16.mxu0 %v8985_v0  ;;  %8077 = vmatprep.mubr.msk.f32.mxu0 %vm8986_vm0, %v8987_v1  ;;  %v44_v3 = vld [vmem:[#allocation2 + $0x8] sm:$0xff]  ;;  %v45_v4 = vld [vmem:[#allocation2 + $0x10] sm:$0xff]  ;;  %v46_v6 = vld [vmem:[#allocation2 + $0x18] sm:$0xff]  ;;  %vm57_vm1 = vcmask 261120   ;;  %s8988_s14 = smov 120   ;;  %s8989_s15 = smov 96  }
  0x15   :  { %8080 = vmatprep.subr.mxu1 %v8987_v1  ;;  %8082 = vmatprep.mubr.msk.f32.mxu1 %vm8986_vm0, %v8987_v1  ;;  %v8649_v5 = vpack.c.bf16 %v44_v3, %v43_v2  ;;  %v8652_v7 = vpack.c.bf16 %v46_v6, %v45_v4  ;;  %v9057_v8 = vld [vmem:[%s9937_s0] sm:$0x3f]  ;;  %s8990_s16 = smov 88   ;;  %vm134_vm2 = vcmask 64512   ;;  %vm211_vm3 = vcmask 46080   ;;  %s8992_s19 = smov 64  }
  0x16   :  { %v7650_v9 = vld [vmem:[%s9942_s5] ss:$0 sm:$0xff]  ;;  %s8993_s20 = smov 80   ;;  %s8994_s21 = smov 112   ;;  %v49_v37 = vld [vmem:[#allocation2 + $0x28] sm:$0xff]  ;;  %vm229_vm4 = vcmask 1045504  }
  0x17   :  { %8650 = vmatpush3.bf16.msra.mxu0 %v8649_v5  ;;  %v9089_v17 = vld [vmem:[%s9938_s1] sm:$0x3f]  ;;  %s8991_s1 = smov 56   ;;  %vm225_vm5 = vcmask 48128   ;;  %s8995_s22 = smov 72   ;;  %vm1108_vm6 = vcmask 259072  }
  0x18   :  { %8651 = vmatprep.subr.bf16.mxu0 %v8985_v0  ;;  %v48_v46 = vld [vmem:[#allocation2 + $0x20] sm:$0xff]  ;;  %s8996_s23 = smov 104   ;;  %s8997_s24 = smov 48   ;;  %vm1229_vm7 = vcmask 523264  }
  0x19   :  { %s8998_s25 = smov 40  }
  0x1b   :  { %8653 = vmatpush3.bf16.msra.mxu0 %v8652_v7 }
  0x1c   :  { %8090 = vmatprep.subr.mxu0 %v8987_v1 }
  0x1e   :  { %8078 = vmatmul.mubr.msk.f32.vlgmr.msra.gmra.mrb[0].mxu0 %vm57_vm1, %v9057_v8 }
  0x1f   :  { %8092 = vmatprep.mubr.msk.f32.mxu0 %vm8986_vm0, %v8987_v1 }
  0xf1   :  { %v127_v10 = vpop.f32.mrb[0].mxu0 }
  0xf2   :  { %v9067_v11 = vadd.f32 %v7650_v9, %v127_v10  ;;  %v8079_v12 = vpop.f32.mrb[1].mxu0 }
  0xf4   :  { %302 = vrot.lane.b32.xlu1 %v9067_v11, %s8988_s14  ;;  %132 = vrot.lane.b32.xlu0 %v9067_v11, %s8989_s15 }
  0xf8   :  { %304 = vrot.lane.b32.xlu0 %v9067_v11, %s8990_s16 }
 0x166   :  { %v133_v13 = vpop.permute.xlu0 %132  ;;  %v303_v15 = vpop.permute.xlu1 %302 }
 0x167   :  { %8081 = vmatpush3.xpose.msk.msra.mxu1 %vm134_vm2, %v133_v13 }
 0x168   :  { %8085 = vmatprep.subr.mxu1 %v8987_v1 }
 0x16a   :  { %8083 = vmatmul.mubr.msk.f32.vlgmr.msra.gmra.mrb[0].mxu1 %vm134_vm2, %v9067_v11  ;;  %v305_v14 = vpop.permute.xlu0 %304 }
 0x16b   :  { %8091 = vmatpush3.xpose.msk.msra.mxu0 %vm134_vm2, %v305_v14  ;;  %8087 = vmatprep.mubr.msk.f32.mxu1 %vm8986_vm0, %v8987_v1  ;;  %v50_v14 = vld [vmem:[#allocation2 + $0x30] sm:$0xff] }
 0x16c   :  { %8100 = vmatprep.subr.mxu0 %v8987_v1 }
 0x16e   :  { %8093 = vmatmul.mubr.msk.f32.vlgmr.msra.gmra.mrb[2].mxu0 %vm134_vm2, %v303_v15 }
 0x16f   :  { %8102 = vmatprep.mubr.msk.f32.mxu0 %vm8986_vm0, %v8987_v1  ;;  %8101 = vmatpush3.msra.mxu0 %v49_v37  ;;  %v7672_v37 = vld [vmem:[%s9942_s5 + $0x1] ss:$0 sm:$0xff] }
 0x170   :  { %8110 = vmatprep.subr.mxu0 %v8987_v1 }
 0x23d   :  { %v205_v16 = vpop.f32.mrb[0].mxu1 }
 0x23e   :  { %v209_v18 = vmul.f32 0.35355338, %v205_v16  ;;  %v8084_v19 = vpop.f32.mrb[1].mxu1 }
 0x240   :  { %v210_v20 = vadd.f32 %v209_v18, %v9089_v17 }
 0x241   :  { %v376_v21 = vpop.f32.mrb[2].mxu0 }
 0x242   :  { %v380_v22 = vmul.f32 0.35355338, %v376_v21  ;;  %v8094_v23 = vpop.f32.mrb[3].mxu0  ;;  %v212_v24 = vsel %vm211_vm3, %v210_v20, -inf }
 0x243   :  { %213 = vmax.xlane.f32.xlu1 %v212_v24 }
 0x244   :  { %v381_v25 = vadd.f32 %v380_v22, %v9089_v17 }
 0x246   :  { %v382_v26 = vsel %vm211_vm3, %v381_v25, -inf }
 0x247   :  { %383 = vmax.xlane.f32.xlu0 %v382_v26 }
 0x2d0   :  { %v214_v27 = vpop.xlane.xlu1 %213 }
 0x2d1   :  { %v215_v28 = vsub.f32 %v210_v20, %v214_v27 }
 0x2d3   :  { %v216_v29 = vmul.f32 1.442695, %v215_v28 }
 0x2d4   :  { %v384_v30 = vpop.xlane.xlu0 %383 }
 0x2d5   :  { %8812 = vpow2.f32 %v216_v29  ;;  %v385_v31 = vsub.f32 %v381_v25, %v384_v30  ;;  %v51_v29 = vld [vmem:[#allocation2 + $0x38] sm:$0xff] }
 0x2d7   :  { %v386_v32 = vmul.f32 1.442695, %v385_v31 }
 0x2d9   :  { %8814 = vpow2.f32 %v386_v32 }
 0x2df   :  { %v8813_v33 = vpop.eup %8812 }
 0x2e0   :  { %v218_v34 = vsel %vm211_vm3, %v8813_v33, 0.0 }
 0x2e1   :  { %219 = vadd.xlane.f32.xlu0 %v218_v34 }
 0x2e3   :  { %v8815_v35 = vpop.eup %8814 }
 0x2e4   :  { %v388_v36 = vsel %vm211_vm3, %v8815_v35, 0.0 }
 0x2e5   :  { %389 = vadd.xlane.f32.xlu1 %v388_v36 }
 0x2f6   :  { %393 = vrot.lane.b32.xlu1 %v9067_v11, %s8991_s1 }
 0x2f7   :  { %223 = vrot.lane.b32.xlu0 %v9067_v11, %s8992_s19 }
 0x2fa   :  { %618 = vrot.lane.b32.xlu1 %v9067_v11, %s8993_s20 }
 0x2fb   :  { %616 = vrot.lane.b32.xlu0 %v9067_v11, %s8994_s21 }
 0x36e   :  { %v220_v38 = vpop.xlane.xlu0 %219 }
 0x36f   :  { %8816 = vrcp.f32 %v220_v38 }
 0x372   :  { %v390_v39 = vpop.xlane.xlu1 %389  ;;  %v224_v40 = vpop.permute.xlu0 %223 }
 0x373   :  { %8818 = vrcp.f32 %v390_v39  ;;  %8086 = vmatpush3.msk.msra.mxu1 %vm229_vm4, %v224_v40 }
 0x374   :  { %8095 = vmatprep.subr.mxu1 %v8987_v1 }
 0x376   :  { %v394_v43 = vpop.permute.xlu1 %393  ;;  %v617_v52 = vpop.permute.xlu0 %616 }
 0x379   :  { %v8817_v41 = vpop.eup %8816 }
 0x37a   :  { %v222_v42 = vmul.f32 %v8817_v41, %v8813_v33  ;;  %v619_v50 = vpop.permute.xlu1 %618 }
 0x37c   :  { %8088 = vmatmul.mubr.msk.f32.vlgmr.msra.gmra.mrb[2].mxu1 %vm225_vm5, %v222_v42 }
 0x37d   :  { %v8819_v44 = vpop.eup %8818  ;;  %8096 = vmatpush3.msk.msra.mxu1 %vm229_vm4, %v394_v43  ;;  %8097 = vmatprep.mubr.msk.f32.mxu1 %vm8986_vm0, %v8987_v1 }
 0x37e   :  { %v392_v45 = vmul.f32 %v8819_v44, %v8815_v35  ;;  %8105 = vmatprep.subr.mxu1 %v8987_v1 }
 0x380   :  { %8098 = vmatmul.mubr.msk.f32.vlgmr.msra.gmra.mrb[4].mxu1 %vm225_vm5, %v392_v45 }
 0x381   :  { %8107 = vmatprep.mubr.msk.f32.mxu1 %vm8986_vm0, %v8987_v1  ;;  %8106 = vmatpush3.msra.mxu1 %v48_v46 }
 0x382   :  { %8115 = vmatprep.subr.mxu1 %v8987_v1 }
 0x44f   :  { %v298_v47 = vpop.f32.mrb[2].mxu1 }
 0x450   :  { %v8089_v48 = vpop.f32.mrb[3].mxu1  ;;  %8108 = vmatmul.mubr.msk.f32.vlgmr.msra.gmra.mrb[6].mxu1 %vm134_vm2, %v298_v47 }
 0x451   :  { %8117 = vmatprep.mubr.msk.f32.mxu1 %vm8986_vm0, %v8987_v1 }
 0x453   :  { %v466_v49 = vpop.f32.mrb[4].mxu1 }
 0x454   :  { %v8099_v51 = vpop.f32.mrb[5].mxu1  ;;  %8103 = vmatmul.mubr.msk.f32.vlgmr.msra.gmra.mrb[4].mxu0 %vm134_vm2, %v466_v49  ;;  %v1133_v49 = vld [vmem:[#allocation2 + $0x40] sm:$0xff] }
 0x455   :  { %8111 = vmatpush3.xpose.msk.msra.mxu0 %vm134_vm2, %v619_v50  ;;  %8112 = vmatprep.mubr.msk.f32.mxu0 %vm8986_vm0, %v8987_v1  ;;  %v1134_v50 = vld [vmem:[#allocation2 + $0x48] sm:$0xff] }
 0x456   :  { %8120 = vmatprep.subr.mxu0 %v8987_v1  ;;  %v8655_v51 = vpack.c.bf16 %v1134_v50, %v1133_v49 }
 0x458   :  { %8113 = vmatmul.mubr.msk.f32.vlgmr.msra.gmra.mrb[6].mxu0 %vm134_vm2, %v617_v52  ;;  %v1135_v52 = vld [vmem:[#allocation2 + $0x50] sm:$0xff] }
 0x459   :  { %8122 = vmatprep.mubr.msk.f32.mxu0 %vm8986_vm0, %v8987_v1  ;;  %8121 = vmatpush3.msra.mxu0 %v50_v14 }
 0x45a   :  { %8130 = vmatprep.subr.mxu0 %v8987_v1 }
 0x523   :  { %v612_v53 = vpop.f32.mrb[6].mxu1 }
 0x524   :  { %v8109_v54 = vpop.f32.mrb[7].mxu1 }
 0x527   :  { %v539_v55 = vpop.f32.mrb[4].mxu0 }
 0x528   :  { %v9128_v56 = vadd.f32 %v612_v53, %v539_v55  ;;  %v8104_v57 = vpop.f32.mrb[5].mxu0  ;;  %v1136_v53 = vld [vmem:[#allocation2 + $0x58] sm:$0xff]  ;;  %v1217_v55 = vld [vmem:[#allocation2 + $0x68] sm:$0xff] }
 0x529   :  { %v8658_v54 = vpack.c.bf16 %v1136_v53, %v1135_v52 }
 0x52b   :  { %v690_v58 = vpop.f32.mrb[6].mxu0 }
 0x52c   :  { %v694_v59 = vmul.f32 0.35355338, %v690_v58  ;;  %v8114_v60 = vpop.f32.mrb[7].mxu0  ;;  %v1219_v58 = vld [vmem:[#allocation2 + $0x78] sm:$0xff] }
 0x52d   :  { %v1220_v60 = vld [vmem:[#allocation2 + $0x80] sm:$0xff] }
 0x52e   :  { %v695_v61 = vadd.f32 %v694_v59, %v9089_v17 }
 0x530   :  { %v696_v62 = vsel %vm211_vm3, %v695_v61, -inf }
 0x531   :  { %697 = vmax.xlane.f32.xlu1 %v696_v62 }
 0x542   :  { %860 = vrot.lane.b32.xlu1 %v9067_v11, %s8995_s22 }
 0x546   :  { %858 = vrot.lane.b32.xlu1 %v9067_v11, %s8996_s23 }
 0x5be   :  { %v698_v63 = vpop.xlane.xlu1 %697 }
 0x5bf   :  { %v699_v2 = vsub.f32 %v695_v61, %v698_v63  ;;  %v1221_v61 = vld [vmem:[#allocation2 + $0x88] sm:$0xff] }
 0x5c0   :  { %v8667_v62 = vpack.c.bf16 %v1221_v61, %v1220_v60 }
 0x5c1   :  { %v700_v3 = vmul.f32 1.442695, %v699_v2 }
 0x5c2   :  { %v861_v10 = vpop.permute.xlu1 %860 }
 0x5c3   :  { %8820 = vpow2.f32 %v700_v3 }
 0x5c6   :  { %v859_v13 = vpop.permute.xlu1 %858 }
 0x5cd   :  { %v8821_v4 = vpop.eup %8820 }
 0x5ce   :  { %v702_v5 = vsel %vm211_vm3, %v8821_v4, 0.0 }
 0x5cf   :  { %703 = vadd.xlane.f32.xlu0 %v702_v5  ;;  %v7673_v5 = vld [vmem:[%s9942_s5 + $0x2] ss:$0 sm:$0xff] }
 0x5e5   :  { %707 = vrot.lane.b32.xlu0 %v9067_v11, %s8997_s24 }
 0x65c   :  { %v704_v6 = vpop.xlane.xlu0 %703 }
 0x65d   :  { %8822 = vrcp.f32 %v704_v6 }
 0x660   :  { %v708_v7 = vpop.permute.xlu0 %707 }
 0x661   :  { %8116 = vmatpush3.msk.msra.mxu1 %vm229_vm4, %v708_v7  ;;  %v7674_v7 = vld [vmem:[%s9942_s5 + $0x3] ss:$0 sm:$0xff] }
 0x662   :  { %8125 = vmatprep.subr.mxu1 %v8987_v1 }
 0x667   :  { %v8823_v9 = vpop.eup %8822 }
 0x668   :  { %v706_v12 = vmul.f32 %v8823_v9, %v8821_v4 }
 0x66a   :  { %8118 = vmatmul.mubr.msk.f32.vlgmr.msra.gmra.mrb[8].mxu1 %vm225_vm5, %v706_v12  ;;  %v1222_v12 = vld [vmem:[#allocation2 + $0x90] sm:$0xff] }
 0x66b   :  { %8126 = vmatpush3.xpose.msk.msra.mxu1 %vm134_vm2, %v861_v10  ;;  %8127 = vmatprep.mubr.msk.f32.mxu1 %vm8986_vm0, %v8987_v1 }
 0x66c   :  { %8135 = vmatprep.subr.mxu1 %v8987_v1 }
 0x66e   :  { %8128 = vmatmul.mubr.msk.f32.vlgmr.msra.gmra.mrb[10].mxu1 %vm134_vm2, %v859_v13  ;;  %v1223_v13 = vld [vmem:[#allocation2 + $0x98] sm:$0xff] }
 0x66f   :  { %8137 = vmatprep.mubr.msk.f32.mxu1 %vm8986_vm0, %v8987_v1  ;;  %8136 = vmatpush3.msra.mxu1 %v51_v29  ;;  %v8670_v14 = vpack.c.bf16 %v1223_v13, %v1222_v12  ;;  %v1335_v12 = vld [vmem:[#allocation2 + $0xc8] sm:$0xff] }
 0x670   :  { %8660 = vmatprep.subr.bf16.mxu1 %v8985_v0 }
 0x73d   :  { %v780_v15 = vpop.f32.mrb[8].mxu1 }
 0x73e   :  { %v8119_v16 = vpop.f32.mrb[9].mxu1  ;;  %8123 = vmatmul.mubr.msk.f32.vlgmr.msra.gmra.mrb[8].mxu0 %vm134_vm2, %v780_v15  ;;  %v7675_v15 = vld [vmem:[%s9942_s5 + $0x4] ss:$0 sm:$0xff] }
 0x73f   :  { %8132 = vmatprep.mubr.msk.f32.mxu0 %vm8986_vm0, %v8987_v1 }
 0x741   :  { %v932_v18 = vpop.f32.mrb[10].mxu1 }
 0x742   :  { %v936_v19 = vmul.f32 0.35355338, %v932_v18  ;;  %v8129_v20 = vpop.f32.mrb[11].mxu1 }
 0x744   :  { %v937_v21 = vadd.f32 %v936_v19, %v9089_v17 }
 0x746   :  { %v938_v22 = vsel %vm211_vm3, %v937_v21, -inf }
 0x747   :  { %939 = vmax.xlane.f32.xlu0 %v938_v22 }
 0x75d   :  { %949 = vrot.lane.b32.xlu0 %v9067_v11, %s8998_s25 }
 0x7d4   :  { %v940_v23 = vpop.xlane.xlu0 %939 }
 0x7d5   :  { %v941_v24 = vsub.f32 %v937_v21, %v940_v23  ;;  %v7677_v21 = vld [vmem:[%s9942_s5 + $0x5] ss:$0 sm:$0xff] }
 0x7d7   :  { %v942_v25 = vmul.f32 1.442695, %v941_v24 }
 0x7d8   :  { %v950_v26 = vpop.permute.xlu0 %949 }
 0x7d9   :  { %8824 = vpow2.f32 %v942_v25  ;;  %8131 = vmatpush3.msk.msra.mxu0 %vm229_vm4, %v950_v26 }
 0x7da   :  { %8654 = vmatprep.subr.bf16.mxu0 %v8985_v0 }
 0x7e3   :  { %v8825_v27 = vpop.eup %8824 }
 0x7e4   :  { %v944_v28 = vsel %vm211_vm3, %v8825_v27, 0.0 }
 0x7e5   :  { %945 = vadd.xlane.f32.xlu1 %v944_v28 }
 0x811   :  { %v853_v30 = vpop.f32.mrb[8].mxu0 }
 0x812   :  { %v857_v11 = vadd.f32 %v853_v30, %v9128_v56  ;;  %v8124_v31 = vpop.f32.mrb[9].mxu0  ;;  %v1218_v56 = vld [vmem:[#allocation2 + $0x70] sm:$0xff] }
 0x813   :  { %v8664_v59 = vpack.c.bf16 %v1219_v58, %v1218_v56  ;;  %v1329_v31 = vld [vmem:[#allocation2 + $0xa0] sm:$0xff] }
 0x872   :  { %v946_v32 = vpop.xlane.xlu1 %945 }
 0x873   :  { %8826 = vrcp.f32 %v946_v32  ;;  %v1330_v32 = vld [vmem:[#allocation2 + $0xa8] sm:$0xff] }
 0x87d   :  { %v8827_v33 = vpop.eup %8826 }
 0x87e   :  { %v948_v34 = vmul.f32 %v8827_v33, %v8825_v27  ;;  %v8673_v33 = vpack.c.bf16 %v1330_v32, %v1329_v31 }
 0x880   :  { %8133 = vmatmul.mubr.msk.f32.vlgmr.msra.gmra.mrb[10].mxu0 %vm225_vm5, %v948_v34  ;;  %v1331_v34 = vld [vmem:[#allocation2 + $0xb0] sm:$0xff] }
 0x881   :  { %8148 = vmatprep.mubr.msk.f32.mxu0 %vm8986_vm0, %v8987_v1  ;;  %8656 = vmatpush3.bf16.msra.mxu0 %v8655_v51 }
 0x882   :  { %8657 = vmatprep.subr.bf16.mxu0 %v8985_v0 }
 0x885   :  { %8659 = vmatpush3.bf16.msra.mxu0 %v8658_v54 }
 0x886   :  { %8672 = vmatprep.subr.bf16.mxu0 %v8985_v0 }
 0x953   :  { %v1022_v35 = vpop.f32.mrb[10].mxu0 }
 0x954   :  { %v8134_v36 = vpop.f32.mrb[11].mxu0  ;;  %8138 = vmatmul.mubr.msk.f32.vlgmr.msra.gmra.mrb[12].mxu1 %vm134_vm2, %v1022_v35  ;;  %v1332_v35 = vld [vmem:[#allocation2 + $0xb8] sm:$0xff] }
 0x955   :  { %8167 = vmatprep.mubr.msk.f32.mxu1 %vm8986_vm0, %v8987_v1  ;;  %v8676_v36 = vpack.c.bf16 %v1332_v35, %v1331_v34 }
 0xa27   :  { %v1095_v38 = vpop.f32.mrb[12].mxu1 }
 0xa28   :  { %v1099_v39 = vadd.f32 %v1095_v38, %v857_v11  ;;  %v8139_v40 = vpop.f32.mrb[13].mxu1 }
 0xa2a   :  { %v1104_v41 = vadd.f32 %v7672_v37, %v1099_v39 }
 0xa2c   :  { %v1105_v42 = vadd.f32 %v1104_v41, %v9057_v8  ;;  %v1216_v8 = vld [vmem:[#allocation2 + $0x60] sm:$0xff] }
 0xa2d   :  { %v8661_v57 = vpack.c.bf16 %v1217_v55, %v1216_v8  ;;  %v7679_v41 = vld [vmem:[%s9942_s5 + $0x6] ss:$0 sm:$0xff] }
 0xa2e   :  { %v1109_v43 = vsel %vm1108_vm6, %v1105_v42, 0.0 }
 0xa2f   :  { %1110 = vadd.xlane.f32.xlu1 %v1109_v43  ;;  %8662 = vmatpush3.bf16.msra.mxu1 %v8661_v57  ;;  %v7680_v43 = vld [vmem:[%s9942_s5 + $0x7] ss:$0 sm:$0xff] }
 0xa30   :  { %8663 = vmatprep.subr.bf16.mxu1 %v8985_v0 }
 0xa33   :  { %8665 = vmatpush3.bf16.msra.mxu1 %v8664_v59 }
 0xa34   :  { %8666 = vmatprep.subr.bf16.mxu1 %v8985_v0 }
 0xa37   :  { %8668 = vmatpush3.bf16.msra.mxu1 %v8667_v62 }
 0xa38   :  { %8669 = vmatprep.subr.bf16.mxu1 %v8985_v0 }
 0xa3b   :  { %8671 = vmatpush3.bf16.msra.mxu1 %v8670_v14 }
 0xa3c   :  { %8186 = vmatprep.subr.mxu1 %v8987_v1 }
 0xabc   :  { %v1111_v44 = vpop.xlane.xlu1 %1110 }
 0xabd   :  { %v1113_v45 = vmul.f32 0.03125, %v1111_v44 }
 0xabf   :  { %v1114_v46 = vsub.f32 %v1105_v42, %v1113_v45 }
 0xac1   :  { %v1115_v47 = vmul.f32 %v1114_v46, %v1114_v46 }
 0xac3   :  { %v1116_v48 = vsel %vm1108_vm6, %v1115_v47, 0.0 }
 0xac4   :  { %1117 = vadd.xlane.f32.xlu1 %v1116_v48 }
 0xb51   :  { %v1118_v63 = vpop.xlane.xlu1 %1117 }
 0xb52   :  { %v1119_v2 = vmul.f32 0.03125, %v1118_v63 }
 0xb54   :  { %v1120_v3 = vadd.f32 1e-05, %v1119_v2 }
 0xb56   :  { %8828 = vrsqrt.f32 %v1120_v3 }
 0xb60   :  { %v8829_v4 = vpop.eup %8828 }
 0xb61   :  { %v1122_v6 = vmul.f32 %v8829_v4, %v1114_v46  ;;  %v7681_v46 = vld [vmem:[%s9942_s5 + $0x8] ss:$0 sm:$0xff] }
 0xb63   :  { %v1127_v9 = vmul.f32 %v7673_v5, %v1122_v6 }
 0xb65   :  { %v1132_v10 = vadd.f32 %v7674_v7, %v1127_v9 }
 0xb67   :  { %8149 = vmatmul.mubr.msk.f32.vlgmr.msra.gmra.mrb[12].mxu0 %vm57_vm1, %v1132_v10 }
 0xb68   :  { %8178 = vmatprep.mubr.msk.f32.mxu0 %vm8986_vm0, %v8987_v1  ;;  %8674 = vmatpush3.bf16.msra.mxu0 %v8673_v33 }
 0xb69   :  { %8675 = vmatprep.subr.bf16.mxu0 %v8985_v0 }
 0xb6c   :  { %8677 = vmatpush3.bf16.msra.mxu0 %v8676_v36 }
 0xb6d   :  { %8181 = vmatprep.subr.mxu0 %v8987_v1 }
 0xc3a   :  { %v1211_v16 = vpop.f32.mrb[12].mxu0 }
 0xc3b   :  { %v1212_v18 = vadd.f32 %v7675_v15, %v1211_v16  ;;  %v8150_v19 = vpop.f32.mrb[13].mxu0 }
 0xc3d   :  { %v1215_v20 = vmax.f32 %v1212_v18, 0.0 }
 0xc3f   :  { %8168 = vmatmul.mubr.msk.f32.vlgmr.msra.gmra.mrb[14].mxu1 %vm1229_vm7, %v1215_v20 }
 0xc40   :  { %8188 = vmatprep.mubr.msk.f32.mxu1 %vm8986_vm0, %v8987_v1 }
 0xd12   :  { %v1299_v22 = vpop.f32.mrb[14].mxu1 }
 0xd13   :  { %v1300_v23 = vadd.f32 %v7677_v21, %v1299_v22  ;;  %v8169_v24 = vpop.f32.mrb[15].mxu1  ;;  %v1334_v22 = vld [vmem:[#allocation2 + $0xc0] sm:$0xff] }
 0xd15   :  { %v1303_v25 = vadd.f32 %v1300_v23, %v1132_v10 }
 0xd17   :  { %v1306_v26 = vsel %vm1108_vm6, %v1303_v25, 0.0 }
 0xd18   :  { %1307 = vadd.xlane.f32.xlu1 %v1306_v26 }
 0xda5   :  { %v1308_v27 = vpop.xlane.xlu1 %1307 }
 0xda6   :  { %v1309_v28 = vmul.f32 0.03125, %v1308_v27 }
 0xda8   :  { %v1310_v29 = vsub.f32 %v1303_v25, %v1309_v28 }
 0xdaa   :  { %v1311_v30 = vmul.f32 %v1310_v29, %v1310_v29 }
 0xdac   :  { %v1312_v11 = vsel %vm1108_vm6, %v1311_v30, 0.0 }
 0xdad   :  { %1313 = vadd.xlane.f32.xlu1 %v1312_v11 }
 0xe3a   :  { %v1314_v37 = vpop.xlane.xlu1 %1313 }
 0xe3b   :  { %v1315_v38 = vmul.f32 0.03125, %v1314_v37 }
 0xe3d   :  { %v1316_v39 = vadd.f32 1e-05, %v1315_v38 }
 0xe3f   :  { %8830 = vrsqrt.f32 %v1316_v39 }
 0xe49   :  { %v8831_v40 = vpop.eup %8830 }
 0xe4a   :  { %v1318_v42 = vmul.f32 %v8831_v40, %v1310_v29 }
 0xe4c   :  { %v1323_v44 = vmul.f32 %v7679_v41, %v1318_v42 }
 0xe4e   :  { %v9208_v45 = vadd.f32 %v7680_v43, %v1323_v44 }
 0xe50   :  { %8179 = vmatmul.mubr.msk.f32.vlgmr.msra.gmra.mrb[14].mxu0 %vm57_vm1, %v9208_v45 }
 0xe51   :  { %8183 = vmatprep.mubr.msk.f32.mxu0 %vm8986_vm0, %v8987_v1 }
 0xf23   :  { %v1412_v47 = vpop.f32.mrb[14].mxu0 }
 0xf24   :  { %v9217_v48 = vadd.f32 %v7681_v46, %v1412_v47  ;;  %v8180_v49 = vpop.f32.mrb[15].mxu0 }
 0xf26   :  { %1585 = vrot.lane.b32.xlu0 %v9217_v48, %s8990_s16  ;;  %1417 = vrot.lane.b32.xlu1 %v9217_v48, %s8989_s15 }
 0xf2a   :  { %1583 = vrot.lane.b32.xlu0 %v9217_v48, %s8988_s14 }
 0xf98   :  { %v1418_v50 = vpop.permute.xlu1 %1417  ;;  %v1586_v51 = vpop.permute.xlu0 %1585 }
 0xf99   :  { %8182 = vmatpush3.xpose.msk.msra.mxu0 %vm134_vm2, %v1418_v50 }
 0xf9a   :  { %8191 = vmatprep.subr.mxu0 %v8987_v1 }
 0xf9c   :  { %8184 = vmatmul.mubr.msk.f32.vlgmr.msra.gmra.mrb[16].mxu0 %vm134_vm2, %v9217_v48  ;;  %v1584_v52 = vpop.permute.xlu0 %1583 }
 0xf9d   :  { %8192 = vmatpush3.xpose.msk.msra.mxu0 %vm134_vm2, %v1586_v51  ;;  %8193 = vmatprep.mubr.msk.f32.mxu0 %vm8986_vm0, %v8987_v1  ;;  %v1336_v51 = vld [vmem:[#allocation2 + $0xd0] sm:$0xff] }
 0xf9e   :  { %8201 = vmatprep.subr.mxu0 %v8987_v1 }
 0xfa0   :  { %8194 = vmatmul.mubr.msk.f32.vlgmr.msra.gmra.mrb[18].mxu0 %vm134_vm2, %v1584_v52 }
 0xfa1   :  { %8203 = vmatprep.mubr.msk.f32.mxu0 %vm8986_vm0, %v8987_v1  ;;  %8202 = vmatpush3.msra.mxu0 %v1335_v12 }
 0xfa2   :  { %8211 = vmatprep.subr.mxu0 %v8987_v1 }
0x106f   :  { %v1489_v53 = vpop.f32.mrb[16].mxu0 }
0x1070   :  { %v1493_v54 = vmul.f32 0.35355338, %v1489_v53  ;;  %v8185_v8 = vpop.f32.mrb[17].mxu0 }
0x1072   :  { %v1494_v55 = vadd.f32 %v1493_v54, %v9089_v17 }
0x1073   :  { %v1657_v56 = vpop.f32.mrb[18].mxu0 }
0x1074   :  { %v1661_v57 = vmul.f32 0.35355338, %v1657_v56  ;;  %v8195_v58 = vpop.f32.mrb[19].mxu0  ;;  %v1495_v59 = vsel %vm211_vm3, %v1494_v55, -inf }
0x1075   :  { %1496 = vmax.xlane.f32.xlu0 %v1495_v59 }
0x1076   :  { %v1662_v60 = vadd.f32 %v1661_v57, %v9089_v17 }
0x1078   :  { %v1663_v61 = vsel %vm211_vm3, %v1662_v60, -inf }
0x1079   :  { %1664 = vmax.xlane.f32.xlu1 %v1663_v61 }
0x108a   :  { %1674 = vrot.lane.b32.xlu1 %v9217_v48, %s8991_s1 }
0x108e   :  { %1897 = vrot.lane.b32.xlu1 %v9217_v48, %s8994_s21 }
0x1102   :  { %v1497_v62 = vpop.xlane.xlu0 %1496 }
0x1103   :  { %v1498_v63 = vsub.f32 %v1494_v55, %v1497_v62 }
0x1105   :  { %v1499_v2 = vmul.f32 1.442695, %v1498_v63  ;;  %v1337_v63 = vld [vmem:[#allocation2 + $0xd8] sm:$0xff] }
0x1106   :  { %v1665_v3 = vpop.xlane.xlu1 %1664 }
0x1107   :  { %8832 = vpow2.f32 %v1499_v2  ;;  %v1666_v4 = vsub.f32 %v1662_v60, %v1665_v3 }
0x1109   :  { %v1667_v5 = vmul.f32 1.442695, %v1666_v4 }
0x110a   :  { %v1675_v19 = vpop.permute.xlu1 %1674 }
0x110b   :  { %8834 = vpow2.f32 %v1667_v5 }
0x110e   :  { %v1898_v28 = vpop.permute.xlu1 %1897 }
0x1111   :  { %v8833_v6 = vpop.eup %8832 }
0x1112   :  { %v1501_v7 = vsel %vm211_vm3, %v8833_v6, 0.0 }
0x1113   :  { %1502 = vadd.xlane.f32.xlu0 %v1501_v7 }
0x1115   :  { %v8835_v9 = vpop.eup %8834 }
0x1116   :  { %v1669_v10 = vsel %vm211_vm3, %v8835_v9, 0.0 }
0x1117   :  { %1670 = vadd.xlane.f32.xlu0 %v1669_v10  ;;  %v7703_v10 = vld [vmem:[%s9942_s5 + $0x9] ss:$0 sm:$0xff] }
0x112d   :  { %1506 = vrot.lane.b32.xlu0 %v9217_v48, %s8992_s19 }
0x1131   :  { %1899 = vrot.lane.b32.xlu0 %v9217_v48, %s8993_s20 }
0x11a0   :  { %v1503_v13 = vpop.xlane.xlu0 %1502 }
0x11a1   :  { %8836 = vrcp.f32 %v1503_v13 }
0x11a4   :  { %v1671_v14 = vpop.xlane.xlu0 %1670 }
0x11a5   :  { %8838 = vrcp.f32 %v1671_v14 }
0x11a8   :  { %v1507_v15 = vpop.permute.xlu0 %1506 }
0x11a9   :  { %8187 = vmatpush3.msk.msra.mxu1 %vm229_vm4, %v1507_v15 }
0x11aa   :  { %8196 = vmatprep.subr.mxu1 %v8987_v1 }
0x11ab   :  { %v8837_v16 = vpop.eup %8836 }
0x11ac   :  { %v1505_v18 = vmul.f32 %v8837_v16, %v8833_v6  ;;  %v1900_v26 = vpop.permute.xlu0 %1899 }
0x11ae   :  { %8189 = vmatmul.mubr.msk.f32.vlgmr.msra.gmra.mrb[16].mxu1 %vm225_vm5, %v1505_v18 }
0x11af   :  { %v8839_v20 = vpop.eup %8838  ;;  %8197 = vmatpush3.msk.msra.mxu1 %vm229_vm4, %v1675_v19  ;;  %8198 = vmatprep.mubr.msk.f32.mxu1 %vm8986_vm0, %v8987_v1 }
0x11b0   :  { %v1673_v21 = vmul.f32 %v8839_v20, %v8835_v9  ;;  %8206 = vmatprep.subr.mxu1 %v8987_v1 }
0x11b2   :  { %8199 = vmatmul.mubr.msk.f32.vlgmr.msra.gmra.mrb[18].mxu1 %vm225_vm5, %v1673_v21 }
0x11b3   :  { %8208 = vmatprep.mubr.msk.f32.mxu1 %vm8986_vm0, %v8987_v1  ;;  %8207 = vmatpush3.msra.mxu1 %v1334_v22 }
0x11b4   :  { %8216 = vmatprep.subr.mxu1 %v8987_v1 }
0x1281   :  { %v1579_v23 = vpop.f32.mrb[16].mxu1 }
0x1282   :  { %v8190_v24 = vpop.f32.mrb[17].mxu1  ;;  %8209 = vmatmul.mubr.msk.f32.vlgmr.msra.gmra.mrb[20].mxu1 %vm134_vm2, %v1579_v23 }
0x1283   :  { %8218 = vmatprep.mubr.msk.f32.mxu1 %vm8986_vm0, %v8987_v1  ;;  %v2412_v24 = vld [vmem:[#allocation2 + $0xe0] sm:$0xff] }
0x1285   :  { %v1747_v25 = vpop.f32.mrb[18].mxu1 }
0x1286   :  { %v8200_v27 = vpop.f32.mrb[19].mxu1  ;;  %8204 = vmatmul.mubr.msk.f32.vlgmr.msra.gmra.mrb[20].mxu0 %vm134_vm2, %v1747_v25  ;;  %v2413_v25 = vld [vmem:[#allocation2 + $0xe8] sm:$0xff] }
0x1287   :  { %8212 = vmatpush3.xpose.msk.msra.mxu0 %vm134_vm2, %v1900_v26  ;;  %8213 = vmatprep.mubr.msk.f32.mxu0 %vm8986_vm0, %v8987_v1  ;;  %v8679_v26 = vpack.c.bf16 %v2413_v25, %v2412_v24  ;;  %v2414_v27 = vld [vmem:[#allocation2 + $0xf0] sm:$0xff] }
0x1288   :  { %8221 = vmatprep.subr.mxu0 %v8987_v1 }
0x128a   :  { %8214 = vmatmul.mubr.msk.f32.vlgmr.msra.gmra.mrb[22].mxu0 %vm134_vm2, %v1898_v28  ;;  %v2415_v28 = vld [vmem:[#allocation2 + $0xf8] sm:$0xff] }
0x128b   :  { %8223 = vmatprep.mubr.msk.f32.mxu0 %vm8986_vm0, %v8987_v1  ;;  %8222 = vmatpush3.msra.mxu0 %v1336_v51  ;;  %v2634_v51 = vld [vmem:[#allocation2 + $0x150] sm:$0xff] }
0x128c   :  { %8231 = vmatprep.subr.mxu0 %v8987_v1 }
0x1355   :  { %v1893_v29 = vpop.f32.mrb[20].mxu1 }
0x1356   :  { %v8210_v30 = vpop.f32.mrb[21].mxu1 }
0x1357   :  { %v2496_v30 = vld [vmem:[#allocation2 + $0x108] sm:$0xff] }
0x1359   :  { %v1820_v11 = vpop.f32.mrb[20].mxu0 }
0x135a   :  { %v1894_v31 = vadd.f32 %v1893_v29, %v1820_v11  ;;  %v8205_v32 = vpop.f32.mrb[21].mxu0  ;;  %v8682_v29 = vpack.c.bf16 %v2415_v28, %v2414_v27  ;;  %v2497_v11 = vld [vmem:[#allocation2 + $0x110] sm:$0xff] }
0x135b   :  { %v2498_v32 = vld [vmem:[#allocation2 + $0x118] sm:$0xff] }
0x135d   :  { %v1971_v33 = vpop.f32.mrb[22].mxu0 }
0x135e   :  { %v1975_v34 = vmul.f32 0.35355338, %v1971_v33  ;;  %v8215_v35 = vpop.f32.mrb[23].mxu0  ;;  %v8688_v33 = vpack.c.bf16 %v2498_v32, %v2497_v11 }
0x135f   :  { %v2500_v35 = vld [vmem:[#allocation2 + $0x128] sm:$0xff] }
0x1360   :  { %v1976_v36 = vadd.f32 %v1975_v34, %v9089_v17  ;;  %v2499_v34 = vld [vmem:[#allocation2 + $0x120] sm:$0xff] }
0x1362   :  { %v1977_v37 = vsel %vm211_vm3, %v1976_v36, -inf }
0x1363   :  { %1978 = vmax.xlane.f32.xlu0 %v1977_v37 }
0x1379   :  { %1988 = vrot.lane.b32.xlu0 %v9217_v48, %s8997_s24 }
0x137d   :  { %2139 = vrot.lane.b32.xlu0 %v9217_v48, %s8996_s23 }
0x13f0   :  { %v1979_v38 = vpop.xlane.xlu0 %1978 }
0x13f1   :  { %v1980_v39 = vsub.f32 %v1976_v36, %v1979_v38  ;;  %v8691_v36 = vpack.c.bf16 %v2500_v35, %v2499_v34 }
0x13f3   :  { %v1981_v40 = vmul.f32 1.442695, %v1980_v39 }
0x13f4   :  { %v1989_v41 = vpop.permute.xlu0 %1988 }
0x13f5   :  { %8840 = vpow2.f32 %v1981_v40  ;;  %8217 = vmatpush3.msk.msra.mxu1 %vm229_vm4, %v1989_v41  ;;  %v7704_v41 = vld [vmem:[%s9942_s5 + $0xa] ss:$0 sm:$0xff] }
0x13f6   :  { %8226 = vmatprep.subr.mxu1 %v8987_v1 }
0x13f8   :  { %v2140_v50 = vpop.permute.xlu0 %2139 }
0x13ff   :  { %v8841_v42 = vpop.eup %8840 }
0x1400   :  { %v1983_v43 = vsel %vm211_vm3, %v8841_v42, 0.0 }
0x1401   :  { %1984 = vadd.xlane.f32.xlu1 %v1983_v43  ;;  %v2632_v43 = vld [vmem:[#allocation2 + $0x140] sm:$0xff] }
0x1412   :  { %2141 = vrot.lane.b32.xlu1 %v9217_v48, %s8995_s22 }
0x148e   :  { %v1985_v44 = vpop.xlane.xlu1 %1984 }
0x148f   :  { %8842 = vrcp.f32 %v1985_v44  ;;  %v2633_v44 = vld [vmem:[#allocation2 + $0x148] sm:$0xff] }
0x1492   :  { %v2142_v49 = vpop.permute.xlu1 %2141 }
0x1499   :  { %v8843_v46 = vpop.eup %8842 }
0x149a   :  { %v1987_v47 = vmul.f32 %v8843_v46, %v8841_v42  ;;  %v7705_v46 = vld [vmem:[%s9942_s5 + $0xb] ss:$0 sm:$0xff] }
0x149c   :  { %8219 = vmatmul.mubr.msk.f32.vlgmr.msra.gmra.mrb[22].mxu1 %vm225_vm5, %v1987_v47 }
0x149d   :  { %8227 = vmatpush3.xpose.msk.msra.mxu1 %vm134_vm2, %v2142_v49  ;;  %8228 = vmatprep.mubr.msk.f32.mxu1 %vm8986_vm0, %v8987_v1  ;;  %v8697_v49 = vpack.c.bf16 %v2633_v44, %v2632_v43 }
0x149e   :  { %8236 = vmatprep.subr.mxu1 %v8987_v1 }
0x14a0   :  { %8229 = vmatmul.mubr.msk.f32.vlgmr.msra.gmra.mrb[24].mxu1 %vm134_vm2, %v2140_v50 }
0x14a1   :  { %8238 = vmatprep.mubr.msk.f32.mxu1 %vm8986_vm0, %v8987_v1  ;;  %8237 = vmatpush3.msra.mxu1 %v1337_v63 }
0x14a2   :  { %8684 = vmatprep.subr.bf16.mxu1 %v8985_v0 }
0x156f   :  { %v2061_v52 = vpop.f32.mrb[22].mxu1 }
0x1570   :  { %v8220_v53 = vpop.f32.mrb[23].mxu1  ;;  %8224 = vmatmul.mubr.msk.f32.vlgmr.msra.gmra.mrb[24].mxu0 %vm134_vm2, %v2061_v52  ;;  %v2635_v52 = vld [vmem:[#allocation2 + $0x158] sm:$0xff] }
0x1571   :  { %8233 = vmatprep.mubr.msk.f32.mxu0 %vm8986_vm0, %v8987_v1  ;;  %v8700_v53 = vpack.c.bf16 %v2635_v52, %v2634_v51 }
0x1573   :  { %v2213_v54 = vpop.f32.mrb[24].mxu1 }
0x1574   :  { %v2217_v8 = vmul.f32 0.35355338, %v2213_v54  ;;  %v8230_v55 = vpop.f32.mrb[25].mxu1  ;;  %v9337_v54 = vld [vmem:[%s9937_s0 + $0x8] sm:$0xff] }
0x1575   :  { %v2502_v55 = vld [vmem:[#allocation2 + $0x138] sm:$0xff] }
0x1576   :  { %v2218_v56 = vadd.f32 %v2217_v8, %v9089_v17  ;;  %v2501_v8 = vld [vmem:[#allocation2 + $0x130] sm:$0xff] }
0x1578   :  { %v2219_v57 = vsel %vm211_vm3, %v2218_v56, -inf }
0x1579   :  { %2220 = vmax.xlane.f32.xlu1 %v2219_v57  ;;  %v7706_v57 = vld [vmem:[%s9942_s5 + $0xc] ss:$0 sm:$0xff] }
0x1606   :  { %v2221_v58 = vpop.xlane.xlu1 %2220 }
0x1607   :  { %v2222_v59 = vsub.f32 %v2218_v56, %v2221_v58  ;;  %v8694_v56 = vpack.c.bf16 %v2502_v55, %v2501_v8 }
0x1609   :  { %v2223_v60 = vmul.f32 1.442695, %v2222_v59 }
0x160b   :  { %8844 = vpow2.f32 %v2223_v60 }
0x1615   :  { %v8845_v61 = vpop.eup %8844 }
0x1616   :  { %v2225_v62 = vsel %vm211_vm3, %v8845_v61, 0.0 }
0x1617   :  { %2226 = vadd.xlane.f32.xlu0 %v2225_v62  ;;  %v7714_v62 = vld [vmem:[%s9942_s5 + $0x12] ss:$0 sm:$0xff] }
0x162d   :  { %2230 = vrot.lane.b32.xlu0 %v9217_v48, %s8998_s25 }
0x1643   :  { %v2134_v2 = vpop.f32.mrb[24].mxu0 }
0x1644   :  { %v2138_v17 = vadd.f32 %v2134_v2, %v1894_v31  ;;  %v8225_v3 = vpop.f32.mrb[25].mxu0 }
0x16a4   :  { %v2227_v4 = vpop.xlane.xlu0 %2226 }
0x16a5   :  { %8846 = vrcp.f32 %v2227_v4 }
0x16a8   :  { %v2231_v5 = vpop.permute.xlu0 %2230 }
0x16a9   :  { %8232 = vmatpush3.msk.msra.mxu0 %vm229_vm4, %v2231_v5 }
0x16aa   :  { %8678 = vmatprep.subr.bf16.mxu0 %v8985_v0 }
0x16af   :  { %v8847_v6 = vpop.eup %8846 }
0x16b0   :  { %v2229_v7 = vmul.f32 %v8847_v6, %v8845_v61 }
0x16b2   :  { %8234 = vmatmul.mubr.msk.f32.vlgmr.msra.gmra.mrb[26].mxu0 %vm225_vm5, %v2229_v7 }
0x16b3   :  { %8249 = vmatprep.mubr.msk.f32.mxu0 %vm8986_vm0, %v8987_v1  ;;  %8680 = vmatpush3.bf16.msra.mxu0 %v8679_v26 }
0x16b4   :  { %8681 = vmatprep.subr.bf16.mxu0 %v8985_v0 }
0x16b7   :  { %8683 = vmatpush3.bf16.msra.mxu0 %v8682_v29 }
0x16b8   :  { %8696 = vmatprep.subr.bf16.mxu0 %v8985_v0 }
0x1785   :  { %v2303_v48 = vpop.f32.mrb[26].mxu0 }
0x1786   :  { %v8235_v9 = vpop.f32.mrb[27].mxu0  ;;  %8239 = vmatmul.mubr.msk.f32.vlgmr.msra.gmra.mrb[26].mxu1 %vm134_vm2, %v2303_v48 }
0x1787   :  { %8268 = vmatprep.mubr.msk.f32.mxu1 %vm8986_vm0, %v8987_v1  ;;  %v9378_v9 = vld [vmem:[%s9939_s2] sm:$0xff] }
0x1859   :  { %v2376_v12 = vpop.f32.mrb[26].mxu1 }
0x185a   :  { %v2380_v13 = vadd.f32 %v2376_v12, %v2138_v17  ;;  %v8240_v14 = vpop.f32.mrb[27].mxu1 }
0x185c   :  { %v2385_v15 = vadd.f32 %v7703_v10, %v2380_v13 }
0x185e   :  { %v2386_v16 = vadd.f32 %v2385_v15, %v9208_v45  ;;  %v2495_v45 = vld [vmem:[#allocation2 + $0x100] sm:$0xff] }
0x185f   :  { %v8685_v31 = vpack.c.bf16 %v2496_v30, %v2495_v45  ;;  %v2638_v30 = vld [vmem:[#allocation2 + $0x168] sm:$0xff] }
0x1860   :  { %v2389_v18 = vsel %vm1108_vm6, %v2386_v16, 0.0 }
0x1861   :  { %2390 = vadd.xlane.f32.xlu1 %v2389_v18  ;;  %8686 = vmatpush3.bf16.msra.mxu1 %v8685_v31 }
0x1862   :  { %8687 = vmatprep.subr.bf16.mxu1 %v8985_v0 }
0x1865   :  { %8689 = vmatpush3.bf16.msra.mxu1 %v8688_v33 }
0x1866   :  { %8690 = vmatprep.subr.bf16.mxu1 %v8985_v0 }
0x1869   :  { %8692 = vmatpush3.bf16.msra.mxu1 %v8691_v36 }
0x186a   :  { %8693 = vmatprep.subr.bf16.mxu1 %v8985_v0 }
0x186d   :  { %8695 = vmatpush3.bf16.msra.mxu1 %v8694_v56 }
0x186e   :  { %8287 = vmatprep.subr.mxu1 %v8987_v1 }
0x18ee   :  { %v2391_v19 = vpop.xlane.xlu1 %2390 }
0x18ef   :  { %v2392_v20 = vmul.f32 0.03125, %v2391_v19 }
0x18f1   :  { %v2393_v21 = vsub.f32 %v2386_v16, %v2392_v20 }
0x18f3   :  { %v2394_v22 = vmul.f32 %v2393_v21, %v2393_v21 }
0x18f5   :  { %v2395_v23 = vsel %vm1108_vm6, %v2394_v22, 0.0 }
0x18f6   :  { %2396 = vadd.xlane.f32.xlu1 %v2395_v23 }
0x1983   :  { %v2397_v37 = vpop.xlane.xlu1 %2396 }
0x1984   :  { %v2398_v38 = vmul.f32 0.03125, %v2397_v37 }
0x1986   :  { %v2399_v39 = vadd.f32 1e-05, %v2398_v38  ;;  %v2637_v38 = vld [vmem:[#allocation2 + $0x160] sm:$0xff] }
0x1988   :  { %8848 = vrsqrt.f32 %v2399_v39 }
0x1992   :  { %v8849_v40 = vpop.eup %8848 }
0x1993   :  { %v2401_v42 = vmul.f32 %v8849_v40, %v2393_v21 }
0x1995   :  { %v2406_v47 = vmul.f32 %v7704_v41, %v2401_v42 }
0x1997   :  { %v9327_v50 = vadd.f32 %v7705_v46, %v2406_v47 }
0x1999   :  { %8250 = vmatmul.mubr.msk.f32.vlgmr.msra.gmra.mrb[28].mxu0 %vm57_vm1, %v9327_v50 }
0x199a   :  { %8698 = vmatpush3.bf16.msra.mxu0 %v8697_v49  ;;  %8279 = vmatprep.mubr.msk.f32.mxu0 %vm8986_vm0, %v8987_v1 }
0x199b   :  { %8699 = vmatprep.subr.bf16.mxu0 %v8985_v0 }
0x199e   :  { %8701 = vmatpush3.bf16.msra.mxu0 %v8700_v53 }
0x199f   :  { %8282 = vmatprep.subr.mxu0 %v8987_v1 }
0x19a1   :  { %8280 = vmatmul.mubr.msk.f32.vlgmr.msra.gmra.mrb[30].mxu0 %vm57_vm1, %v9337_v54 }
0x19a2   :  { %8284 = vmatprep.mubr.msk.f32.mxu0 %vm8986_vm0, %v8987_v1 }
0x1a6c   :  { %v2490_v58 = vpop.f32.mrb[28].mxu0 }
0x1a6d   :  { %v2491_v59 = vadd.f32 %v7706_v57, %v2490_v58  ;;  %v8251_v60 = vpop.f32.mrb[29].mxu0 }
0x1a6f   :  { %v2494_v61 = vmax.f32 %v2491_v59, 0.0 }
0x1a71   :  { %8269 = vmatmul.mubr.msk.f32.vlgmr.msra.gmra.mrb[28].mxu1 %vm1229_vm7, %v2494_v61 }
0x1a72   :  { %8289 = vmatprep.mubr.msk.f32.mxu1 %vm8986_vm0, %v8987_v1 }
0x1a74   :  { %v2715_v63 = vpop.f32.mrb[30].mxu0 }
0x1a75   :  { %v9354_v2 = vadd.f32 %v7714_v62, %v2715_v63  ;;  %v8281_v17 = vpop.f32.mrb[31].mxu0 }
0x1a77   :  { %2887 = vrot.lane.b32.xlu0 %v9354_v2, %s8990_s16  ;;  %2720 = vrot.lane.b32.xlu1 %v9354_v2, %s8989_s15 }
0x1a7b   :  { %2885 = vrot.lane.b32.xlu0 %v9354_v2, %s8988_s14 }
0x1ae9   :  { %v2721_v3 = vpop.permute.xlu1 %2720  ;;  %v2888_v4 = vpop.permute.xlu0 %2887 }
0x1aea   :  { %8283 = vmatpush3.xpose.msk.msra.mxu0 %vm134_vm2, %v2721_v3 }
0x1aeb   :  { %8292 = vmatprep.subr.mxu0 %v8987_v1 }
0x1aed   :  { %8285 = vmatmul.mubr.msk.f32.vlgmr.msra.gmra.mrb[32].mxu0 %vm134_vm2, %v9354_v2  ;;  %v2886_v5 = vpop.permute.xlu0 %2885 }
0x1aee   :  { %8293 = vmatpush3.xpose.msk.msra.mxu0 %vm134_vm2, %v2888_v4  ;;  %8294 = vmatprep.mubr.msk.f32.mxu0 %vm8986_vm0, %v8987_v1 }
0x1aef   :  { %8302 = vmatprep.subr.mxu0 %v8987_v1 }
0x1af1   :  { %8295 = vmatmul.mubr.msk.f32.vlgmr.msra.gmra.mrb[34].mxu0 %vm134_vm2, %v2886_v5 }
0x1af2   :  { %8304 = vmatprep.mubr.msk.f32.mxu0 %vm8986_vm0, %v8987_v1  ;;  %8303 = vmatpush3.msra.mxu0 %v2638_v30 }
0x1af3   :  { %8312 = vmatprep.subr.mxu0 %v8987_v1 }
0x1b44   :  { %v9373_v6 = vpop.f32.mrb[28].mxu1 }
0x1b45   :  { %v8270_v7 = vpop.f32.mrb[29].mxu1 }
0x1bc0   :  { %v2792_v48 = vpop.f32.mrb[32].mxu0 }
0x1bc1   :  { %v2796_v10 = vmul.f32 0.35355338, %v2792_v48  ;;  %v8286_v12 = vpop.f32.mrb[33].mxu0  ;;  %v2639_v48 = vld [vmem:[#allocation2 + $0x170] sm:$0xff] }
0x1bc3   :  { %v2797_v13 = vadd.f32 %v2796_v10, %v9378_v9 }
0x1bc4   :  { %v2959_v14 = vpop.f32.mrb[34].mxu0 }
0x1bc5   :  { %v2963_v15 = vmul.f32 0.35355338, %v2959_v14  ;;  %v8296_v16 = vpop.f32.mrb[35].mxu0  ;;  %v2798_v18 = vsel %vm134_vm2, %v2797_v13, -inf }
0x1bc6   :  { %2799 = vmax.xlane.f32.xlu1 %v2798_v18 }
0x1bc7   :  { %v2964_v19 = vadd.f32 %v2963_v15, %v9378_v9 }
0x1bc9   :  { %v2965_v20 = vsel %vm134_vm2, %v2964_v19, -inf }
0x1bca   :  { %2966 = vmax.xlane.f32.xlu0 %v2965_v20 }
0x1c53   :  { %v2800_v21 = vpop.xlane.xlu1 %2799 }
0x1c54   :  { %v2801_v22 = vsub.f32 %v2797_v13, %v2800_v21 }
0x1c56   :  { %v2802_v23 = vmul.f32 1.442695, %v2801_v22 }
0x1c57   :  { %v2967_v24 = vpop.xlane.xlu0 %2966 }
0x1c58   :  { %8850 = vpow2.f32 %v2802_v23  ;;  %v2968_v25 = vsub.f32 %v2964_v19, %v2967_v24  ;;  %v7708_v23 = vld [vmem:[%s9942_s5 + $0xd] ss:$0 sm:$0xff] }
0x1c5a   :  { %v2969_v26 = vmul.f32 1.442695, %v2968_v25 }
0x1c5c   :  { %8852 = vpow2.f32 %v2969_v26 }
0x1c62   :  { %v8851_v27 = vpop.eup %8850 }
0x1c63   :  { %v2804_v28 = vsel %vm134_vm2, %v8851_v27, 0.0 }
0x1c64   :  { %2805 = vadd.xlane.f32.xlu0 %v2804_v28 }
0x1c66   :  { %v8853_v29 = vpop.eup %8852 }
0x1c67   :  { %v2971_v45 = vsel %vm134_vm2, %v8853_v29, 0.0 }
0x1c68   :  { %2972 = vadd.xlane.f32.xlu1 %v2971_v45 }
0x1c79   :  { %2976 = vrot.lane.b32.xlu1 %v9354_v2, %s8991_s1 }
0x1c7a   :  { %2809 = vrot.lane.b32.xlu0 %v9354_v2, %s8992_s19 }
0x1c7d   :  { %3200 = vrot.lane.b32.xlu1 %v9354_v2, %s8993_s20 }
0x1c7e   :  { %3198 = vrot.lane.b32.xlu0 %v9354_v2, %s8994_s21 }
0x1cf1   :  { %v2806_v11 = vpop.xlane.xlu0 %2805 }
0x1cf2   :  { %8854 = vrcp.f32 %v2806_v11 }
0x1cf5   :  { %v2973_v31 = vpop.xlane.xlu1 %2972  ;;  %v2810_v32 = vpop.permute.xlu0 %2809 }
0x1cf6   :  { %8856 = vrcp.f32 %v2973_v31  ;;  %8288 = vmatpush3.msra.mxu1 %v2810_v32 }
0x1cf7   :  { %8297 = vmatprep.subr.mxu1 %v8987_v1 }
0x1cf9   :  { %v2977_v35 = vpop.permute.xlu1 %2976  ;;  %v3199_v44 = vpop.permute.xlu0 %3198 }
0x1cfc   :  { %v8855_v33 = vpop.eup %8854 }
0x1cfd   :  { %v2808_v34 = vmul.f32 %v8855_v33, %v8851_v27  ;;  %v3201_v42 = vpop.permute.xlu1 %3200 }
0x1cff   :  { %8290 = vmatmul.mubr.msk.f32.vlgmr.msra.gmra.mrb[30].mxu1 %vm134_vm2, %v2808_v34 }
0x1d00   :  { %v8857_v36 = vpop.eup %8856  ;;  %8298 = vmatpush3.msra.mxu1 %v2977_v35  ;;  %8299 = vmatprep.mubr.msk.f32.mxu1 %vm8986_vm0, %v8987_v1 }
0x1d01   :  { %v2975_v37 = vmul.f32 %v8857_v36, %v8853_v29  ;;  %8307 = vmatprep.subr.mxu1 %v8987_v1 }
0x1d03   :  { %8300 = vmatmul.mubr.msk.f32.vlgmr.msra.gmra.mrb[32].mxu1 %vm134_vm2, %v2975_v37 }
0x1d04   :  { %8309 = vmatprep.mubr.msk.f32.mxu1 %vm8986_vm0, %v8987_v1  ;;  %8308 = vmatpush3.msra.mxu1 %v2637_v38 }
0x1d05   :  { %8317 = vmatprep.subr.mxu1 %v8987_v1 }
0x1dd2   :  { %v2881_v39 = vpop.f32.mrb[30].mxu1 }
0x1dd3   :  { %v8291_v40 = vpop.f32.mrb[31].mxu1  ;;  %8310 = vmatmul.mubr.msk.f32.vlgmr.msra.gmra.mrb[34].mxu1 %vm134_vm2, %v2881_v39  ;;  %v7710_v39 = vld [vmem:[%s9942_s5 + $0xe] ss:$0 sm:$0xff] }
0x1dd4   :  { %8319 = vmatprep.mubr.msk.f32.mxu1 %vm8986_vm0, %v8987_v1 }
0x1dd6   :  { %v3048_v41 = vpop.f32.mrb[32].mxu1 }
0x1dd7   :  { %v8301_v43 = vpop.f32.mrb[33].mxu1  ;;  %8305 = vmatmul.mubr.msk.f32.vlgmr.msra.gmra.mrb[36].mxu0 %vm134_vm2, %v3048_v41  ;;  %v7711_v41 = vld [vmem:[%s9942_s5 + $0xf] ss:$0 sm:$0xff] }
0x1dd8   :  { %8313 = vmatpush3.xpose.msk.msra.mxu0 %vm134_vm2, %v3201_v42  ;;  %8314 = vmatprep.mubr.msk.f32.mxu0 %vm8986_vm0, %v8987_v1 }
0x1dd9   :  { %8322 = vmatprep.subr.mxu0 %v8987_v1 }
0x1ddb   :  { %8315 = vmatmul.mubr.msk.f32.vlgmr.msra.gmra.mrb[38].mxu0 %vm134_vm2, %v3199_v44 }
0x1ddc   :  { %8324 = vmatprep.mubr.msk.f32.mxu0 %vm8986_vm0, %v8987_v1  ;;  %8323 = vmatpush3.msra.mxu0 %v2639_v48 }
0x1ddd   :  { %8332 = vmatprep.subr.mxu0 %v8987_v1 }
0x1ea6   :  { %v3194_v46 = vpop.f32.mrb[34].mxu1 }
0x1ea7   :  { %v8311_v47 = vpop.f32.mrb[35].mxu1 }
0x1eaa   :  { %v3121_v49 = vpop.f32.mrb[36].mxu0 }
0x1eab   :  { %v9415_v51 = vadd.f32 %v3194_v46, %v3121_v49  ;;  %v8306_v52 = vpop.f32.mrb[37].mxu0  ;;  %v3711_v49 = vld [vmem:[#allocation2 + $0x180] sm:$0xff] }
0x1eae   :  { %v3272_v53 = vpop.f32.mrb[38].mxu0 }
0x1eaf   :  { %v3276_v8 = vmul.f32 0.35355338, %v3272_v53  ;;  %v8316_v55 = vpop.f32.mrb[39].mxu0 }
0x1eb0   :  { %v3714_v55 = vld [vmem:[#allocation2 + $0x198] sm:$0xff] }
0x1eb1   :  { %v3277_v56 = vadd.f32 %v3276_v8, %v9378_v9  ;;  %v3713_v8 = vld [vmem:[#allocation2 + $0x190] sm:$0xff] }
0x1eb3   :  { %v3278_v57 = vsel %vm134_vm2, %v3277_v56, -inf }
0x1eb4   :  { %3279 = vmax.xlane.f32.xlu1 %v3278_v57  ;;  %v8706_v57 = vpack.c.bf16 %v3714_v55, %v3713_v8 }
0x1ec5   :  { %3441 = vrot.lane.b32.xlu1 %v9354_v2, %s8995_s22 }
0x1ec9   :  { %3439 = vrot.lane.b32.xlu1 %v9354_v2, %s8996_s23 }
0x1f41   :  { %v3280_v58 = vpop.xlane.xlu1 %3279 }
0x1f42   :  { %v3281_v59 = vsub.f32 %v3277_v56, %v3280_v58  ;;  %v8797_v56 = vpack.i.bf16 %v3714_v55, %v3713_v8 }
0x1f44   :  { %v3282_v60 = vmul.f32 1.442695, %v3281_v59 }
0x1f45   :  { %v3442_v4 = vpop.permute.xlu1 %3441 }
0x1f46   :  { %8858 = vpow2.f32 %v3282_v60  ;;  %v7732_v60 = vld [vmem:[%s9942_s5 + $0x13] ss:$0 sm:$0xff] }
0x1f49   :  { %v3440_v7 = vpop.permute.xlu1 %3439 }
0x1f50   :  { %v8859_v61 = vpop.eup %8858 }
0x1f51   :  { %v3284_v62 = vsel %vm134_vm2, %v8859_v61, 0.0 }
0x1f52   :  { %3285 = vadd.xlane.f32.xlu0 %v3284_v62 }
0x1f68   :  { %3289 = vrot.lane.b32.xlu0 %v9354_v2, %s8997_s24 }
0x1fdf   :  { %v3286_v63 = vpop.xlane.xlu0 %3285 }
0x1fe0   :  { %8860 = vrcp.f32 %v3286_v63 }
0x1fe3   :  { %v3290_v17 = vpop.permute.xlu0 %3289 }
0x1fe4   :  { %8318 = vmatpush3.msra.mxu1 %v3290_v17 }
0x1fe5   :  { %8327 = vmatprep.subr.mxu1 %v8987_v1 }
0x1fea   :  { %v8861_v3 = vpop.eup %8860 }
0x1feb   :  { %v3288_v5 = vmul.f32 %v8861_v3, %v8859_v61 }
0x1fed   :  { %8320 = vmatmul.mubr.msk.f32.vlgmr.msra.gmra.mrb[36].mxu1 %vm134_vm2, %v3288_v5 }
0x1fee   :  { %8328 = vmatpush3.xpose.msk.msra.mxu1 %vm134_vm2, %v3442_v4  ;;  %8329 = vmatprep.mubr.msk.f32.mxu1 %vm8986_vm0, %v8987_v1 }
0x1fef   :  { %8337 = vmatprep.subr.mxu1 %v8987_v1 }
0x1ff1   :  { %8330 = vmatmul.mubr.msk.f32.vlgmr.msra.gmra.mrb[38].mxu1 %vm134_vm2, %v3440_v7 }
0x1ff2   :  { %8339 = vmatprep.mubr.msk.f32.mxu1 %vm8986_vm0, %v8987_v1 }
0x20c0   :  { %v3361_v10 = vpop.f32.mrb[36].mxu1 }
0x20c1   :  { %v8321_v12 = vpop.f32.mrb[37].mxu1  ;;  %8325 = vmatmul.mubr.msk.f32.vlgmr.msra.gmra.mrb[40].mxu0 %vm134_vm2, %v3361_v10  ;;  %v7735_v10 = vld [vmem:[%s9942_s5 + $0x16] ss:$0 sm:$0xff] }
0x20c2   :  { %8334 = vmatprep.mubr.msk.f32.mxu0 %vm8986_vm0, %v8987_v1 }
0x20c4   :  { %v3513_v13 = vpop.f32.mrb[38].mxu1 }
0x20c5   :  { %v3517_v14 = vmul.f32 0.35355338, %v3513_v13  ;;  %v8331_v15 = vpop.f32.mrb[39].mxu1 }
0x20c7   :  { %v3518_v16 = vadd.f32 %v3517_v14, %v9378_v9  ;;  %v2578_v9 = vadd.f32 %v7708_v23, %v9373_v6 }
0x20c9   :  { %v3519_v18 = vsel %vm134_vm2, %v3518_v16, -inf  ;;  %v2581_v26 = vadd.f32 %v2578_v9, %v9327_v50  ;;  %v2640_v50 = vld [vmem:[#allocation2 + $0x178] sm:$0xff] }
0x20ca   :  { %3520 = vmax.xlane.f32.xlu0 %v3519_v18  ;;  %8338 = vmatpush3.msra.mxu1 %v2640_v50  ;;  %v7734_v50 = vld [vmem:[%s9942_s5 + $0x15] ss:$0 sm:$0xff] }
0x20cb   :  { %8708 = vmatprep.subr.bf16.mxu1 %v8985_v0 }
0x20e0   :  { %3530 = vrot.lane.b32.xlu0 %v9354_v2, %s8998_s25  ;;  %v2584_v2 = vsel %vm1108_vm6, %v2581_v26, 0.0 }
0x2157   :  { %v3521_v19 = vpop.xlane.xlu0 %3520 }
0x2158   :  { %v3522_v20 = vsub.f32 %v3518_v16, %v3521_v19 }
0x215a   :  { %v3523_v21 = vmul.f32 1.442695, %v3522_v20 }
0x215b   :  { %v3531_v22 = vpop.permute.xlu0 %3530 }
0x215c   :  { %8862 = vpow2.f32 %v3523_v21  ;;  %8333 = vmatpush3.msra.mxu0 %v3531_v22 }
0x215d   :  { %8702 = vmatprep.subr.bf16.mxu0 %v8985_v0 }
0x2166   :  { %v8863_v24 = vpop.eup %8862 }
0x2167   :  { %v3525_v25 = vsel %vm134_vm2, %v8863_v24, 0.0 }
0x2168   :  { %3526 = vadd.xlane.f32.xlu1 %v3525_v25 }
0x216c   :  { %2585 = vadd.xlane.f32.xlu1 %v2584_v2 }
0x2194   :  { %v3434_v27 = vpop.f32.mrb[40].mxu0 }
0x2195   :  { %v3438_v28 = vadd.f32 %v3434_v27, %v9415_v51  ;;  %v8326_v29 = vpop.f32.mrb[41].mxu0  ;;  %v3712_v51 = vld [vmem:[#allocation2 + $0x188] sm:$0xff]  ;;  %v7712_v27 = vld [vmem:[%s9942_s5 + $0x10] ss:$0 sm:$0xff] }
0x2196   :  { %v8792_v52 = vpack.i.bf16 %v3712_v51, %v3711_v49  ;;  %v8703_v53 = vpack.c.bf16 %v3712_v51, %v3711_v49  ;;  %v7713_v29 = vld [vmem:[%s9942_s5 + $0x11] ss:$0 sm:$0xff]  ;;  %v9531_v49 = vld [vmem:[%s9940_s3] sm:$0xff] }
0x21f5   :  { %v3527_v45 = vpop.xlane.xlu1 %3526 }
0x21f6   :  { %8864 = vrcp.f32 %v3527_v45 }
0x21f9   :  { %v2586_v30 = vpop.xlane.xlu1 %2585 }
0x21fa   :  { %v2587_v11 = vmul.f32 0.03125, %v2586_v30 }
0x21fc   :  { %v2588_v31 = vsub.f32 %v2581_v26, %v2587_v11 }
0x21fe   :  { %v2589_v32 = vmul.f32 %v2588_v31, %v2588_v31 }
0x2200   :  { %v8865_v6 = vpop.eup %8864  ;;  %v2590_v33 = vsel %vm1108_vm6, %v2589_v32, 0.0 }
0x2201   :  { %v3529_v34 = vmul.f32 %v8865_v6, %v8863_v24  ;;  %2591 = vadd.xlane.f32.xlu1 %v2590_v33  ;;  %v7733_v33 = vld [vmem:[%s9942_s5 + $0x14] ss:$0 sm:$0xff] }
0x2203   :  { %8335 = vmatmul.mubr.msk.f32.vlgmr.msra.gmra.mrb[42].mxu0 %vm134_vm2, %v3529_v34 }
0x2204   :  { %8350 = vmatprep.mubr.msk.f32.mxu0 %vm8986_vm0, %v8987_v1  ;;  %8704 = vmatpush3.bf16.msra.mxu0 %v8703_v53 }
0x2205   :  { %8705 = vmatprep.subr.bf16.mxu0 %v8985_v0 }
0x2208   :  { %8707 = vmatpush3.bf16.msra.mxu0 %v8706_v57 }
0x2209   :  { %8364 = vmatprep.subr.mxu0 %v8987_v1 }
0x228e   :  { %v2592_v35 = vpop.xlane.xlu1 %2591 }
0x228f   :  { %v2593_v36 = vmul.f32 0.03125, %v2592_v35 }
0x2291   :  { %v2594_v37 = vadd.f32 1e-05, %v2593_v36 }
0x2293   :  { %8866 = vrsqrt.f32 %v2594_v37 }
0x229d   :  { %v8867_v38 = vpop.eup %8866 }
0x229e   :  { %v2596_v40 = vmul.f32 %v8867_v38, %v2588_v31 }
0x22a0   :  { %v2601_v42 = vmul.f32 %v7710_v39, %v2596_v40 }
0x22a2   :  { %v2606_v43 = vadd.f32 %v7711_v41, %v2601_v42 }
0x22a4   :  { %v2609_v44 = vsel %vm1108_vm6, %v2606_v43, 0.0 }
0x22a5   :  { %2610 = vadd.xlane.f32.xlu1 %v2609_v44 }
0x22d6   :  { %v3602_v46 = vpop.f32.mrb[42].mxu0 }
0x22d7   :  { %v8336_v47 = vpop.f32.mrb[43].mxu0  ;;  %8340 = vmatmul.mubr.msk.f32.vlgmr.msra.gmra.mrb[40].mxu1 %vm134_vm2, %v3602_v46 }
0x22d8   :  { %8361 = vmatprep.mubr.msk.f32.mxu1 %vm8986_vm0, %v8987_v1 }
0x2332   :  { %v2611_v58 = vpop.xlane.xlu1 %2610 }
0x2333   :  { %v2612_v59 = vmul.f32 0.03125, %v2611_v58 }
0x2335   :  { %v2613_v17 = vsub.f32 %v2606_v43, %v2612_v59 }
0x2337   :  { %v2614_v7 = vmul.f32 %v2613_v17, %v2613_v17 }
0x2339   :  { %v2615_v48 = vsel %vm1108_vm6, %v2614_v7, 0.0 }
0x23aa   :  { %v3675_v61 = vpop.f32.mrb[40].mxu1 }
0x23ab   :  { %v3679_v62 = vadd.f32 %v3675_v61, %v3438_v28  ;;  %v8341_v63 = vpop.f32.mrb[41].mxu1 }
0x23ad   :  { %v3684_v3 = vadd.f32 %v7732_v60, %v3679_v62 }
0x23af   :  { %v3685_v4 = vadd.f32 %v3684_v3, %v9337_v54 }
0x23b1   :  { %v3688_v5 = vsel %vm57_vm1, %v3685_v4, 0.0 }
0x23b2   :  { %3689 = vadd.xlane.f32.xlu1 %v3688_v5 }
0x23b6   :  { %2616 = vadd.xlane.f32.xlu1 %v2615_v48 }
0x23c7   :  { %8793 = vrot.lane.b32.xlu1 %v8792_v52, %s8989_s15 }
0x23cb   :  { %8798 = vrot.lane.b32.xlu1 %v8797_v56, %s8989_s15 }
0x23cf   :  { %3815 = vrot.lane.b32.xlu1 %v7735_v10, %s8989_s15 }
0x243f   :  { %v3690_v12 = vpop.xlane.xlu1 %3689 }
0x2440   :  { %v3691_v13 = vmul.f32 0.03125, %v3690_v12 }
0x2442   :  { %v3692_v54 = vsub.f32 %v3685_v4, %v3691_v13 }
0x2443   :  { %v2617_v14 = vpop.xlane.xlu1 %2616 }
0x2444   :  { %v2618_v15 = vmul.f32 0.03125, %v2617_v14  ;;  %v3693_v16 = vmul.f32 %v3692_v54, %v3692_v54 }
0x2446   :  { %v2619_v18 = vadd.f32 1e-05, %v2618_v15  ;;  %v3694_v19 = vsel %vm57_vm1, %v3693_v16, 0.0 }
0x2447   :  { %3695 = vadd.xlane.f32.xlu0 %v3694_v19  ;;  %v8794_v20 = vpop.permute.xlu1 %8793  ;;  %v3716_v19 = vld [vmem:[#allocation2 + $0x1a0] sm:$0xff] }
0x2448   :  { %8868 = vrsqrt.f32 %v2619_v18  ;;  %v8796_v21 = vunpack.i.h.bf16 %v8794_v20  ;;  %v8795_v22 = vunpack.i.l.bf16 %v8794_v20  ;;  %v3717_v20 = vld [vmem:[#allocation2 + $0x1a8] sm:$0xff] }
0x244a   :  { %v8709_v23 = vpack.c.bf16 %v8796_v21, %v8795_v22 }
0x244b   :  { %v8799_v9 = vpop.permute.xlu1 %8798 }
0x244c   :  { %v8801_v24 = vunpack.i.h.bf16 %v8799_v9  ;;  %v8800_v25 = vunpack.i.l.bf16 %v8799_v9  ;;  %8710 = vmatpush3.bf16.msra.mxu1 %v8709_v23 }
0x244d   :  { %8711 = vmatprep.subr.bf16.mxu1 %v8985_v0 }
0x244e   :  { %v8712_v26 = vpack.c.bf16 %v8801_v24, %v8800_v25 }
0x244f   :  { %v3816_v37 = vpop.permute.xlu1 %3815 }
0x2450   :  { %8713 = vmatpush3.bf16.msra.mxu1 %v8712_v26 }
0x2451   :  { %8369 = vmatprep.subr.mxu1 %v8987_v1 }
0x2452   :  { %v8869_v2 = vpop.eup %8868 }
0x2453   :  { %v2621_v28 = vmul.f32 %v8869_v2, %v2613_v17 }
0x2455   :  { %v2626_v45 = vmul.f32 %v7712_v27, %v2621_v28 }
0x2457   :  { %v9490_v30 = vadd.f32 %v7713_v29, %v2626_v45 }
0x2459   :  { %8362 = vmatmul.mubr.msk.f32.vlgmr.msra.gmra.mrb[42].mxu1 %vm57_vm1, %v9490_v30 }
0x245a   :  { %8371 = vmatprep.mubr.msk.f32.mxu1 %vm8986_vm0, %v8987_v1 }
0x24d4   :  { %v3696_v11 = vpop.xlane.xlu0 %3695 }
0x24d5   :  { %v3697_v31 = vmul.f32 0.03125, %v3696_v11 }
0x24d7   :  { %v3698_v32 = vadd.f32 1e-05, %v3697_v31 }
0x24d9   :  { %8870 = vrsqrt.f32 %v3698_v32 }
0x24e3   :  { %v8871_v6 = vpop.eup %8870 }
0x24e4   :  { %v3700_v34 = vmul.f32 %v8871_v6, %v3692_v54 }
0x24e6   :  { %v3705_v35 = vmul.f32 %v7733_v33, %v3700_v34 }
0x24e8   :  { %v9502_v36 = vadd.f32 %v7734_v50, %v3705_v35 }
0x24ea   :  { %8351 = vmatmul.mubr.msk.f32.vlgmr.msra.gmra.mrb[44].mxu0 %vm57_vm1, %v9502_v36 }
0x24eb   :  { %8366 = vmatprep.mubr.msk.f32.mxu0 %vm8986_vm0, %v8987_v1 }
0x252c   :  { %v3887_v38 = vpop.f32.mrb[42].mxu1 }
0x252d   :  { %v9508_v39 = vadd.f32 %v3887_v38, %v3816_v37  ;;  %v8363_v40 = vpop.f32.mrb[43].mxu1 }
0x252f   :  { %4059 = vrot.lane.b32.xlu1 %v9508_v39, %s8988_s14  ;;  %8365 = vmatpush3.xpose.msk.msra.mxu0 %vm134_vm2, %v9508_v39 }
0x2530   :  { %8374 = vmatprep.subr.mxu0 %v8987_v1 }
0x25a1   :  { %v4060_v44 = vpop.permute.xlu1 %4059 }
0x25bd   :  { %v3794_v41 = vpop.f32.mrb[44].mxu0 }
0x25be   :  { %v9515_v42 = vadd.f32 %v7735_v10, %v3794_v41  ;;  %v8352_v43 = vpop.f32.mrb[45].mxu0 }
0x25c0   :  { %4057 = vrot.lane.b32.xlu0 %v9515_v42, %s8988_s14  ;;  %8367 = vmatmul.mubr.msk.f32.vlgmr.msra.gmra.mrb[46].mxu0 %vm134_vm2, %v9515_v42 }
0x25c1   :  { %8375 = vmatpush3.xpose.msk.msra.mxu0 %vm134_vm2, %v4060_v44  ;;  %8376 = vmatprep.mubr.msk.f32.mxu0 %vm8986_vm0, %v8987_v1 }
0x25c2   :  { %8384 = vmatprep.subr.mxu0 %v8987_v1 }
0x2632   :  { %v4058_v46 = vpop.permute.xlu0 %4057 }
0x2633   :  { %8377 = vmatmul.mubr.msk.f32.vlgmr.msra.gmra.mrb[48].mxu0 %vm134_vm2, %v4058_v46  ;;  %v3718_v46 = vld [vmem:[#allocation2 + $0x1b0] sm:$0xff] }
0x2634   :  { %8386 = vmatprep.mubr.msk.f32.mxu0 %vm8986_vm0, %v8987_v1  ;;  %8385 = vmatpush3.msra.mxu0 %v3717_v20 }
0x2635   :  { %8394 = vmatprep.subr.mxu0 %v8987_v1 }
0x2693   :  { %v3963_v47 = vpop.f32.mrb[46].mxu0 }
0x2694   :  { %v3967_v51 = vmul.f32 0.35355338, %v3963_v47  ;;  %v8368_v52 = vpop.f32.mrb[47].mxu0 }
0x2696   :  { %v3968_v53 = vadd.f32 %v3967_v51, %v9531_v49 }
0x2698   :  { %v3969_v8 = vsel %vm225_vm5, %v3968_v53, -inf }
0x2699   :  { %3970 = vmax.xlane.f32.xlu1 %v3969_v8 }
0x2706   :  { %v4131_v55 = vpop.f32.mrb[48].mxu0 }
0x2707   :  { %v4135_v56 = vmul.f32 0.35355338, %v4131_v55  ;;  %v8378_v57 = vpop.f32.mrb[49].mxu0 }
0x2709   :  { %v4136_v58 = vadd.f32 %v4135_v56, %v9531_v49 }
0x270b   :  { %v4137_v59 = vsel %vm225_vm5, %v4136_v58, -inf }
0x270c   :  { %4138 = vmax.xlane.f32.xlu0 %v4137_v59 }
0x2722   :  { %4148 = vrot.lane.b32.xlu0 %v9508_v39, %s8990_s16 }
0x2726   :  { %v3971_v60 = vpop.xlane.xlu1 %3970 }
0x2727   :  { %v3972_v61 = vsub.f32 %v3968_v53, %v3971_v60 }
0x2729   :  { %v3973_v62 = vmul.f32 1.442695, %v3972_v61 }
0x272b   :  { %8872 = vpow2.f32 %v3973_v62  ;;  %v3719_v62 = vld [vmem:[#allocation2 + $0x1b8] sm:$0xff] }
0x2735   :  { %v8873_v63 = vpop.eup %8872 }
0x2736   :  { %v3975_v17 = vsel %vm225_vm5, %v8873_v63, 0.0 }
0x2737   :  { %3976 = vadd.xlane.f32.xlu1 %v3975_v17 }
0x2799   :  { %v4139_v3 = vpop.xlane.xlu0 %4138 }
0x279a   :  { %v4140_v4 = vsub.f32 %v4136_v58, %v4139_v3 }
0x279c   :  { %v4141_v5 = vmul.f32 1.442695, %v4140_v4 }
0x279d   :  { %v4149_v15 = vpop.permute.xlu0 %4148 }
0x279e   :  { %8874 = vpow2.f32 %v4141_v5 }
0x27a8   :  { %v8875_v7 = vpop.eup %8874 }
0x27a9   :  { %v4143_v48 = vsel %vm225_vm5, %v8875_v7, 0.0 }
0x27aa   :  { %4144 = vadd.xlane.f32.xlu1 %v4143_v48 }
0x27bb   :  { %3980 = vrot.lane.b32.xlu1 %v9508_v39, %s8989_s15 }
0x27bf   :  { %4373 = vrot.lane.b32.xlu1 %v9508_v39, %s8994_s21 }
0x27c3   :  { %4371 = vrot.lane.b32.xlu1 %v9515_v42, %s8994_s21 }
0x27c4   :  { %v3977_v10 = vpop.xlane.xlu1 %3976 }
0x27c5   :  { %8876 = vrcp.f32 %v3977_v10 }
0x27cf   :  { %v8877_v13 = vpop.eup %8876 }
0x27d0   :  { %v3979_v54 = vmul.f32 %v8877_v13, %v8873_v63 }
0x2837   :  { %v4145_v12 = vpop.xlane.xlu1 %4144 }
0x2838   :  { %8878 = vrcp.f32 %v4145_v12  ;;  %v7758_v12 = vld [vmem:[%s9942_s5 + $0x17] ss:$0 sm:$0xff] }
0x283b   :  { %v3981_v14 = vpop.permute.xlu1 %3980 }
0x283c   :  { %8370 = vmatpush3.msk.msra.mxu1 %vm229_vm4, %v3981_v14 }
0x283d   :  { %8372 = vmatmul.mubr.msk.f32.vlgmr.msra.gmra.mrb[44].mxu1 %vm225_vm5, %v3979_v54  ;;  %8379 = vmatprep.subr.mxu1 %v8987_v1 }
0x283e   :  { %8380 = vmatpush3.msk.msra.mxu1 %vm229_vm4, %v4149_v15  ;;  %8381 = vmatprep.mubr.msk.f32.mxu1 %vm8986_vm0, %v8987_v1 }
0x283f   :  { %8389 = vmatprep.subr.mxu1 %v8987_v1  ;;  %v4374_v23 = vpop.permute.xlu1 %4373 }
0x2842   :  { %v8879_v16 = vpop.eup %8878 }
0x2843   :  { %v4147_v18 = vmul.f32 %v8879_v16, %v8875_v7  ;;  %v4372_v25 = vpop.permute.xlu1 %4371 }
0x2845   :  { %8382 = vmatmul.mubr.msk.f32.vlgmr.msra.gmra.mrb[46].mxu1 %vm225_vm5, %v4147_v18 }
0x2846   :  { %8391 = vmatprep.mubr.msk.f32.mxu1 %vm8986_vm0, %v8987_v1  ;;  %8390 = vmatpush3.msra.mxu1 %v3716_v19 }
0x2847   :  { %8399 = vmatprep.subr.mxu1 %v8987_v1 }
0x2910   :  { %v4053_v21 = vpop.f32.mrb[44].mxu1 }
0x2911   :  { %v8373_v22 = vpop.f32.mrb[45].mxu1  ;;  %8392 = vmatmul.mubr.msk.f32.vlgmr.msra.gmra.mrb[48].mxu1 %vm134_vm2, %v4053_v21 }
0x2912   :  { %8401 = vmatprep.mubr.msk.f32.mxu1 %vm8986_vm0, %v8987_v1 }
0x2918   :  { %v4221_v9 = vpop.f32.mrb[46].mxu1 }
0x2919   :  { %v8383_v24 = vpop.f32.mrb[47].mxu1  ;;  %8387 = vmatmul.mubr.msk.f32.vlgmr.msra.gmra.mrb[50].mxu0 %vm134_vm2, %v4221_v9  ;;  %v4886_v9 = vld [vmem:[#allocation2 + $0x1c0] sm:$0xff] }
0x291a   :  { %8395 = vmatpush3.xpose.msk.msra.mxu0 %vm134_vm2, %v4374_v23  ;;  %8396 = vmatprep.mubr.msk.f32.mxu0 %vm8986_vm0, %v8987_v1  ;;  %v4887_v24 = vld [vmem:[#allocation2 + $0x1c8] sm:$0xff] }
0x291b   :  { %8404 = vmatprep.subr.mxu0 %v8987_v1 }
0x291d   :  { %8397 = vmatmul.mubr.msk.f32.vlgmr.msra.gmra.mrb[52].mxu0 %vm134_vm2, %v4372_v25  ;;  %v8715_v25 = vpack.c.bf16 %v4887_v24, %v4886_v9 }
0x291e   :  { %8406 = vmatprep.mubr.msk.f32.mxu0 %vm8986_vm0, %v8987_v1  ;;  %8405 = vmatpush3.msra.mxu0 %v3718_v46  ;;  %v4976_v46 = vld [vmem:[#allocation2 + $0x218] sm:$0xff] }
0x291f   :  { %8414 = vmatprep.subr.mxu0 %v8987_v1 }
0x29e4   :  { %v4367_v26 = vpop.f32.mrb[48].mxu1 }
0x29e5   :  { %v8393_v2 = vpop.f32.mrb[49].mxu1 }
0x29e6   :  { %v4889_v2 = vld [vmem:[#allocation2 + $0x1d8] sm:$0xff] }
0x29ec   :  { %v4294_v27 = vpop.f32.mrb[50].mxu0 }
0x29ed   :  { %v4368_v28 = vadd.f32 %v4367_v26, %v4294_v27  ;;  %v8388_v29 = vpop.f32.mrb[51].mxu0  ;;  %v4888_v26 = vld [vmem:[#allocation2 + $0x1d0] sm:$0xff] }
0x29ee   :  { %v8718_v27 = vpack.c.bf16 %v4889_v2, %v4888_v26  ;;  %v4971_v29 = vld [vmem:[#allocation2 + $0x1f0] sm:$0xff] }
0x29f0   :  { %v4445_v45 = vpop.f32.mrb[52].mxu0 }
0x29f1   :  { %v4449_v11 = vmul.f32 0.35355338, %v4445_v45  ;;  %v8398_v31 = vpop.f32.mrb[53].mxu0 }
0x29f3   :  { %v4450_v32 = vadd.f32 %v4449_v11, %v9531_v49  ;;  %v4972_v11 = vld [vmem:[#allocation2 + $0x1f8] sm:$0xff] }
0x29f4   :  { %v8724_v31 = vpack.c.bf16 %v4972_v11, %v4971_v29  ;;  %v9678_v29 = vld [vmem:[%s9939_s2] sm:$0xff] }
0x29f5   :  { %v4451_v6 = vsel %vm225_vm5, %v4450_v32, -inf }
0x29f6   :  { %4452 = vmax.xlane.f32.xlu1 %v4451_v6  ;;  %v4974_v6 = vld [vmem:[#allocation2 + $0x208] sm:$0xff] }
0x2a07   :  { %4615 = vrot.lane.b32.xlu1 %v9508_v39, %s8996_s23 }
0x2a0b   :  { %4613 = vrot.lane.b32.xlu1 %v9515_v42, %s8996_s23 }
0x2a83   :  { %v4453_v33 = vpop.xlane.xlu1 %4452 }
0x2a84   :  { %v4454_v34 = vsub.f32 %v4450_v32, %v4453_v33  ;;  %v4973_v32 = vld [vmem:[#allocation2 + $0x200] sm:$0xff] }
0x2a85   :  { %v8727_v33 = vpack.c.bf16 %v4974_v6, %v4973_v32 }
0x2a86   :  { %v4455_v50 = vmul.f32 1.442695, %v4454_v34 }
0x2a87   :  { %v4616_v42 = vpop.permute.xlu1 %4615 }
0x2a88   :  { %8880 = vpow2.f32 %v4455_v50 }
0x2a8b   :  { %v4614_v44 = vpop.permute.xlu1 %4613 }
0x2a92   :  { %v8881_v35 = vpop.eup %8880 }
0x2a93   :  { %v4457_v37 = vsel %vm225_vm5, %v8881_v35, 0.0 }
0x2a94   :  { %4458 = vadd.xlane.f32.xlu0 %v4457_v37 }
0x2aaa   :  { %4462 = vrot.lane.b32.xlu0 %v9508_v39, %s8993_s20 }
0x2b21   :  { %v4459_v38 = vpop.xlane.xlu0 %4458 }
0x2b22   :  { %8882 = vrcp.f32 %v4459_v38  ;;  %v7759_v38 = vld [vmem:[%s9942_s5 + $0x18] ss:$0 sm:$0xff] }
0x2b25   :  { %v4463_v40 = vpop.permute.xlu0 %4462 }
0x2b26   :  { %8400 = vmatpush3.msk.msra.mxu1 %vm229_vm4, %v4463_v40 }
0x2b27   :  { %8409 = vmatprep.subr.mxu1 %v8987_v1 }
0x2b2c   :  { %v8883_v41 = vpop.eup %8882 }
0x2b2d   :  { %v4461_v43 = vmul.f32 %v8883_v41, %v8881_v35  ;;  %v7760_v41 = vld [vmem:[%s9942_s5 + $0x19] ss:$0 sm:$0xff] }
0x2b2f   :  { %8402 = vmatmul.mubr.msk.f32.vlgmr.msra.gmra.mrb[50].mxu1 %vm225_vm5, %v4461_v43 }
0x2b30   :  { %8410 = vmatpush3.xpose.msk.msra.mxu1 %vm134_vm2, %v4616_v42  ;;  %8411 = vmatprep.mubr.msk.f32.mxu1 %vm8986_vm0, %v8987_v1 }
0x2b31   :  { %8419 = vmatprep.subr.mxu1 %v8987_v1 }
0x2b33   :  { %8412 = vmatmul.mubr.msk.f32.vlgmr.msra.gmra.mrb[52].mxu1 %vm134_vm2, %v4614_v44  ;;  %v4975_v44 = vld [vmem:[#allocation2 + $0x210] sm:$0xff] }
0x2b34   :  { %8421 = vmatprep.mubr.msk.f32.mxu1 %vm8986_vm0, %v8987_v1  ;;  %8420 = vmatpush3.msra.mxu1 %v3719_v62 }
0x2b35   :  { %8720 = vmatprep.subr.bf16.mxu1 %v8985_v0 }
0x2c02   :  { %v4535_v47 = vpop.f32.mrb[50].mxu1 }
0x2c03   :  { %v8403_v51 = vpop.f32.mrb[51].mxu1  ;;  %8407 = vmatmul.mubr.msk.f32.vlgmr.msra.gmra.mrb[54].mxu0 %vm134_vm2, %v4535_v47  ;;  %v8730_v47 = vpack.c.bf16 %v4976_v46, %v4975_v44 }
0x2c04   :  { %8416 = vmatprep.mubr.msk.f32.mxu0 %vm8986_vm0, %v8987_v1  ;;  %v7761_v51 = vld [vmem:[%s9942_s5 + $0x1a] ss:$0 sm:$0xff] }
0x2c06   :  { %v4687_v52 = vpop.f32.mrb[52].mxu1 }
0x2c07   :  { %v4691_v53 = vmul.f32 0.35355338, %v4687_v52  ;;  %v8413_v8 = vpop.f32.mrb[53].mxu1 }
0x2c09   :  { %v4692_v55 = vadd.f32 %v4691_v53, %v9531_v49 }
0x2c0b   :  { %v4693_v56 = vsel %vm225_vm5, %v4692_v55, -inf }
0x2c0c   :  { %4694 = vmax.xlane.f32.xlu1 %v4693_v56  ;;  %v7763_v56 = vld [vmem:[%s9942_s5 + $0x1b] ss:$0 sm:$0xff] }
0x2c99   :  { %v4695_v57 = vpop.xlane.xlu1 %4694 }
0x2c9a   :  { %v4696_v58 = vsub.f32 %v4692_v55, %v4695_v57 }
0x2c9c   :  { %v4697_v59 = vmul.f32 1.442695, %v4696_v58 }
0x2c9e   :  { %8884 = vpow2.f32 %v4697_v59 }
0x2ca8   :  { %v8885_v60 = vpop.eup %8884 }
0x2ca9   :  { %v4699_v61 = vsel %vm225_vm5, %v8885_v60, 0.0 }
0x2caa   :  { %4700 = vadd.xlane.f32.xlu0 %v4699_v61 }
0x2cc0   :  { %4704 = vrot.lane.b32.xlu0 %v9508_v39, %s8995_s22 }
0x2cd6   :  { %v4608_v63 = vpop.f32.mrb[54].mxu0 }
0x2cd7   :  { %v4612_v17 = vadd.f32 %v4608_v63, %v4368_v28  ;;  %v8408_v3 = vpop.f32.mrb[55].mxu0  ;;  %v4970_v28 = vld [vmem:[#allocation2 + $0x1e8] sm:$0xff] }
0x2d37   :  { %v4701_v4 = vpop.xlane.xlu0 %4700 }
0x2d38   :  { %8886 = vrcp.f32 %v4701_v4 }
0x2d3b   :  { %v4705_v5 = vpop.permute.xlu0 %4704 }
0x2d3c   :  { %8415 = vmatpush3.msk.msra.mxu0 %vm229_vm4, %v4705_v5  ;;  %v5081_v5 = vld [vmem:[#allocation2 + $0x220] sm:$0xff] }
0x2d3d   :  { %8714 = vmatprep.subr.bf16.mxu0 %v8985_v0 }
0x2d42   :  { %v8887_v7 = vpop.eup %8886 }
0x2d43   :  { %v4703_v48 = vmul.f32 %v8887_v7, %v8885_v60  ;;  %v5082_v7 = vld [vmem:[#allocation2 + $0x228] sm:$0xff] }
0x2d45   :  { %8417 = vmatmul.mubr.msk.f32.vlgmr.msra.gmra.mrb[56].mxu0 %vm225_vm5, %v4703_v48  ;;  %v8733_v48 = vpack.c.bf16 %v5082_v7, %v5081_v5 }
0x2d46   :  { %8432 = vmatprep.mubr.msk.f32.mxu0 %vm8986_vm0, %v8987_v1  ;;  %8716 = vmatpush3.bf16.msra.mxu0 %v8715_v25 }
0x2d47   :  { %8717 = vmatprep.subr.bf16.mxu0 %v8985_v0 }
0x2d4a   :  { %8719 = vmatpush3.bf16.msra.mxu0 %v8718_v27 }
0x2d4b   :  { %8732 = vmatprep.subr.bf16.mxu0 %v8985_v0 }
0x2e18   :  { %v4777_v39 = vpop.f32.mrb[56].mxu0 }
0x2e19   :  { %v8418_v10 = vpop.f32.mrb[57].mxu0  ;;  %8422 = vmatmul.mubr.msk.f32.vlgmr.msra.gmra.mrb[54].mxu1 %vm134_vm2, %v4777_v39  ;;  %v5083_v39 = vld [vmem:[#allocation2 + $0x230] sm:$0xff] }
0x2e1a   :  { %8451 = vmatprep.mubr.msk.f32.mxu1 %vm8986_vm0, %v8987_v1  ;;  %v5084_v10 = vld [vmem:[#allocation2 + $0x238] sm:$0xff] }
0x2eec   :  { %v4850_v13 = vpop.f32.mrb[54].mxu1 }
0x2eed   :  { %v4854_v54 = vadd.f32 %v4850_v13, %v4612_v17  ;;  %v8423_v14 = vpop.f32.mrb[55].mxu1 }
0x2eef   :  { %v4859_v15 = vadd.f32 %v7758_v12, %v4854_v54  ;;  %v8736_v12 = vpack.c.bf16 %v5084_v10, %v5083_v39 }
0x2ef1   :  { %v4860_v16 = vadd.f32 %v4859_v15, %v9502_v36  ;;  %v4969_v36 = vld [vmem:[#allocation2 + $0x1e0] sm:$0xff] }
0x2ef2   :  { %v8721_v45 = vpack.c.bf16 %v4970_v28, %v4969_v36 }
0x2ef3   :  { %v4863_v18 = vsel %vm57_vm1, %v4860_v16, 0.0 }
0x2ef4   :  { %4864 = vadd.xlane.f32.xlu1 %v4863_v18  ;;  %8722 = vmatpush3.bf16.msra.mxu1 %v8721_v45 }
0x2ef5   :  { %8723 = vmatprep.subr.bf16.mxu1 %v8985_v0 }
0x2ef8   :  { %8725 = vmatpush3.bf16.msra.mxu1 %v8724_v31 }
0x2ef9   :  { %8726 = vmatprep.subr.bf16.mxu1 %v8985_v0 }
0x2efc   :  { %8728 = vmatpush3.bf16.msra.mxu1 %v8727_v33 }
0x2efd   :  { %8729 = vmatprep.subr.bf16.mxu1 %v8985_v0 }
0x2f00   :  { %8731 = vmatpush3.bf16.msra.mxu1 %v8730_v47  ;;  %v5087_v47 = vld [vmem:[#allocation2 + $0x248] sm:$0xff] }
0x2f01   :  { %8470 = vmatprep.subr.mxu1 %v8987_v1 }
0x2f81   :  { %v4865_v19 = vpop.xlane.xlu1 %4864 }
0x2f82   :  { %v4866_v20 = vmul.f32 0.03125, %v4865_v19  ;;  %v7766_v19 = vld [vmem:[%s9942_s5 + $0x1d] ss:$0 sm:$0xff] }
0x2f84   :  { %v4867_v21 = vsub.f32 %v4860_v16, %v4866_v20  ;;  %v7765_v16 = vld [vmem:[%s9942_s5 + $0x1c] ss:$0 sm:$0xff] }
0x2f86   :  { %v4868_v22 = vmul.f32 %v4867_v21, %v4867_v21 }
0x2f88   :  { %v4869_v23 = vsel %vm57_vm1, %v4868_v22, 0.0  ;;  %v7767_v22 = vld [vmem:[%s9942_s5 + $0x1e] ss:$0 sm:$0xff] }
0x2f89   :  { %4870 = vadd.xlane.f32.xlu1 %v4869_v23 }
0x3016   :  { %v4871_v34 = vpop.xlane.xlu1 %4870 }
0x3017   :  { %v4872_v50 = vmul.f32 0.03125, %v4871_v34 }
0x3019   :  { %v4873_v35 = vadd.f32 1e-05, %v4872_v50 }
0x301b   :  { %8888 = vrsqrt.f32 %v4873_v35 }
0x3025   :  { %v8889_v37 = vpop.eup %8888 }
0x3026   :  { %v4875_v40 = vmul.f32 %v8889_v37, %v4867_v21 }
0x3028   :  { %v4880_v42 = vmul.f32 %v7759_v38, %v4875_v40 }
0x302a   :  { %v4885_v43 = vadd.f32 %v7760_v41, %v4880_v42 }
0x302c   :  { %8433 = vmatmul.mubr.msk.f32.vlgmr.msra.gmra.mrb[58].mxu0 %vm57_vm1, %v4885_v43 }
0x302d   :  { %8462 = vmatprep.mubr.msk.f32.mxu0 %vm8986_vm0, %v8987_v1  ;;  %8734 = vmatpush3.bf16.msra.mxu0 %v8733_v48 }
0x302e   :  { %8735 = vmatprep.subr.bf16.mxu0 %v8985_v0 }
0x3031   :  { %8737 = vmatpush3.bf16.msra.mxu0 %v8736_v12 }
0x3032   :  { %8465 = vmatprep.subr.mxu0 %v8987_v1 }
0x30ff   :  { %v4964_v52 = vpop.f32.mrb[58].mxu0 }
0x3100   :  { %v4965_v53 = vadd.f32 %v7761_v51, %v4964_v52  ;;  %v8434_v8 = vpop.f32.mrb[59].mxu0 }
0x3102   :  { %v4968_v55 = vmax.f32 %v4965_v53, 0.0 }
0x3104   :  { %8452 = vmatmul.mubr.msk.f32.vlgmr.msra.gmra.mrb[56].mxu1 %vm1229_vm7, %v4968_v55 }
0x3105   :  { %8472 = vmatprep.mubr.msk.f32.mxu1 %vm8986_vm0, %v8987_v1 }
0x31d7   :  { %v5051_v57 = vpop.f32.mrb[56].mxu1 }
0x31d8   :  { %v5052_v58 = vadd.f32 %v7763_v56, %v5051_v57  ;;  %v8453_v59 = vpop.f32.mrb[57].mxu1 }
0x31d9   :  { %v5086_v59 = vld [vmem:[#allocation2 + $0x240] sm:$0xff] }
0x31da   :  { %v5055_v60 = vadd.f32 %v5052_v58, %v4885_v43 }
0x31dc   :  { %v5058_v61 = vsel %vm57_vm1, %v5055_v60, 0.0 }
0x31dd   :  { %5059 = vadd.xlane.f32.xlu1 %v5058_v61 }
0x326a   :  { %v5060_v62 = vpop.xlane.xlu1 %5059 }
0x326b   :  { %v5061_v63 = vmul.f32 0.03125, %v5060_v62 }
0x326d   :  { %v5062_v17 = vsub.f32 %v5055_v60, %v5061_v63 }
0x326f   :  { %v5063_v3 = vmul.f32 %v5062_v17, %v5062_v17 }
0x3271   :  { %v5064_v4 = vsel %vm57_vm1, %v5063_v3, 0.0 }
0x3272   :  { %5065 = vadd.xlane.f32.xlu1 %v5064_v4 }
0x32ff   :  { %v5066_v13 = vpop.xlane.xlu1 %5065 }
0x3300   :  { %v5067_v54 = vmul.f32 0.03125, %v5066_v13 }
0x3302   :  { %v5068_v14 = vadd.f32 1e-05, %v5067_v54 }
0x3304   :  { %8890 = vrsqrt.f32 %v5068_v14 }
0x330e   :  { %v8891_v15 = vpop.eup %8890 }
0x330f   :  { %v5070_v18 = vmul.f32 %v8891_v15, %v5062_v17 }
0x3311   :  { %v5075_v20 = vmul.f32 %v7765_v16, %v5070_v18 }
0x3313   :  { %v9647_v21 = vadd.f32 %v7766_v19, %v5075_v20 }
0x3315   :  { %8463 = vmatmul.mubr.msk.f32.vlgmr.msra.gmra.mrb[60].mxu0 %vm57_vm1, %v9647_v21 }
0x3316   :  { %8467 = vmatprep.mubr.msk.f32.mxu0 %vm8986_vm0, %v8987_v1 }
0x33e8   :  { %v5164_v23 = vpop.f32.mrb[60].mxu0 }
0x33e9   :  { %v9656_v9 = vadd.f32 %v7767_v22, %v5164_v23  ;;  %v8464_v24 = vpop.f32.mrb[61].mxu0 }
0x33eb   :  { %5336 = vrot.lane.b32.xlu0 %v9656_v9, %s8990_s16  ;;  %5169 = vrot.lane.b32.xlu1 %v9656_v9, %s8989_s15 }
0x33ef   :  { %5334 = vrot.lane.b32.xlu0 %v9656_v9, %s8988_s14 }
0x345d   :  { %v5170_v25 = vpop.permute.xlu1 %5169  ;;  %v5337_v26 = vpop.permute.xlu0 %5336 }
0x345e   :  { %8466 = vmatpush3.xpose.msk.msra.mxu0 %vm134_vm2, %v5170_v25 }
0x345f   :  { %8475 = vmatprep.subr.mxu0 %v8987_v1 }
0x3461   :  { %8468 = vmatmul.mubr.msk.f32.vlgmr.msra.gmra.mrb[62].mxu0 %vm134_vm2, %v9656_v9  ;;  %v5335_v2 = vpop.permute.xlu0 %5334 }
0x3462   :  { %8476 = vmatpush3.xpose.msk.msra.mxu0 %vm134_vm2, %v5337_v26  ;;  %8477 = vmatprep.mubr.msk.f32.mxu0 %vm8986_vm0, %v8987_v1 }
0x3463   :  { %8485 = vmatprep.subr.mxu0 %v8987_v1 }
0x3465   :  { %8478 = vmatmul.mubr.msk.f32.vlgmr.msra.gmra.mrb[64].mxu0 %vm134_vm2, %v5335_v2 }
0x3466   :  { %8487 = vmatprep.mubr.msk.f32.mxu0 %vm8986_vm0, %v8987_v1  ;;  %8486 = vmatpush3.msra.mxu0 %v5087_v47 }
0x3467   :  { %8495 = vmatprep.subr.mxu0 %v8987_v1 }
0x3534   :  { %v5241_v27 = vpop.f32.mrb[62].mxu0 }
0x3535   :  { %v5245_v36 = vmul.f32 0.35355338, %v5241_v27  ;;  %v8469_v28 = vpop.f32.mrb[63].mxu0  ;;  %v5088_v27 = vld [vmem:[#allocation2 + $0x250] sm:$0xff] }
0x3537   :  { %v5246_v45 = vadd.f32 %v9678_v29, %v5245_v36 }
0x3538   :  { %v5408_v11 = vpop.f32.mrb[64].mxu0 }
0x3539   :  { %v5412_v31 = vmul.f32 0.35355338, %v5408_v11  ;;  %v8479_v32 = vpop.f32.mrb[65].mxu0  ;;  %v5247_v6 = vsel %vm134_vm2, %v5246_v45, -inf }
0x353a   :  { %5248 = vmax.xlane.f32.xlu0 %v5247_v6 }
0x353b   :  { %v5413_v33 = vadd.f32 %v9678_v29, %v5412_v31 }
0x353d   :  { %v5414_v34 = vsel %vm134_vm2, %v5413_v33, -inf }
0x353e   :  { %5415 = vmax.xlane.f32.xlu1 %v5414_v34 }
0x354f   :  { %5425 = vrot.lane.b32.xlu1 %v9656_v9, %s8991_s1  ;;  %s8999_s1 = smov [#allocation5]  }
0x3553   :  { %5649 = vrot.lane.b32.xlu1 %v9656_v9, %s8993_s20 }
0x35c7   :  { %v5249_v50 = vpop.xlane.xlu0 %5248 }
0x35c8   :  { %v5250_v35 = vsub.f32 %v5246_v45, %v5249_v50 }
0x35ca   :  { %v5251_v37 = vmul.f32 1.442695, %v5250_v35 }
0x35cb   :  { %v5416_v38 = vpop.xlane.xlu1 %5415 }
0x35cc   :  { %8892 = vpow2.f32 %v5251_v37  ;;  %v5417_v40 = vsub.f32 %v5413_v33, %v5416_v38 }
0x35ce   :  { %v5418_v41 = vmul.f32 1.442695, %v5417_v40  ;;  %v5089_v40 = vld [vmem:[#allocation2 + $0x258] sm:$0xff] }
0x35cf   :  { %v5426_v56 = vpop.permute.xlu1 %5425 }
0x35d0   :  { %8894 = vpow2.f32 %v5418_v41 }
0x35d3   :  { %v5650_v63 = vpop.permute.xlu1 %5649 }
0x35d6   :  { %v8893_v42 = vpop.eup %8892 }
0x35d7   :  { %v5253_v43 = vsel %vm134_vm2, %v8893_v42, 0.0 }
0x35d8   :  { %5254 = vadd.xlane.f32.xlu0 %v5253_v43 }
0x35da   :  { %v8895_v44 = vpop.eup %8894 }
0x35db   :  { %v5420_v46 = vsel %vm134_vm2, %v8895_v44, 0.0 }
0x35dc   :  { %5421 = vadd.xlane.f32.xlu0 %v5420_v46 }
0x35f2   :  { %5258 = vrot.lane.b32.xlu0 %v9656_v9, %s8992_s19  ;;  %s7641_s19 = sshll.u32 %s8999_s1, 4  ;;  %s7642_s19 = int_to_ptr.vmem [resolvable:$true] %s7641_s19 }
0x35f3   :  { %p8961_p9 = scmp.lt.s32.totalorder %s7642_s19, %s7642_s19 }
0x35f6   :  { %5647 = vrot.lane.b32.xlu0 %v9656_v9, %s8994_s21 }
0x3665   :  { %v5255_v51 = vpop.xlane.xlu0 %5254 }
0x3666   :  { %8896 = vrcp.f32 %v5255_v51  ;;  %v7785_v51 = vld [vmem:[%s9942_s5 + $0x1f] ss:$0 sm:$0xff] }
0x3669   :  { %v5422_v52 = vpop.xlane.xlu0 %5421 }
0x366a   :  { %8898 = vrcp.f32 %v5422_v52 }
0x366d   :  { %v5259_v53 = vpop.permute.xlu0 %5258 }
0x366e   :  { %8471 = vmatpush3.msra.mxu1 %v5259_v53 }
0x366f   :  { %8480 = vmatprep.subr.mxu1 %v8987_v1 }
0x3670   :  { %v8897_v8 = vpop.eup %8896 }
0x3671   :  { %v5257_v55 = vmul.f32 %v8897_v8, %v8893_v42  ;;  %v5648_v3 = vpop.permute.xlu0 %5647 }
0x3673   :  { %8473 = vmatmul.mubr.msk.f32.vlgmr.msra.gmra.mrb[58].mxu1 %vm134_vm2, %v5257_v55 }
0x3674   :  { %v8899_v57 = vpop.eup %8898  ;;  %8481 = vmatpush3.msra.mxu1 %v5426_v56  ;;  %8482 = vmatprep.mubr.msk.f32.mxu1 %vm8986_vm0, %v8987_v1 }
0x3675   :  { %v5424_v58 = vmul.f32 %v8899_v57, %v8895_v44  ;;  %8490 = vmatprep.subr.mxu1 %v8987_v1 }
0x3677   :  { %8483 = vmatmul.mubr.msk.f32.vlgmr.msra.gmra.mrb[60].mxu1 %vm134_vm2, %v5424_v58  ;;  %v6162_v58 = vld [vmem:[#allocation2 + $0x270] sm:$0xff] }
0x3678   :  { %8492 = vmatprep.mubr.msk.f32.mxu1 %vm8986_vm0, %v8987_v1  ;;  %8491 = vmatpush3.msra.mxu1 %v5086_v59  ;;  %v6163_v59 = vld [vmem:[#allocation2 + $0x278] sm:$0xff] }
0x3679   :  { %8500 = vmatprep.subr.mxu1 %v8987_v1 }
0x3746   :  { %v5330_v60 = vpop.f32.mrb[58].mxu1 }
0x3747   :  { %v8474_v61 = vpop.f32.mrb[59].mxu1  ;;  %8493 = vmatmul.mubr.msk.f32.vlgmr.msra.gmra.mrb[62].mxu1 %vm134_vm2, %v5330_v60  ;;  %v8807_v60 = vpack.i.bf16 %v6163_v59, %v6162_v58 }
0x3748   :  { %8502 = vmatprep.mubr.msk.f32.mxu1 %vm8986_vm0, %v8987_v1 }
0x374a   :  { %v5497_v62 = vpop.f32.mrb[60].mxu1 }
0x374b   :  { %v8484_v17 = vpop.f32.mrb[61].mxu1  ;;  %8488 = vmatmul.mubr.msk.f32.vlgmr.msra.gmra.mrb[66].mxu0 %vm134_vm2, %v5497_v62 }
0x374c   :  { %8496 = vmatpush3.xpose.msk.msra.mxu0 %vm134_vm2, %v5650_v63  ;;  %8497 = vmatprep.mubr.msk.f32.mxu0 %vm8986_vm0, %v8987_v1 }
0x374d   :  { %8505 = vmatprep.subr.mxu0 %v8987_v1 }
0x374f   :  { %8498 = vmatmul.mubr.msk.f32.vlgmr.msra.gmra.mrb[68].mxu0 %vm134_vm2, %v5648_v3 }
0x3750   :  { %8507 = vmatprep.mubr.msk.f32.mxu0 %vm8986_vm0, %v8987_v1  ;;  %8506 = vmatpush3.msra.mxu0 %v5088_v27 }
0x3751   :  { %8515 = vmatprep.subr.mxu0 %v8987_v1 }
0x381a   :  { %v5643_v4 = vpop.f32.mrb[62].mxu1 }
0x381b   :  { %v8494_v5 = vpop.f32.mrb[63].mxu1 }
0x381c   :  { %v6161_v5 = vld [vmem:[#allocation2 + $0x268] sm:$0xff] }
0x381e   :  { %v5570_v7 = vpop.f32.mrb[66].mxu0 }
0x381f   :  { %v5644_v48 = vadd.f32 %v5643_v4, %v5570_v7  ;;  %v8489_v39 = vpop.f32.mrb[67].mxu0  ;;  %v6160_v4 = vld [vmem:[#allocation2 + $0x260] sm:$0xff] }
0x3820   :  { %v8802_v7 = vpack.i.bf16 %v6161_v5, %v6160_v4  ;;  %v7788_v39 = vld [vmem:[%s9942_s5 + $0x22] ss:$0 sm:$0xff] }
0x3822   :  { %v5721_v10 = vpop.f32.mrb[68].mxu0 }
0x3823   :  { %v5725_v12 = vmul.f32 0.35355338, %v5721_v10  ;;  %v8499_v13 = vpop.f32.mrb[69].mxu0 }
0x3825   :  { %v5726_v54 = vadd.f32 %v9678_v29, %v5725_v12 }
0x3827   :  { %v5727_v14 = vsel %vm134_vm2, %v5726_v54, -inf }
0x3828   :  { %5728 = vmax.xlane.f32.xlu1 %v5727_v14 }
0x3839   :  { %5890 = vrot.lane.b32.xlu1 %v9656_v9, %s8995_s22 }
0x383d   :  { %5888 = vrot.lane.b32.xlu1 %v9656_v9, %s8996_s23 }
0x38b5   :  { %v5729_v15 = vpop.xlane.xlu1 %5728 }
0x38b6   :  { %v5730_v16 = vsub.f32 %v5726_v54, %v5729_v15 }
0x38b8   :  { %v5731_v18 = vmul.f32 1.442695, %v5730_v16 }
0x38b9   :  { %v5891_v25 = vpop.permute.xlu1 %5890 }
0x38ba   :  { %8900 = vpow2.f32 %v5731_v18 }
0x38bd   :  { %v5889_v2 = vpop.permute.xlu1 %5888 }
0x38c4   :  { %v8901_v19 = vpop.eup %8900 }
0x38c5   :  { %v5733_v20 = vsel %vm134_vm2, %v8901_v19, 0.0 }
0x38c6   :  { %5734 = vadd.xlane.f32.xlu0 %v5733_v20 }
0x38dc   :  { %5738 = vrot.lane.b32.xlu0 %v9656_v9, %s8997_s24  ;;  %s8956_s24 = scalar_lea.vmem %s7642_s19, 128 }
0x38dd   :  { %p8957_p8 = scmp.ne.s32.totalorder %s7642_s19, %s8956_s24  ;;  %p8962_p10 = scmp.lt.s32.totalorder %s8956_s24, %s8956_s24 }
0x38df   :  { %p8963_p11 = por %p8962_p10, %p8961_p9 }
0x38e1   :  { %p8964_p12 = pnand %p8963_p11, %p8957_p8 }
0x3953   :  { %v5735_v22 = vpop.xlane.xlu0 %5734 }
0x3954   :  { %8902 = vrcp.f32 %v5735_v22 }
0x3957   :  { %v5739_v23 = vpop.permute.xlu0 %5738 }
0x3958   :  { %8501 = vmatpush3.msra.mxu1 %v5739_v23 }
0x3959   :  { %8510 = vmatprep.subr.mxu1 %v8987_v1 }
0x395e   :  { %v8903_v24 = vpop.eup %8902 }
0x395f   :  { %v5737_v26 = vmul.f32 %v8903_v24, %v8901_v19  ;;  %v7786_v24 = vld [vmem:[%s9942_s5 + $0x20] ss:$0 sm:$0xff] }
0x3961   :  { %8503 = vmatmul.mubr.msk.f32.vlgmr.msra.gmra.mrb[64].mxu1 %vm134_vm2, %v5737_v26  ;;  %v7787_v26 = vld [vmem:[%s9942_s5 + $0x21] ss:$0 sm:$0xff] }
0x3962   :  { %8511 = vmatpush3.xpose.msk.msra.mxu1 %vm134_vm2, %v5891_v25  ;;  %8512 = vmatprep.mubr.msk.f32.mxu1 %vm8986_vm0, %v8987_v1 }
0x3963   :  { %8520 = vmatprep.subr.mxu1 %v8987_v1 }
0x3965   :  { %8513 = vmatmul.mubr.msk.f32.vlgmr.msra.gmra.mrb[66].mxu1 %vm134_vm2, %v5889_v2 }
0x3966   :  { %8522 = vmatprep.mubr.msk.f32.mxu1 %vm8986_vm0, %v8987_v1  ;;  %8521 = vmatpush3.msra.mxu1 %v5089_v40 }
0x3967   :  { %8744 = vmatprep.subr.bf16.mxu1 %v8985_v0 }
0x3a34   :  { %v5810_v36 = vpop.f32.mrb[64].mxu1 }
0x3a35   :  { %v8504_v28 = vpop.f32.mrb[65].mxu1  ;;  %8508 = vmatmul.mubr.msk.f32.vlgmr.msra.gmra.mrb[70].mxu0 %vm134_vm2, %v5810_v36 }
0x3a36   :  { %8517 = vmatprep.mubr.msk.f32.mxu0 %vm8986_vm0, %v8987_v1 }
0x3a38   :  { %v5962_v45 = vpop.f32.mrb[66].mxu1 }
0x3a39   :  { %v5966_v11 = vmul.f32 0.35355338, %v5962_v45  ;;  %v8514_v31 = vpop.f32.mrb[67].mxu1 }
0x3a3b   :  { %v5967_v32 = vadd.f32 %v9678_v29, %v5966_v11 }
0x3a3d   :  { %v5968_v6 = vsel %vm134_vm2, %v5967_v32, -inf }
0x3a3e   :  { %5969 = vmax.xlane.f32.xlu0 %v5968_v6 }
0x3a54   :  { %5979 = vrot.lane.b32.xlu0 %v9656_v9, %s8998_s25 }
0x3a58   :  { %8808 = vrot.lane.b32.xlu0 %v8807_v60, %s8989_s15 }
0x3a5c   :  { %6264 = vrot.lane.b32.xlu0 %v7788_v39, %s8989_s15 }
0x3acb   :  { %v5970_v33 = vpop.xlane.xlu0 %5969 }
0x3acc   :  { %v5971_v34 = vsub.f32 %v5967_v32, %v5970_v33 }
0x3ace   :  { %v5972_v50 = vmul.f32 1.442695, %v5971_v34 }
0x3acf   :  { %v5980_v35 = vpop.permute.xlu0 %5979 }
0x3ad0   :  { %8904 = vpow2.f32 %v5972_v50  ;;  %8516 = vmatpush3.msra.mxu0 %v5980_v35 }
0x3ad1   :  { %8738 = vmatprep.subr.bf16.mxu0 %v8985_v0 }
0x3ad3   :  { %v8809_v13 = vpop.permute.xlu0 %8808 }
0x3ad4   :  { %v8811_v15 = vunpack.i.h.bf16 %v8809_v13  ;;  %v8810_v19 = vunpack.i.l.bf16 %v8809_v13 }
0x3ad6   :  { %v8748_v22 = vpack.c.bf16 %v8811_v15, %v8810_v19  ;;  %v8933_v19 = vld [vmem:[%s9940_s3] sm:$0xff] }
0x3ad7   :  { %v6265_v36 = vpop.permute.xlu0 %6264 }
0x3ada   :  { %v8905_v37 = vpop.eup %8904 }
0x3adb   :  { %v5974_v38 = vsel %vm134_vm2, %v8905_v37, 0.0 }
0x3adc   :  { %5975 = vadd.xlane.f32.xlu1 %v5974_v38 }
0x3b08   :  { %v5883_v29 = vpop.f32.mrb[70].mxu0 }
0x3b09   :  { %v5887_v41 = vadd.f32 %v5883_v29, %v5644_v48  ;;  %v8509_v42 = vpop.f32.mrb[71].mxu0  ;;  %v8742_v48 = vpack.c.bf16 %v6163_v59, %v6162_v58 }
0x3b69   :  { %v5976_v9 = vpop.xlane.xlu1 %5975 }
0x3b6a   :  { %8906 = vrcp.f32 %v5976_v9 }
0x3b74   :  { %v8907_v43 = vpop.eup %8906 }
0x3b75   :  { %v5978_v44 = vmul.f32 %v8907_v43, %v8905_v37 }
0x3b77   :  { %8518 = vmatmul.mubr.msk.f32.vlgmr.msra.gmra.mrb[72].mxu0 %vm134_vm2, %v5978_v44 }
0x3b78   :  { %8533 = vmatprep.mubr.msk.f32.mxu0 %vm8986_vm0, %v8987_v1 }
0x3c4a   :  { %v6051_v46 = vpop.f32.mrb[72].mxu0 }
0x3c4b   :  { %v8519_v47 = vpop.f32.mrb[73].mxu0  ;;  %8523 = vmatmul.mubr.msk.f32.vlgmr.msra.gmra.mrb[68].mxu1 %vm134_vm2, %v6051_v46 }
0x3c4c   :  { %8544 = vmatprep.mubr.msk.f32.mxu1 %vm8986_vm0, %v8987_v1 }
0x3d1e   :  { %v6124_v52 = vpop.f32.mrb[68].mxu1 }
0x3d1f   :  { %v6128_v53 = vadd.f32 %v6124_v52, %v5887_v41  ;;  %v8524_v8 = vpop.f32.mrb[69].mxu1 }
0x3d21   :  { %v6133_v55 = vadd.f32 %v7785_v51, %v6128_v53 }
0x3d23   :  { %v6134_v56 = vadd.f32 %v6133_v55, %v9647_v21  ;;  %v8739_v21 = vpack.c.bf16 %v6161_v5, %v6160_v4 }
0x3d25   :  { %v6137_v57 = vsel %vm57_vm1, %v6134_v56, 0.0  ;;  %8740 = vmatpush3.bf16.msra.mxu0 %v8739_v21 }
0x3d26   :  { %6138 = vadd.xlane.f32.xlu1 %v6137_v57  ;;  %8741 = vmatprep.subr.bf16.mxu0 %v8985_v0 }
0x3d29   :  { %8743 = vmatpush3.bf16.msra.mxu0 %v8742_v48 }
0x3d2a   :  { %8547 = vmatprep.subr.mxu0 %v8987_v1 }
0x3db3   :  { %v6139_v61 = vpop.xlane.xlu1 %6138 }
0x3db4   :  { %v6140_v62 = vmul.f32 0.03125, %v6139_v61 }
0x3db6   :  { %v6141_v63 = vsub.f32 %v6134_v56, %v6140_v62 }
0x3db8   :  { %v6142_v17 = vmul.f32 %v6141_v63, %v6141_v63 }
0x3dba   :  { %v6143_v3 = vsel %vm57_vm1, %v6142_v17, 0.0  ;;  %v6165_v17 = vld [vmem:[#allocation2 + $0x280] sm:$0xff] }
0x3dbb   :  { %6144 = vadd.xlane.f32.xlu1 %v6143_v3  ;;  %v6166_v3 = vld [vmem:[#allocation2 + $0x288] sm:$0xff] }
0x3dcc   :  { %8803 = vrot.lane.b32.xlu1 %v8802_v7, %s8989_s15 }
0x3e48   :  { %v6145_v10 = vpop.xlane.xlu1 %6144 }
0x3e49   :  { %v6146_v12 = vmul.f32 0.03125, %v6145_v10 }
0x3e4b   :  { %v6147_v54 = vadd.f32 1e-05, %v6146_v12 }
0x3e4c   :  { %v8804_v14 = vpop.permute.xlu1 %8803 }
0x3e4d   :  { %8908 = vrsqrt.f32 %v6147_v54  ;;  %v8806_v16 = vunpack.i.h.bf16 %v8804_v14  ;;  %v8805_v18 = vunpack.i.l.bf16 %v8804_v14 }
0x3e4f   :  { %v8745_v20 = vpack.c.bf16 %v8806_v16, %v8805_v18 }
0x3e51   :  { %8746 = vmatpush3.bf16.msra.mxu1 %v8745_v20 }
0x3e52   :  { %8747 = vmatprep.subr.bf16.mxu1 %v8985_v0 }
0x3e55   :  { %8749 = vmatpush3.bf16.msra.mxu1 %v8748_v22 }
0x3e56   :  { %8552 = vmatprep.subr.mxu1 %v8987_v1 }
0x3e57   :  { %v8909_v23 = vpop.eup %8908 }
0x3e58   :  { %v6149_v25 = vmul.f32 %v8909_v23, %v6141_v63  ;;  %8545 = vmatmul.mubr.msk.f32.vlgmr.msra.gmra.mrb[70].mxu1 %vm57_vm1, %v9490_v30 }
0x3e59   :  { %8554 = vmatprep.mubr.msk.f32.mxu1 %vm8986_vm0, %v8987_v1 }
0x3e5a   :  { %v6154_v2 = vmul.f32 %v7786_v24, %v6149_v25 }
0x3e5c   :  { %v9776_v27 = vadd.f32 %v7787_v26, %v6154_v2 }
0x3e5e   :  { %8534 = vmatmul.mubr.msk.f32.vlgmr.msra.gmra.mrb[74].mxu0 %vm57_vm1, %v9776_v27 }
0x3e5f   :  { %8549 = vmatprep.mubr.msk.f32.mxu0 %vm8986_vm0, %v8987_v1 }
0x3f2b   :  { %v6333_v28 = vpop.f32.mrb[70].mxu1 }
0x3f2c   :  { %v9782_v45 = vadd.f32 %v6333_v28, %v6265_v36  ;;  %v8546_v30 = vpop.f32.mrb[71].mxu1 }
0x3f2e   :  { %6505 = vrot.lane.b32.xlu0 %v9782_v45, %s8988_s14  ;;  %8548 = vmatpush3.xpose.msk.msra.mxu0 %vm134_vm2, %v9782_v45 }
0x3f2f   :  { %8557 = vmatprep.subr.mxu0 %v8987_v1 }
0x3f31   :  { %v6243_v11 = vpop.f32.mrb[74].mxu0 }
0x3f32   :  { %v9789_v31 = vadd.f32 %v7788_v39, %v6243_v11  ;;  %v8535_v32 = vpop.f32.mrb[75].mxu0 }
0x3f34   :  { %6503 = vrot.lane.b32.xlu1 %v9789_v31, %s8988_s14  ;;  %8550 = vmatmul.mubr.msk.f32.vlgmr.msra.gmra.mrb[76].mxu0 %vm134_vm2, %v9789_v31 }
0x3f35   :  { %8559 = vmatprep.mubr.msk.f32.mxu0 %vm8986_vm0, %v8987_v1 }
0x3fa0   :  { %v6506_v6 = vpop.permute.xlu0 %6505 }
0x3fa1   :  { %8558 = vmatpush3.xpose.msk.msra.mxu0 %vm134_vm2, %v6506_v6  ;;  %v6167_v6 = vld [vmem:[#allocation2 + $0x290] sm:$0xff] }
0x3fa2   :  { %8567 = vmatprep.subr.mxu0 %v8987_v1 }
0x3fa6   :  { %v6504_v33 = vpop.permute.xlu1 %6503 }
0x3fa7   :  { %8560 = vmatmul.mubr.msk.f32.vlgmr.msra.gmra.mrb[78].mxu0 %vm134_vm2, %v6504_v33 }
0x3fa8   :  { %8569 = vmatprep.mubr.msk.f32.mxu0 %vm8986_vm0, %v8987_v1  ;;  %8568 = vmatpush3.msra.mxu0 %v6166_v3 }
0x3fa9   :  { %8577 = vmatprep.subr.mxu0 %v8987_v1 }
0x4007   :  { %v6409_v34 = vpop.f32.mrb[76].mxu0 }
0x4008   :  { %v6413_v50 = vmul.f32 0.35355338, %v6409_v34  ;;  %v8551_v35 = vpop.f32.mrb[77].mxu0 }
0x400a   :  { %v6414_v37 = vadd.f32 %v6413_v50, %v9531_v49 }
0x400c   :  { %v6415_v38 = vsel %vm225_vm5, %v6414_v37, -inf }
0x400d   :  { %6416 = vmax.xlane.f32.xlu0 %v6415_v38 }
0x407a   :  { %v6577_v40 = vpop.f32.mrb[78].mxu0 }
0x407b   :  { %v6581_v29 = vmul.f32 0.35355338, %v6577_v40  ;;  %v8561_v41 = vpop.f32.mrb[79].mxu0 }
0x407d   :  { %v6582_v42 = vadd.f32 %v6581_v29, %v9531_v49 }
0x407f   :  { %v6583_v9 = vsel %vm225_vm5, %v6582_v42, -inf }
0x4080   :  { %6584 = vmax.xlane.f32.xlu1 %v6583_v9 }
0x4091   :  { %6594 = vrot.lane.b32.xlu1 %v9782_v45, %s8990_s16 }
0x4095   :  { %6819 = vrot.lane.b32.xlu1 %v9782_v45, %s8994_s21 }
0x4099   :  { %6817 = vrot.lane.b32.xlu1 %v9789_v31, %s8994_s21 }
0x409a   :  { %v6417_v43 = vpop.xlane.xlu0 %6416 }
0x409b   :  { %v6418_v44 = vsub.f32 %v6414_v37, %v6417_v43 }
0x409d   :  { %v6419_v46 = vmul.f32 1.442695, %v6418_v44  ;;  %v6168_v44 = vld [vmem:[#allocation2 + $0x298] sm:$0xff] }
0x409f   :  { %8910 = vpow2.f32 %v6419_v46 }
0x40a9   :  { %v8911_v47 = vpop.eup %8910 }
0x40aa   :  { %v6421_v51 = vsel %vm225_vm5, %v8911_v47, 0.0 }
0x40ab   :  { %6422 = vadd.xlane.f32.xlu0 %v6421_v51 }
0x410d   :  { %v6585_v49 = vpop.xlane.xlu1 %6584 }
0x410e   :  { %v6586_v52 = vsub.f32 %v6582_v42, %v6585_v49 }
0x4110   :  { %v6587_v53 = vmul.f32 1.442695, %v6586_v52 }
0x4111   :  { %v6595_v61 = vpop.permute.xlu1 %6594 }
0x4112   :  { %8912 = vpow2.f32 %v6587_v53 }
0x4115   :  { %v6820_v7 = vpop.permute.xlu1 %6819 }
0x4119   :  { %v6818_v39 = vpop.permute.xlu1 %6817 }
0x411c   :  { %v8913_v8 = vpop.eup %8912 }
0x411d   :  { %v6589_v55 = vsel %vm225_vm5, %v8913_v8, 0.0 }
0x411e   :  { %6590 = vadd.xlane.f32.xlu0 %v6589_v55 }
0x4134   :  { %6426 = vrot.lane.b32.xlu0 %v9782_v45, %s8989_s15 }
0x4138   :  { %v6423_v56 = vpop.xlane.xlu0 %6422 }
0x4139   :  { %8914 = vrcp.f32 %v6423_v56  ;;  %v7811_v56 = vld [vmem:[%s9942_s5 + $0x23] ss:$0 sm:$0xff] }
0x4143   :  { %v8915_v58 = vpop.eup %8914 }
0x4144   :  { %v6425_v59 = vmul.f32 %v8915_v58, %v8911_v47 }
0x41ab   :  { %v6591_v57 = vpop.xlane.xlu0 %6590 }
0x41ac   :  { %8916 = vrcp.f32 %v6591_v57 }
0x41af   :  { %v6427_v60 = vpop.permute.xlu0 %6426 }
0x41b0   :  { %8553 = vmatpush3.msk.msra.mxu1 %vm229_vm4, %v6427_v60 }
0x41b1   :  { %8555 = vmatmul.mubr.msk.f32.vlgmr.msra.gmra.mrb[72].mxu1 %vm225_vm5, %v6425_v59  ;;  %8562 = vmatprep.subr.mxu1 %v8987_v1 }
0x41b2   :  { %8563 = vmatpush3.msk.msra.mxu1 %vm229_vm4, %v6595_v61  ;;  %8564 = vmatprep.mubr.msk.f32.mxu1 %vm8986_vm0, %v8987_v1 }
0x41b3   :  { %8572 = vmatprep.subr.mxu1 %v8987_v1 }
0x41b6   :  { %v8917_v62 = vpop.eup %8916 }
0x41b7   :  { %v6593_v63 = vmul.f32 %v8917_v62, %v8913_v8 }
0x41b9   :  { %8565 = vmatmul.mubr.msk.f32.vlgmr.msra.gmra.mrb[74].mxu1 %vm225_vm5, %v6593_v63 }
0x41ba   :  { %8574 = vmatprep.mubr.msk.f32.mxu1 %vm8986_vm0, %v8987_v1  ;;  %8573 = vmatpush3.msra.mxu1 %v6165_v17 }
0x41bb   :  { %8582 = vmatprep.subr.mxu1 %v8987_v1 }
0x4284   :  { %v6499_v4 = vpop.f32.mrb[72].mxu1 }
0x4285   :  { %v8556_v5 = vpop.f32.mrb[73].mxu1  ;;  %8575 = vmatmul.mubr.msk.f32.vlgmr.msra.gmra.mrb[76].mxu1 %vm134_vm2, %v6499_v4 }
0x4286   :  { %8584 = vmatprep.mubr.msk.f32.mxu1 %vm8986_vm0, %v8987_v1 }
0x428c   :  { %v6667_v21 = vpop.f32.mrb[74].mxu1 }
0x428d   :  { %v8566_v48 = vpop.f32.mrb[75].mxu1  ;;  %8570 = vmatmul.mubr.msk.f32.vlgmr.msra.gmra.mrb[80].mxu0 %vm134_vm2, %v6667_v21  ;;  %v7333_v21 = vld [vmem:[#allocation2 + $0x2a8] sm:$0xff] }
0x428e   :  { %8578 = vmatpush3.xpose.msk.msra.mxu0 %vm134_vm2, %v6820_v7  ;;  %8579 = vmatprep.mubr.msk.f32.mxu0 %vm8986_vm0, %v8987_v1  ;;  %v7332_v7 = vld [vmem:[#allocation2 + $0x2a0] sm:$0xff] }
0x428f   :  { %8587 = vmatprep.subr.mxu0 %v8987_v1  ;;  %v8751_v48 = vpack.c.bf16 %v7333_v21, %v7332_v7 }
0x4291   :  { %8580 = vmatmul.mubr.msk.f32.vlgmr.msra.gmra.mrb[82].mxu0 %vm134_vm2, %v6818_v39  ;;  %v7334_v39 = vld [vmem:[#allocation2 + $0x2b0] sm:$0xff] }
0x4292   :  { %8589 = vmatprep.mubr.msk.f32.mxu0 %vm8986_vm0, %v8987_v1  ;;  %8588 = vmatpush3.msra.mxu0 %v6167_v6  ;;  %v7814_v6 = vld [vmem:[%s9942_s5 + $0x26] ss:$0 sm:$0xff] }
0x4293   :  { %8597 = vmatprep.subr.mxu0 %v8987_v1 }
0x4358   :  { %v6813_v10 = vpop.f32.mrb[76].mxu1 }
0x4359   :  { %v8576_v12 = vpop.f32.mrb[77].mxu1 }
0x4360   :  { %v6740_v13 = vpop.f32.mrb[80].mxu0 }
0x4361   :  { %v6814_v54 = vadd.f32 %v6813_v10, %v6740_v13  ;;  %v8571_v14 = vpop.f32.mrb[81].mxu0  ;;  %v7335_v10 = vld [vmem:[#allocation2 + $0x2b8] sm:$0xff]  ;;  %v7416_v13 = vld [vmem:[#allocation2 + $0x2c8] sm:$0xff] }
0x4362   :  { %v8754_v12 = vpack.c.bf16 %v7335_v10, %v7334_v39 }
0x4364   :  { %v6891_v15 = vpop.f32.mrb[82].mxu0 }
0x4365   :  { %v6895_v16 = vmul.f32 0.35355338, %v6891_v15  ;;  %v8581_v18 = vpop.f32.mrb[83].mxu0  ;;  %v7418_v15 = vld [vmem:[#allocation2 + $0x2d8] sm:$0xff] }
0x4366   :  { %v7419_v18 = vld [vmem:[#allocation2 + $0x2e0] sm:$0xff] }
0x4367   :  { %v6896_v20 = vadd.f32 %v8933_v19, %v6895_v16 }
0x4369   :  { %v6897_v22 = vsel %vm225_vm5, %v6896_v20, -inf }
0x436a   :  { %6898 = vmax.xlane.f32.xlu0 %v6897_v22 }
0x4380   :  { %6908 = vrot.lane.b32.xlu0 %v9782_v45, %s8993_s20 }
0x4384   :  { %7059 = vrot.lane.b32.xlu0 %v9789_v31, %s8996_s23 }
0x43f7   :  { %v6899_v23 = vpop.xlane.xlu0 %6898 }
0x43f8   :  { %v6900_v24 = vsub.f32 %v6896_v20, %v6899_v23 }
0x43fa   :  { %v6901_v25 = vmul.f32 1.442695, %v6900_v24 }
0x43fb   :  { %v6909_v26 = vpop.permute.xlu0 %6908 }
0x43fc   :  { %8918 = vpow2.f32 %v6901_v25  ;;  %8583 = vmatpush3.msk.msra.mxu1 %vm229_vm4, %v6909_v26  ;;  %v7812_v26 = vld [vmem:[%s9942_s5 + $0x24] ss:$0 sm:$0xff] }
0x43fd   :  { %8592 = vmatprep.subr.mxu1 %v8987_v1 }
0x43ff   :  { %v7060_v32 = vpop.permute.xlu0 %7059 }
0x4406   :  { %v8919_v2 = vpop.eup %8918 }
0x4407   :  { %v6903_v36 = vsel %vm225_vm5, %v8919_v2, 0.0 }
0x4408   :  { %6904 = vadd.xlane.f32.xlu1 %v6903_v36  ;;  %v7813_v36 = vld [vmem:[%s9942_s5 + $0x25] ss:$0 sm:$0xff] }
0x4419   :  { %7061 = vrot.lane.b32.xlu1 %v9782_v45, %s8996_s23 }
0x4495   :  { %v6905_v28 = vpop.xlane.xlu1 %6904 }
0x4496   :  { %8920 = vrcp.f32 %v6905_v28 }
0x4499   :  { %v7062_v31 = vpop.permute.xlu1 %7061 }
0x44a0   :  { %v8921_v30 = vpop.eup %8920 }
0x44a1   :  { %v6907_v11 = vmul.f32 %v8921_v30, %v8919_v2 }
0x44a3   :  { %8585 = vmatmul.mubr.msk.f32.vlgmr.msra.gmra.mrb[78].mxu1 %vm225_vm5, %v6907_v11  ;;  %v7421_v11 = vld [vmem:[#allocation2 + $0x2f0] sm:$0xff] }
0x44a4   :  { %8593 = vmatpush3.xpose.msk.msra.mxu1 %vm134_vm2, %v7062_v31  ;;  %8594 = vmatprep.mubr.msk.f32.mxu1 %vm8986_vm0, %v8987_v1  ;;  %v7422_v31 = vld [vmem:[#allocation2 + $0x2f8] sm:$0xff] }
0x44a5   :  { %8602 = vmatprep.subr.mxu1 %v8987_v1 }
0x44a7   :  { %8595 = vmatmul.mubr.msk.f32.vlgmr.msra.gmra.mrb[80].mxu1 %vm134_vm2, %v7060_v32  ;;  %v8766_v32 = vpack.c.bf16 %v7422_v31, %v7421_v11 }
0x44a8   :  { %8604 = vmatprep.mubr.msk.f32.mxu1 %vm8986_vm0, %v8987_v1  ;;  %8603 = vmatpush3.msra.mxu1 %v6168_v44 }
0x44a9   :  { %8756 = vmatprep.subr.bf16.mxu1 %v8985_v0 }
0x4576   :  { %v6981_v33 = vpop.f32.mrb[78].mxu1 }
0x4577   :  { %v8586_v34 = vpop.f32.mrb[79].mxu1  ;;  %8590 = vmatmul.mubr.msk.f32.vlgmr.msra.gmra.mrb[84].mxu0 %vm134_vm2, %v6981_v33 }
0x4578   :  { %8599 = vmatprep.mubr.msk.f32.mxu0 %vm8986_vm0, %v8987_v1 }
0x457a   :  { %v7133_v50 = vpop.f32.mrb[80].mxu1 }
0x457b   :  { %v7137_v35 = vmul.f32 0.35355338, %v7133_v50  ;;  %v8596_v37 = vpop.f32.mrb[81].mxu1 }
0x457c   :  { %v7816_v37 = vld [vmem:[%s9942_s5 + $0x27] ss:$0 sm:$0xff] }
0x457d   :  { %v7138_v38 = vadd.f32 %v8933_v19, %v7137_v35  ;;  %v7420_v19 = vld [vmem:[#allocation2 + $0x2e8] sm:$0xff] }
0x457e   :  { %v8763_v20 = vpack.c.bf16 %v7420_v19, %v7419_v18 }
0x457f   :  { %v7139_v40 = vsel %vm225_vm5, %v7138_v38, -inf }
0x4580   :  { %7140 = vmax.xlane.f32.xlu1 %v7139_v40 }
0x460d   :  { %v7141_v29 = vpop.xlane.xlu1 %7140 }
0x460e   :  { %v7142_v41 = vsub.f32 %v7138_v38, %v7141_v29 }
0x4610   :  { %v7143_v42 = vmul.f32 1.442695, %v7142_v41 }
0x4612   :  { %8922 = vpow2.f32 %v7143_v42 }
0x461c   :  { %v8923_v9 = vpop.eup %8922 }
0x461d   :  { %v7145_v43 = vsel %vm225_vm5, %v8923_v9, 0.0 }
0x461e   :  { %7146 = vadd.xlane.f32.xlu0 %v7145_v43 }
0x4634   :  { %7150 = vrot.lane.b32.xlu0 %v9782_v45, %s8995_s22 }
0x464a   :  { %v7054_v46 = vpop.f32.mrb[84].mxu0 }
0x464b   :  { %v7058_v47 = vadd.f32 %v7054_v46, %v6814_v54  ;;  %v8591_v51 = vpop.f32.mrb[85].mxu0  ;;  %v7417_v54 = vld [vmem:[#allocation2 + $0x2d0] sm:$0xff] }
0x464c   :  { %v8760_v16 = vpack.c.bf16 %v7418_v15, %v7417_v54 }
0x46ab   :  { %v7147_v49 = vpop.xlane.xlu0 %7146 }
0x46ac   :  { %8924 = vrcp.f32 %v7147_v49 }
0x46af   :  { %v7151_v52 = vpop.permute.xlu0 %7150 }
0x46b0   :  { %8598 = vmatpush3.msk.msra.mxu0 %vm229_vm4, %v7151_v52 }
0x46b1   :  { %8750 = vmatprep.subr.bf16.mxu0 %v8985_v0 }
0x46b6   :  { %v8925_v53 = vpop.eup %8924 }
0x46b7   :  { %v7149_v8 = vmul.f32 %v8925_v53, %v8923_v9  ;;  %v7818_v53 = vld [vmem:[%s9942_s5 + $0x28] ss:$0 sm:$0xff] }
0x46b9   :  { %8600 = vmatmul.mubr.msk.f32.vlgmr.msra.gmra.mrb[86].mxu0 %vm225_vm5, %v7149_v8 }
0x46ba   :  { %8615 = vmatprep.mubr.msk.f32.mxu0 %vm8986_vm0, %v8987_v1  ;;  %8752 = vmatpush3.bf16.msra.mxu0 %v8751_v48 }
0x46bb   :  { %8753 = vmatprep.subr.bf16.mxu0 %v8985_v0 }
0x46be   :  { %8755 = vmatpush3.bf16.msra.mxu0 %v8754_v12  ;;  %v7820_v12 = vld [vmem:[%s9942_s5 + $0x2a] ss:$0 sm:$0xff] }
0x46bf   :  { %8768 = vmatprep.subr.bf16.mxu0 %v8985_v0 }
0x478c   :  { %v7223_v45 = vpop.f32.mrb[86].mxu0 }
0x478d   :  { %v8601_v55 = vpop.f32.mrb[87].mxu0  ;;  %8605 = vmatmul.mubr.msk.f32.vlgmr.msra.gmra.mrb[82].mxu1 %vm134_vm2, %v7223_v45  ;;  %v7819_v45 = vld [vmem:[%s9942_s5 + $0x29] ss:$0 sm:$0xff] }
0x478e   :  { %8634 = vmatprep.mubr.msk.f32.mxu1 %vm8986_vm0, %v8987_v1 }
0x4860   :  { %v7296_v57 = vpop.f32.mrb[82].mxu1 }
0x4861   :  { %v7300_v58 = vadd.f32 %v7296_v57, %v7058_v47  ;;  %v8606_v59 = vpop.f32.mrb[83].mxu1 }
0x4863   :  { %v7305_v60 = vadd.f32 %v7811_v56, %v7300_v58 }
0x4865   :  { %v7306_v61 = vadd.f32 %v7305_v60, %v9776_v27  ;;  %v7415_v27 = vld [vmem:[#allocation2 + $0x2c0] sm:$0xff] }
0x4866   :  { %v8757_v14 = vpack.c.bf16 %v7416_v13, %v7415_v27  ;;  %v7821_v13 = vld [vmem:[%s9942_s5 + $0x2b] ss:$0 sm:$0xff] }
0x4867   :  { %v7309_v62 = vsel %vm57_vm1, %v7306_v61, 0.0 }
0x4868   :  { %7310 = vadd.xlane.f32.xlu1 %v7309_v62  ;;  %8758 = vmatpush3.bf16.msra.mxu1 %v8757_v14  ;;  %v7822_v14 = vld [vmem:[%s9942_s5 + $0x2c] ss:$0 sm:$0xff] }
0x4869   :  { %8759 = vmatprep.subr.bf16.mxu1 %v8985_v0 }
0x486c   :  { %8761 = vmatpush3.bf16.msra.mxu1 %v8760_v16 }
0x486d   :  { %8762 = vmatprep.subr.bf16.mxu1 %v8985_v0 }
0x4870   :  { %8764 = vmatpush3.bf16.msra.mxu1 %v8763_v20 }
0x4871   :  { %8765 = vmatprep.subr.bf16.mxu1 %v8985_v0 }
0x4874   :  { %8767 = vmatpush3.bf16.msra.mxu1 %v8766_v32 }
0x48f5   :  { %v7311_v63 = vpop.xlane.xlu1 %7310 }
0x48f6   :  { %v7312_v17 = vmul.f32 0.03125, %v7311_v63  ;;  %v7552_v63 = vld [vmem:[#allocation2 + $0x300] sm:$0xff] }
0x48f8   :  { %v7313_v3 = vsub.f32 %v7306_v61, %v7312_v17  ;;  %v7553_v17 = vld [vmem:[#allocation2 + $0x308] sm:$0xff] }
0x48fa   :  { %v7314_v4 = vmul.f32 %v7313_v3, %v7313_v3 }
0x48fc   :  { %v7315_v5 = vsel %vm57_vm1, %v7314_v4, 0.0  ;;  %v7554_v4 = vld [vmem:[#allocation2 + $0x310] sm:$0xff] }
0x48fd   :  { %7316 = vadd.xlane.f32.xlu1 %v7315_v5  ;;  %v7555_v5 = vld [vmem:[#allocation2 + $0x318] sm:$0xff] }
0x48fe   :  { %v8772_v7 = vpack.c.bf16 %v7555_v5, %v7554_v4 }
0x498a   :  { %v7317_v22 = vpop.xlane.xlu1 %7316 }
0x498b   :  { %v7318_v23 = vmul.f32 0.03125, %v7317_v22 }
0x498d   :  { %v7319_v24 = vadd.f32 1e-05, %v7318_v23 }
0x498f   :  { %8926 = vrsqrt.f32 %v7319_v24 }
0x4999   :  { %v8927_v25 = vpop.eup %8926 }
0x499a   :  { %v7321_v2 = vmul.f32 %v8927_v25, %v7313_v3  ;;  %v8769_v3 = vpack.c.bf16 %v7553_v17, %v7552_v63 }
0x499c   :  { %v7326_v28 = vmul.f32 %v7812_v26, %v7321_v2 }
0x499e   :  { %v7331_v30 = vadd.f32 %v7813_v36, %v7326_v28 }
0x49a0   :  { %8616 = vmatmul.mubr.msk.f32.vlgmr.msra.gmra.mrb[88].mxu0 %vm57_vm1, %v7331_v30 }
0x49a1   :  { %8645 = vmatprep.mubr.msk.f32.mxu0 %vm8986_vm0, %v8987_v1  ;;  %8770 = vmatpush3.bf16.msra.mxu0 %v8769_v3 }
0x49a2   :  { %8771 = vmatprep.subr.bf16.mxu0 %v8985_v0 }
0x49a5   :  { %8773 = vmatpush3.bf16.msra.mxu0 %v8772_v7 }
0x4a73   :  { %v7410_v33 = vpop.f32.mrb[88].mxu0 }
0x4a74   :  { %v7411_v34 = vadd.f32 %v7814_v6, %v7410_v33  ;;  %v8617_v50 = vpop.f32.mrb[89].mxu0 }
0x4a76   :  { %v7414_v35 = vmax.f32 %v7411_v34, 0.0 }
0x4a78   :  { %8635 = vmatmul.mubr.msk.f32.vlgmr.msra.gmra.mrb[84].mxu1 %vm1229_vm7, %v7414_v35 }
0x4b4b   :  { %v7497_v38 = vpop.f32.mrb[84].mxu1 }
0x4b4c   :  { %v7498_v1 = vadd.f32 %v7816_v37, %v7497_v38  ;;  %v8636_v40 = vpop.f32.mrb[85].mxu1 }
0x4b4e   :  { %v7501_v29 = vadd.f32 %v7498_v1, %v7331_v30 }
0x4b50   :  { %v7504_v41 = vsel %vm57_vm1, %v7501_v29, 0.0 }
0x4b51   :  { %7505 = vadd.xlane.f32.xlu1 %v7504_v41 }
0x4bde   :  { %v7506_v42 = vpop.xlane.xlu1 %7505 }
0x4bdf   :  { %v7507_v9 = vmul.f32 0.03125, %v7506_v42 }
0x4be1   :  { %v7508_v43 = vsub.f32 %v7501_v29, %v7507_v9 }
0x4be3   :  { %v7509_v44 = vmul.f32 %v7508_v43, %v7508_v43 }
0x4be5   :  { %v7510_v46 = vsel %vm57_vm1, %v7509_v44, 0.0 }
0x4be6   :  { %7511 = vadd.xlane.f32.xlu1 %v7510_v46 }
0x4c73   :  { %v7512_v47 = vpop.xlane.xlu1 %7511 }
0x4c74   :  { %v7513_v51 = vmul.f32 0.03125, %v7512_v47 }
0x4c76   :  { %v7514_v49 = vadd.f32 1e-05, %v7513_v51 }
0x4c78   :  { %8928 = vrsqrt.f32 %v7514_v49 }
0x4c82   :  { %v8929_v52 = vpop.eup %8928 }
0x4c83   :  { %v7516_v8 = vmul.f32 %v8929_v52, %v7508_v43 }
0x4c85   :  { %v7521_v55 = vmul.f32 %v7818_v53, %v7516_v8 }
0x4c87   :  { %v7526_v56 = vadd.f32 %v7819_v45, %v7521_v55 }
0x4c89   :  { %v7529_v57 = vsel %vm57_vm1, %v7526_v56, 0.0 }
0x4c8a   :  { %7530 = vadd.xlane.f32.xlu1 %v7529_v57 }
0x4d17   :  { %v7531_v58 = vpop.xlane.xlu1 %7530 }
0x4d18   :  { %v7532_v59 = vmul.f32 0.03125, %v7531_v58 }
0x4d1a   :  { %v7533_v60 = vsub.f32 %v7526_v56, %v7532_v59 }
0x4d1c   :  { %v7534_v61 = vmul.f32 %v7533_v60, %v7533_v60 }
0x4d1e   :  { %v7535_v62 = vsel %vm57_vm1, %v7534_v61, 0.0 }
0x4d1f   :  { %7536 = vadd.xlane.f32.xlu0 %v7535_v62 }
0x4dac   :  { %v7537_v21 = vpop.xlane.xlu0 %7536 }
0x4dad   :  { %v7538_v48 = vmul.f32 0.03125, %v7537_v21 }
0x4daf   :  { %v7539_v39 = vadd.f32 1e-05, %v7538_v48 }
0x4db1   :  { %8930 = vrsqrt.f32 %v7539_v39 }
0x4dbb   :  { %v8931_v10 = vpop.eup %8930 }
0x4dbc   :  { %v7541_v27 = vmul.f32 %v8931_v10, %v7533_v60 }
0x4dbe   :  { %v7546_v54 = vmul.f32 %v7820_v12, %v7541_v27 }
0x4dc0   :  { %v7551_v0 = vadd.f32 %v7821_v13, %v7546_v54 }
0x4dc2   :  { %8646 = vmatmul.mubr.msk.f32.vlgmr.msra.gmra.mrb[90].mxu0 %vm57_vm1, %v7551_v0 }
0x4e95   :  { %v7630_v15 = vpop.f32.mrb[90].mxu0 }
0x4e96   :  { %v7631_v16 = vadd.f32 %v7822_v14, %v7630_v15  ;;  %v8647_v18 = vpop.f32.mrb[91].mxu0 }
0x4e98   :  { %7634 = vst [vmem:[#allocation5] sm:$0xff] %v7631_v16 }
0x4e99   :  { %8967 = shalt.err (!%p8964_p12)
}
0x4e9a   :  { %s8968_s8 = scalar_lea.hbm %s9943_s6, 128 }
0x4e9b   :  { %p8969_p13 = scmp.ne.s32.totalorder %s9943_s6, %s8968_s8  ;;  %p8972_p0 = scmp.lt.u32.totalorder %s8968_s8, %s9943_s6 }
0x4e9d   :  { %p8974_p1 = pnand %p8972_p0, %p8969_p13 }
0x4e9f   :  { %8977 = shalt.err (!%p8974_p1)
}
0x4ea0   :  { %7644 = dma.vmem_to_hbm [thread:$0]  %s7642_s19, 128, %s9943_s6, [#allocation4]  }
0x4ea1   :  { %8980 = dma.done.wait [#allocation4], 128  }
0x4ea2   :  { %8981 = vsyncadd [#allocation4], 4294967168 }
0x4ea3   :  { %7648 = vsyncpa [#allocation3], 1 }
0x4ea4   :  { %7649 = vsyncpa [#allocation4], 1 }

</bundles_post_ra>
